<compile_context>
chip_gen: v5e
topology: v5e:2x2
jax: 0.10.0
libtpu: 0.0.40
codegen_flags: <defaults>
</compile_context>

<pallas_src>
import numpy as np
import jax
import jax.numpy as jnp
from jax import lax
from jax.experimental import pallas as pl
from jax.experimental.pallas import tpu as pltpu

NUM_TAGS = 5
EMBED = 32
BATCH = 2
SEQ = 16

# id -> BIO label string (the "id_to_label" of the module)
ID_TO_LABEL = {0: 'O', 1: 'B-ARG', 2: 'I-ARG', 3: 'B-PRED', 4: 'I-PRED'}
BEGIN, INSIDE, OUTSIDE = 'B-', 'I-', 'O'


def _round_up(x, m):
    return ((x + m - 1) // m) * m


# ---------------------------------------------------------------------------
# 1) Fused kernel: projection -> CRF NLL (numerator + forward algorithm) ->
#    Viterbi decode.  One grid step per sequence; both recurrences share a
#    single unrolled time loop.
# ---------------------------------------------------------------------------
def _crf_viterbi_kernel(x_ref, wt_ref, bias_ref, tags_ref, mask_ref,
                        trans_ref, start_ref, end_ref,
                        nll_ref, path_ref,
                        logits_ref, bp_ref):
    S, E = x_ref.shape
    T = wt_ref.shape[1]
    PADL = path_ref.shape[1]            # lane-padded path width (multiple of 128)
    f32 = jnp.float32

    # ---- fused projection: logits stay in VMEM scratch (never hit HBM) ----
    logits_ref[...] = (jnp.dot(x_ref[...], wt_ref[...],
                               preferred_element_type=f32) + bias_ref[...])

    logits = logits_ref[...]            # (S, T)
    mask = mask_ref[...]                # (S, 1) float {0,1}
    trans = trans_ref[...]              # (T, T)
    start = start_ref[...]              # (1, T)
    end = end_ref[...]                  # (1, T)

    # ================= CRF numerator (gold path score) =================
    # Fully vectorized and hoisted off the sequential recurrences: one small
    # (S-1,T)x(T,T) matmul total; everything else is VPU compare/select +
    # lane/sublane reduces.
    iota_st = lax.broadcasted_iota(jnp.int32, (S, T), 1)
    onehot = (tags_ref[...] == iota_st).astype(f32)                      # (S, T)
    emit_tot = jnp.sum(jnp.sum(logits * onehot, axis=1, keepdims=True) * mask,
                       axis=0, keepdims=True)                            # (1, 1)

    iota_ht = lax.broadcasted_iota(jnp.int32, (S - 1, T), 1)
    oh_head = (tags_ref[0:S - 1, :] == iota_ht).astype(f32)              # tags[0..S-2]
    oh_next = (tags_ref[1:S, :] == iota_ht).astype(f32)                  # tags[1..S-1]
    mask_next = mask_ref[1:S, :]                                         # (S-1, 1)
    rows_head = jnp.dot(oh_head, trans, preferred_element_type=f32)      # trans[tags[i], :]
    trans_tot = jnp.sum(jnp.sum(rows_head * oh_next, axis=1, keepdims=True)
                        * mask_next, axis=0, keepdims=True)              # (1, 1)

    iota_1t = lax.broadcasted_iota(jnp.int32, (1, T), 1)
    oh0 = (tags_ref[0:1, :] == iota_1t).astype(f32)
    start_sc = jnp.sum(start * oh0, axis=1, keepdims=True)               # (1, 1)

    # end_transitions[last_tag]: the last unmasked step i is the unique one
    # with mask[i]=1 and mask[i+1]=0 (mask[S] := 0).
    end_sel = jnp.sum(end * onehot, axis=1, keepdims=True)               # (S, 1)
    end_sel_head = jnp.sum(end * oh_head, axis=1, keepdims=True)         # (S-1, 1)
    end_sc = (jnp.sum(end_sel * mask, axis=0, keepdims=True)
              - jnp.sum(end_sel_head * mask_next, axis=0, keepdims=True))
    numerator = start_sc + trans_tot + emit_tot + end_sc                 # (1, 1)

    # ========= merged forward-algorithm + Viterbi recurrence (unrolled) =========
    # Overflow-safe logsumexp over (alpha_k + trans_kj): shift by both the
    # alpha max and the per-column transition max so every exp() argument <= 0.
    # The T-wide contraction is an unrolled VPU broadcast-multiply-add; no MXU
    # op sits on the serial chain.  Viterbi max/argmax is pure compare/select,
    # so its VPU work interleaves with the forward-algorithm's EUP exp/log.
    tmax = jnp.max(trans, axis=0, keepdims=True)                         # (1, T)
    trans_rows = [trans_ref[k:k + 1, :] for k in range(T)]
    exp_rows = [jnp.exp(trans_rows[k] - tmax) for k in range(T)]         # hoisted
    iota_t = iota_1t.astype(f32)                                         # (1, T)

    alpha = start + logits_ref[0:1, :]                                   # (1, T)
    v = alpha
    for i in range(1, S):
        li = logits_ref[i:i + 1, :]                                      # (1, T)
        mb = mask_ref[i:i + 1, :] > 0.5                                  # (1, 1) bool

        # ---- forward algorithm (log-partition) ----
        amax = jnp.max(alpha, axis=1, keepdims=True)                     # (1, 1)
        scaled = jnp.exp(alpha - amax)                                   # (1, T)
        summed = scaled[:, 0:1] * exp_rows[0]
        for k in range(1, T):
            summed = summed + scaled[:, k:k + 1] * exp_rows[k]
        new_alpha = li + amax + tmax + jnp.log(summed)
        alpha = jnp.where(mb, new_alpha, alpha)

        # ---- Viterbi max/argmax ----
        best_val = v[:, 0:1] + trans_rows[0]
        best_idx = jnp.zeros((1, T), f32)
        for k in range(1, T):
            cand = v[:, k:k + 1] + trans_rows[k]
            take = cand > best_val                      # strict ">" => first-max ties
            best_val = jnp.where(take, cand, best_val)
            best_idx = jnp.where(take, f32(k), best_idx)
        v = jnp.where(mb, best_val + li, v)
        # masked steps get identity backpointers so the backtrack passes through
        bp_ref[i:i + 1, :] = jnp.where(mb, best_idx, iota_t)

    # ---- CRF NLL ----
    stops = alpha + end
    smax = jnp.max(stops, axis=1, keepdims=True)
    logz = smax + jnp.log(jnp.sum(jnp.exp(stops - smax), axis=1, keepdims=True))
    nll_ref[...] = logz - numerator                                      # per-seq NLL

    # ---- Viterbi termination + backtrack (on-device) ----
    stops_v = v + end
    vmax = jnp.max(stops_v, axis=1, keepdims=True)
    best_last = jnp.min(jnp.where(stops_v == vmax, iota_t, f32(T)),
                        axis=1, keepdims=True)                           # (1, 1)

    iota_p = lax.broadcasted_iota(jnp.int32, (1, PADL), 1).astype(f32)
    cur = best_last
    path = jnp.where(iota_p == f32(S - 1), cur, 0.0)                     # (1, PADL)
    for t in range(S - 1, 0, -1):
        bp_row = bp_ref[t:t + 1, :]                                      # (1, T)
        prev = jnp.sum(jnp.where(iota_t == cur, bp_row, 0.0),
                       axis=1, keepdims=True)                            # (1, 1)
        path = jnp.where(iota_p == f32(t - 1), prev, path)
        cur = prev
    # single lane-dense (128-lane multiple) store of the whole decoded path
    path_ref[...] = path.astype(jnp.int32)


def crf_loss_and_decode(X, proj_w, proj_b, tags, mask,
                        transitions, start_trans, end_trans):
    """Returns (per-seq NLL (B,), viterbi path (B, S) int32)."""
    B, S, E = X.shape
    T = proj_w.shape[0]
    PADL = _round_up(max(S, 128), 128)                                   # lane-dense path
    wt = jnp.transpose(proj_w).astype(jnp.float32)                       # (E, T)
    bias = proj_b.reshape(1, T).astype(jnp.float32)
    trans = transitions.astype(jnp.float32)
    start_row = start_trans.reshape(1, T).astype(jnp.float32)
    end_row = end_trans.reshape(1, T).astype(jnp.float32)
    tags3 = tags[:, :, None].astype(jnp.int32)                           # (B, S, 1)
    mask3 = mask[:, :, None].astype(jnp.float32)                         # (B, S, 1)

    grid_spec = pltpu.PrefetchScalarGridSpec(
        num_scalar_prefetch=0,
        grid=(B,),
        in_specs=[
            pl.BlockSpec((None, S, E), lambda b: (b, 0, 0)),   # X[b]
            pl.BlockSpec((E, T), lambda b: (0, 0)),            # W^T (not re-DMA'd per b)
            pl.BlockSpec((1, T), lambda b: (0, 0)),            # bias
            pl.BlockSpec((None, S, 1), lambda b: (b, 0, 0)),   # tags[b]
            pl.BlockSpec((None, S, 1), lambda b: (b, 0, 0)),   # mask[b]
            pl.BlockSpec((T, T), lambda b: (0, 0)),            # transitions
            pl.BlockSpec((1, T), lambda b: (0, 0)),            # start_transitions
            pl.BlockSpec((1, T), lambda b: (0, 0)),            # end_transitions
        ],
        out_specs=[
            pl.BlockSpec((None, 1, 1), lambda b: (b, 0, 0)),       # per-seq NLL
            pl.BlockSpec((None, 1, PADL), lambda b: (b, 0, 0)),    # viterbi path (padded)
        ],
        scratch_shapes=[pltpu.VMEM((S, T), jnp.float32),       # logits
                        pltpu.VMEM((S, T), jnp.float32)],      # backpointers
    )
    nll, path = pl.pallas_call(
        _crf_viterbi_kernel,
        grid_spec=grid_spec,
        out_shape=(jax.ShapeDtypeStruct((B, 1, 1), jnp.float32),
                   jax.ShapeDtypeStruct((B, 1, PADL), jnp.int32)),
        compiler_params=pltpu.CompilerParams(
            dimension_semantics=("parallel",)),                # v7x: 2 TCs split B
    )(X.astype(jnp.float32), wt, bias, tags3, mask3, trans, start_row, end_row)
    return nll.reshape(B), path.reshape(B, PADL)[:, :S]


# ---------------------------------------------------------------------------
# 2) BIO tag strings -> spans (host-side string logic, inclusive end indices)
# ---------------------------------------------------------------------------
# TODO(synk): regex/string BIO parsing and ragged span lists have no Pallas
# equivalent; done host-side.
def _strip_bio(x):
    if x.startswith(BEGIN) or x.startswith(INSIDE):
        return x[len(BEGIN):]
    return x


def bio_to_span_seq(labels):
    spans, active, start, end = [], None, -1, -1
    for i, x in enumerate(labels):
        tag = _strip_bio(x)
        if x == OUTSIDE:
            if active is not None:
                spans.append((active, start, end))
            active = None
        elif x.startswith(BEGIN):
            if active is not None:
                spans.append((active, start, end))
            active, start, end = tag, i, i
        elif x.startswith(INSIDE) and tag == active:
            end = i
        else:
            if active is not None:
                spans.append((active, start, end))
            active, start, end = tag, i, i
    if active is not None:
        spans.append((active, start, end))
    return [s[0] for s in spans], [[s[1], s[2]] for s in spans]


def seq_tags_to_spans(y_pred, id_to_label):
    counts, labels, indices_tmp = [], [], []
    for seq in y_pred:
        if any(seq):
            labs = [id_to_label[int(s)] for s in seq]
            labs, idx = bio_to_span_seq(labs)
            cnt = len(labs)
        else:
            labs, idx, cnt = [], [], 0
        labels.append(labs)
        indices_tmp.append(idx)
        counts.append(cnt)
    batch_size = len(y_pred)
    max_span_count = max(max(counts), 1)
    indices = np.zeros((batch_size, max_span_count, 2), dtype=np.int32)
    mask = np.zeros((batch_size, max_span_count), dtype=np.int32)
    for i in range(batch_size):
        c = counts[i]
        if c > 0:
            indices[i, :c, :] = np.array(indices_tmp[i], dtype=np.int32)
            mask[i, :c] = 1
    return labels, indices, mask


# ---------------------------------------------------------------------------
# 3) EndpointSpanExtractor with combination 'x,y,x*y' (vectorized gather)
# ---------------------------------------------------------------------------
def _endpoint_kernel(x_ref, starts_ref, ends_ref, smask_ref, out_ref):
    # x_ref: (S, E), starts/ends/smask: (M, 1), out: (M, 3E)
    S, E = x_ref.shape
    M = starts_ref.shape[0]
    f32 = jnp.float32
    iota_ms = lax.broadcasted_iota(jnp.int32, (M, S), 1)
    oh_s = (starts_ref[...] == iota_ms).astype(f32)                      # (M, S)
    oh_e = (ends_ref[...] == iota_ms).astype(f32)
    x = x_ref[...]
    xs = jnp.dot(oh_s, x, preferred_element_type=f32)                    # (M, E)
    xe = jnp.dot(oh_e, x, preferred_element_type=f32)                    # (M, E)
    comb = jnp.concatenate([xs, xe, xs * xe], axis=1)                    # 'x,y,x*y'
    out_ref[...] = (comb * smask_ref[...]).astype(out_ref.dtype)         # one store


def endpoint_span_extract(X, span_indices, span_mask):
    B, S, E = X.shape
    m_real = span_indices.shape[1]
    M = S  # fixed span capacity (>= any possible span count) -> no recompiles
    idx = np.zeros((B, M, 2), dtype=np.int32)
    msk = np.zeros((B, M), dtype=np.int32)
    idx[:, :m_real, :] = np.asarray(span_indices, dtype=np.int32)
    msk[:, :m_real] = np.asarray(span_mask, dtype=np.int32)
    idx = idx * msk[:, :, None]          # masked spans gather row 0, zeroed below
    starts = jnp.asarray(idx[:, :, 0:1])                                  # (B, M, 1)
    ends = jnp.asarray(idx[:, :, 1:2])                                    # (B, M, 1)
    smaskf = jnp.asarray(msk[:, :, None].astype(np.float32))              # (B, M, 1)
    out = pl.pallas_call(
        _endpoint_kernel,
        out_shape=jax.ShapeDtypeStruct((B, M, 3 * E), jnp.float32),
        grid=(B,),
        in_specs=[pl.BlockSpec((None, S, E), lambda b: (b, 0, 0)),
                  pl.BlockSpec((None, M, 1), lambda b: (b, 0, 0)),
                  pl.BlockSpec((None, M, 1), lambda b: (b, 0, 0)),
                  pl.BlockSpec((None, M, 1), lambda b: (b, 0, 0))],
        out_specs=pl.BlockSpec((None, M, 3 * E), lambda b: (b, 0, 0)),
        compiler_params=pltpu.CompilerParams(
            dimension_semantics=("parallel",)),
    )(X.astype(jnp.float32), starts, ends, smaskf)
    return out[:, :m_real, :]


# ---------------------------------------------------------------------------
# Full forward
# ---------------------------------------------------------------------------
def span_extractor_forward(params, X, y, mask):
    B, S, E = X.shape
    tags = y if y is not None else jnp.zeros((B, S), jnp.int32)
    nll, path = crf_loss_and_decode(X, params['proj_w'], params['proj_b'],
                                    tags, mask,
                                    params['transitions'],
                                    params['start_transitions'],
                                    params['end_transitions'])
    loss = jnp.sum(nll) if y is not None else None

    # only the small (B, S) int32 decoded path crosses to the host
    path_np = np.asarray(path)
    lengths = np.asarray(mask).sum(axis=1)
    y_pred = [[int(t) for t in path_np[b, :int(lengths[b])]] for b in range(B)]

    # host-side BIO -> span parsing (string logic)
    span_labels, span_indices, span_mask = seq_tags_to_spans(y_pred, ID_TO_LABEL)

    # endpoint span embeddings (Pallas, vectorized gather)
    span_embed = endpoint_span_extract(X, span_indices, span_mask)
    return loss, y_pred, span_labels, span_embed


if __name__ == "__main__":
    key = jax.random.PRNGKey(0)
    ks = jax.random.split(key, 8)
    params = {
        'proj_w': 0.1 * jax.random.normal(ks[0], (NUM_TAGS, EMBED), jnp.float32),
        'proj_b': 0.1 * jax.random.normal(ks[1], (NUM_TAGS,), jnp.float32),
        'transitions': 0.1 * jax.random.normal(ks[2], (NUM_TAGS, NUM_TAGS), jnp.float32),
        'start_transitions': 0.1 * jax.random.normal(ks[3], (NUM_TAGS,), jnp.float32),
        'end_transitions': 0.1 * jax.random.normal(ks[4], (NUM_TAGS,), jnp.float32),
    }
    X = jax.random.normal(ks[5], (BATCH, SEQ, EMBED), jnp.float32)
    y = jax.random.randint(ks[6], (BATCH, SEQ), 0, NUM_TAGS, jnp.int32)
    mask_np = np.stack([np.ones(SEQ, np.int32),
                        np.concatenate([np.ones(12, np.int32),
                                        np.zeros(SEQ - 12, np.int32)])])
    mask = jnp.asarray(mask_np)

    loss, y_pred, span_labels, span_embed = span_extractor_forward(params, X, y, mask)
    jax.block_until_ready(loss)
    jax.block_until_ready(span_embed)
    assert np.isfinite(float(loss))
    assert span_embed.shape[0] == BATCH and span_embed.shape[2] == 3 * EMBED
    print("KERNEL_OK")
</pallas_src>

<mosaic_0001>
module attributes {stable_mosaic.version = 11 : i64} {
  func.func @_crf_viterbi_kernel(%arg0: i32, %arg1: memref<1x16x32xf32, #tpu.memory_space<vmem>>, %arg2: memref<32x5xf32, #tpu.memory_space<vmem>>, %arg3: memref<1x5xf32, #tpu.memory_space<vmem>>, %arg4: memref<1x16x1xi32, #tpu.memory_space<vmem>>, %arg5: memref<1x16x1xf32, #tpu.memory_space<vmem>>, %arg6: memref<5x5xf32, #tpu.memory_space<vmem>>, %arg7: memref<1x5xf32, #tpu.memory_space<vmem>>, %arg8: memref<1x5xf32, #tpu.memory_space<vmem>>, %arg9: memref<1x1x1xf32, #tpu.memory_space<vmem>>, %arg10: memref<1x1x128xi32, #tpu.memory_space<vmem>>, %arg11: memref<16x5xf32, #tpu.memory_space<vmem>>, %arg12: memref<16x5xf32, #tpu.memory_space<vmem>>) attributes {dimension_semantics = [#tpu.dimension_semantics<parallel>], iteration_bounds = array<i64: 2>, scalar_prefetch = 0 : i64, scratch_operands = 2 : i64, tpu.core_type = #tpu.core_type<tc>, window_params = [{transform_indices = @transform_0, window_bounds = array<i64: 1, 16, 32>}, {pipeline_mode = #tpu.pipeline_mode<synchronous>, transform_indices = @transform_1, window_bounds = array<i64: 32, 5>}, {pipeline_mode = #tpu.pipeline_mode<synchronous>, transform_indices = @transform_2, window_bounds = array<i64: 1, 5>}, {transform_indices = @transform_3, window_bounds = array<i64: 1, 16, 1>}, {transform_indices = @transform_4, window_bounds = array<i64: 1, 16, 1>}, {pipeline_mode = #tpu.pipeline_mode<synchronous>, transform_indices = @transform_5, window_bounds = array<i64: 5, 5>}, {pipeline_mode = #tpu.pipeline_mode<synchronous>, transform_indices = @transform_6, window_bounds = array<i64: 1, 5>}, {pipeline_mode = #tpu.pipeline_mode<synchronous>, transform_indices = @transform_7, window_bounds = array<i64: 1, 5>}, {transform_indices = @transform_8, window_bounds = array<i64: 1, 1, 1>}, {transform_indices = @transform_9, window_bounds = array<i64: 1, 1, 128>}]} {
    %c0 = arith.constant 0 : index
    %c0_0 = arith.constant 0 : index
    %c0_1 = arith.constant 0 : index
    %0 = vector.load %arg1[%c0, %c0_0, %c0_1] : memref<1x16x32xf32, #tpu.memory_space<vmem>>, vector<1x16x32xf32>
    %1 = vector.shape_cast %0 : vector<1x16x32xf32> to vector<16x32xf32>
    %c0_2 = arith.constant 0 : index
    %c0_3 = arith.constant 0 : index
    %2 = vector.load %arg2[%c0_2, %c0_3] : memref<32x5xf32, #tpu.memory_space<vmem>>, vector<32x5xf32>
    %cst = arith.constant dense<0.000000e+00> : vector<16x5xf32>
    %3 = tpu.matmul %1, %2, %cst {dimension_numbers = #tpu.dot_dimension_numbers<[1], [0], [0], [1], [0, 0, 1, 1], [], []>} : vector<16x32xf32>, vector<32x5xf32>, vector<16x5xf32> -> vector<16x5xf32>
    %c0_4 = arith.constant 0 : index
    %c0_5 = arith.constant 0 : index
    %4 = vector.load %arg3[%c0_4, %c0_5] : memref<1x5xf32, #tpu.memory_space<vmem>>, vector<1x5xf32>
    %5 = vector.broadcast %4 : vector<1x5xf32> to vector<16x5xf32>
    %6 = arith.addf %3, %5 : vector<16x5xf32>
    %c0_6 = arith.constant 0 : index
    %c0_7 = arith.constant 0 : index
    %7 = vector.load %arg11[%c0_6, %c0_7] : memref<16x5xf32, #tpu.memory_space<vmem>>, vector<16x5xf32>
    tpu.vector_store %arg11[%c0_6, %c0_7], %6 {strides = array<i32>} : memref<16x5xf32, #tpu.memory_space<vmem>>, vector<16x5xf32>,
    %c0_8 = arith.constant 0 : index
    %c0_9 = arith.constant 0 : index
    %8 = vector.load %arg11[%c0_8, %c0_9] : memref<16x5xf32, #tpu.memory_space<vmem>>, vector<16x5xf32>
    %c0_10 = arith.constant 0 : index
    %c0_11 = arith.constant 0 : index
    %c0_12 = arith.constant 0 : index
    %9 = vector.load %arg5[%c0_10, %c0_11, %c0_12] : memref<1x16x1xf32, #tpu.memory_space<vmem>>, vector<1x16x1xf32>
    %10 = vector.shape_cast %9 : vector<1x16x1xf32> to vector<16x1xf32>
    %c0_13 = arith.constant 0 : index
    %c0_14 = arith.constant 0 : index
    %11 = vector.load %arg6[%c0_13, %c0_14] : memref<5x5xf32, #tpu.memory_space<vmem>>, vector<5x5xf32>
    %c0_15 = arith.constant 0 : index
    %c0_16 = arith.constant 0 : index
    %12 = vector.load %arg7[%c0_15, %c0_16] : memref<1x5xf32, #tpu.memory_space<vmem>>, vector<1x5xf32>
    %c0_17 = arith.constant 0 : index
    %c0_18 = arith.constant 0 : index
    %13 = vector.load %arg8[%c0_17, %c0_18] : memref<1x5xf32, #tpu.memory_space<vmem>>, vector<1x5xf32>
    %14 = tpu.iota {dimensions = array<i32: 1>} : vector<16x5xi32>
    %c0_19 = arith.constant 0 : index
    %c0_20 = arith.constant 0 : index
    %c0_21 = arith.constant 0 : index
    %15 = vector.load %arg4[%c0_19, %c0_20, %c0_21] : memref<1x16x1xi32, #tpu.memory_space<vmem>>, vector<1x16x1xi32>
    %16 = vector.shape_cast %15 : vector<1x16x1xi32> to vector<16x1xi32>
    %17 = vector.broadcast %16 : vector<16x1xi32> to vector<16x5xi32>
    %18 = arith.cmpi eq, %17, %14 : vector<16x5xi32>
    %19 = arith.extui %18 : vector<16x5xi1> to vector<16x5xi32>
    %20 = arith.sitofp %19 : vector<16x5xi32> to vector<16x5xf32>
    %21 = arith.mulf %8, %20 : vector<16x5xf32>
    %cst_22 = arith.constant dense<0.000000e+00> : vector<16xf32>
    %22 = vector.multi_reduction <add>, %21, %cst_22 [1] : vector<16x5xf32> to vector<16xf32>
    %23 = vector.shape_cast %22 : vector<16xf32> to vector<16x1xf32>
    %24 = arith.mulf %23, %10 : vector<16x1xf32>
    %cst_23 = arith.constant dense<0.000000e+00> : vector<1xf32>
    %25 = vector.multi_reduction <add>, %24, %cst_23 [0] : vector<16x1xf32> to vector<1xf32>
    %26 = vector.shape_cast %25 : vector<1xf32> to vector<1x1xf32>
    %27 = tpu.iota {dimensions = array<i32: 1>} : vector<15x5xi32>
    %c0_24 = arith.constant 0 : index
    %c0_25 = arith.constant 0 : index
    %c0_26 = arith.constant 0 : index
    %28 = vector.load %arg4[%c0_24, %c0_25, %c0_26] : memref<1x16x1xi32, #tpu.memory_space<vmem>>, vector<1x15x1xi32>
    %29 = vector.shape_cast %28 : vector<1x15x1xi32> to vector<15x1xi32>
    %30 = vector.broadcast %29 : vector<15x1xi32> to vector<15x5xi32>
    %31 = arith.cmpi eq, %30, %27 : vector<15x5xi32>
    %32 = arith.extui %31 : vector<15x5xi1> to vector<15x5xi32>
    %33 = arith.sitofp %32 : vector<15x5xi32> to vector<15x5xf32>
    %c0_27 = arith.constant 0 : index
    %c1 = arith.constant 1 : index
    %c0_28 = arith.constant 0 : index
    %34 = vector.load %arg4[%c0_27, %c1, %c0_28] : memref<1x16x1xi32, #tpu.memory_space<vmem>>, vector<1x15x1xi32>
    %35 = vector.shape_cast %34 : vector<1x15x1xi32> to vector<15x1xi32>
    %36 = vector.broadcast %35 : vector<15x1xi32> to vector<15x5xi32>
    %37 = arith.cmpi eq, %36, %27 : vector<15x5xi32>
    %38 = arith.extui %37 : vector<15x5xi1> to vector<15x5xi32>
    %39 = arith.sitofp %38 : vector<15x5xi32> to vector<15x5xf32>
    %c0_29 = arith.constant 0 : index
    %c1_30 = arith.constant 1 : index
    %c0_31 = arith.constant 0 : index
    %40 = vector.load %arg5[%c0_29, %c1_30, %c0_31] : memref<1x16x1xf32, #tpu.memory_space<vmem>>, vector<1x15x1xf32>
    %41 = vector.shape_cast %40 : vector<1x15x1xf32> to vector<15x1xf32>
    %cst_32 = arith.constant dense<0.000000e+00> : vector<15x5xf32>
    %42 = tpu.matmul %33, %11, %cst_32 {dimension_numbers = #tpu.dot_dimension_numbers<[1], [0], [0], [1], [0, 0, 1, 1], [], []>} : vector<15x5xf32>, vector<5x5xf32>, vector<15x5xf32> -> vector<15x5xf32>
    %43 = arith.mulf %42, %39 : vector<15x5xf32>
    %cst_33 = arith.constant dense<0.000000e+00> : vector<15xf32>
    %44 = vector.multi_reduction <add>, %43, %cst_33 [1] : vector<15x5xf32> to vector<15xf32>
    %45 = vector.shape_cast %44 : vector<15xf32> to vector<15x1xf32>
    %46 = arith.mulf %45, %41 : vector<15x1xf32>
    %cst_34 = arith.constant dense<0.000000e+00> : vector<1xf32>
    %47 = vector.multi_reduction <add>, %46, %cst_34 [0] : vector<15x1xf32> to vector<1xf32>
    %48 = vector.shape_cast %47 : vector<1xf32> to vector<1x1xf32>
    %49 = tpu.iota {dimensions = array<i32: 1>} : vector<1x5xi32>
    %c0_35 = arith.constant 0 : index
    %c0_36 = arith.constant 0 : index
    %c0_37 = arith.constant 0 : index
    %50 = vector.load %arg4[%c0_35, %c0_36, %c0_37] : memref<1x16x1xi32, #tpu.memory_space<vmem>>, vector<1x1x1xi32>
    %51 = vector.shape_cast %50 : vector<1x1x1xi32> to vector<1x1xi32>
    %52 = vector.broadcast %51 : vector<1x1xi32> to vector<1x5xi32>
    %53 = arith.cmpi eq, %52, %49 : vector<1x5xi32>
    %54 = arith.extui %53 : vector<1x5xi1> to vector<1x5xi32>
    %55 = arith.sitofp %54 : vector<1x5xi32> to vector<1x5xf32>
    %56 = arith.mulf %12, %55 : vector<1x5xf32>
    %cst_38 = arith.constant dense<0.000000e+00> : vector<1xf32>
    %57 = vector.multi_reduction <add>, %56, %cst_38 [1] : vector<1x5xf32> to vector<1xf32>
    %58 = vector.shape_cast %57 : vector<1xf32> to vector<1x1xf32>
    %59 = vector.broadcast %13 : vector<1x5xf32> to vector<16x5xf32>
    %60 = arith.mulf %59, %20 : vector<16x5xf32>
    %cst_39 = arith.constant dense<0.000000e+00> : vector<16xf32>
    %61 = vector.multi_reduction <add>, %60, %cst_39 [1] : vector<16x5xf32> to vector<16xf32>
    %62 = vector.shape_cast %61 : vector<16xf32> to vector<16x1xf32>
    %63 = vector.broadcast %13 : vector<1x5xf32> to vector<15x5xf32>
    %64 = arith.mulf %63, %33 : vector<15x5xf32>
    %cst_40 = arith.constant dense<0.000000e+00> : vector<15xf32>
    %65 = vector.multi_reduction <add>, %64, %cst_40 [1] : vector<15x5xf32> to vector<15xf32>
    %66 = vector.shape_cast %65 : vector<15xf32> to vector<15x1xf32>
    %67 = arith.mulf %62, %10 : vector<16x1xf32>
    %cst_41 = arith.constant dense<0.000000e+00> : vector<1xf32>
    %68 = vector.multi_reduction <add>, %67, %cst_41 [0] : vector<16x1xf32> to vector<1xf32>
    %69 = vector.shape_cast %68 : vector<1xf32> to vector<1x1xf32>
    %70 = arith.mulf %66, %41 : vector<15x1xf32>
    %cst_42 = arith.constant dense<0.000000e+00> : vector<1xf32>
    %71 = vector.multi_reduction <add>, %70, %cst_42 [0] : vector<15x1xf32> to vector<1xf32>
    %72 = vector.shape_cast %71 : vector<1xf32> to vector<1x1xf32>
    %73 = arith.subf %69, %72 : vector<1x1xf32>
    %74 = arith.addf %58, %48 : vector<1x1xf32>
    %75 = arith.addf %74, %26 : vector<1x1xf32>
    %76 = arith.addf %75, %73 : vector<1x1xf32>
    %cst_43 = arith.constant dense<0xFF800000> : vector<5xf32>
    %77 = vector.multi_reduction <maximumf>, %11, %cst_43 [0] : vector<5x5xf32> to vector<5xf32>
    %78 = vector.shape_cast %77 : vector<5xf32> to vector<1x5xf32>
    %c0_44 = arith.constant 0 : index
    %c0_45 = arith.constant 0 : index
    %79 = vector.load %arg6[%c0_44, %c0_45] : memref<5x5xf32, #tpu.memory_space<vmem>>, vector<1x5xf32>
    %c1_46 = arith.constant 1 : index
    %c0_47 = arith.constant 0 : index
    %80 = vector.load %arg6[%c1_46, %c0_47] : memref<5x5xf32, #tpu.memory_space<vmem>>, vector<1x5xf32>
    %c2 = arith.constant 2 : index
    %c0_48 = arith.constant 0 : index
    %81 = vector.load %arg6[%c2, %c0_48] : memref<5x5xf32, #tpu.memory_space<vmem>>, vector<1x5xf32>
    %c3 = arith.constant 3 : index
    %c0_49 = arith.constant 0 : index
    %82 = vector.load %arg6[%c3, %c0_49] : memref<5x5xf32, #tpu.memory_space<vmem>>, vector<1x5xf32>
    %c4 = arith.constant 4 : index
    %c0_50 = arith.constant 0 : index
    %83 = vector.load %arg6[%c4, %c0_50] : memref<5x5xf32, #tpu.memory_space<vmem>>, vector<1x5xf32>
    %84 = arith.subf %79, %78 : vector<1x5xf32>
    %85 = math.exp %84 : vector<1x5xf32>
    %86 = arith.subf %80, %78 : vector<1x5xf32>
    %87 = math.exp %86 : vector<1x5xf32>
    %88 = arith.subf %81, %78 : vector<1x5xf32>
    %89 = math.exp %88 : vector<1x5xf32>
    %90 = arith.subf %82, %78 : vector<1x5xf32>
    %91 = math.exp %90 : vector<1x5xf32>
    %92 = arith.subf %83, %78 : vector<1x5xf32>
    %93 = math.exp %92 : vector<1x5xf32>
    %94 = arith.sitofp %49 : vector<1x5xi32> to vector<1x5xf32>
    %c0_51 = arith.constant 0 : index
    %c0_52 = arith.constant 0 : index
    %95 = vector.load %arg11[%c0_51, %c0_52] : memref<16x5xf32, #tpu.memory_space<vmem>>, vector<1x5xf32>
    %96 = arith.addf %12, %95 : vector<1x5xf32>
    %c1_53 = arith.constant 1 : index
    %c0_54 = arith.constant 0 : index
    %97 = vector.load %arg11[%c1_53, %c0_54] : memref<16x5xf32, #tpu.memory_space<vmem>>, vector<1x5xf32>
    %c0_55 = arith.constant 0 : index
    %c1_56 = arith.constant 1 : index
    %c0_57 = arith.constant 0 : index
    %98 = vector.load %arg5[%c0_55, %c1_56, %c0_57] : memref<1x16x1xf32, #tpu.memory_space<vmem>>, vector<1x1x1xf32>
    %99 = vector.shape_cast %98 : vector<1x1x1xf32> to vector<1x1xf32>
    %cst_58 = arith.constant 5.000000e-01 : f32
    %100 = vector.broadcast %cst_58 : f32 to vector<1x1xf32>
    %101 = arith.cmpf ogt, %99, %100 : vector<1x1xf32>
    %cst_59 = arith.constant dense<0xFF800000> : vector<1xf32>
    %102 = vector.multi_reduction <maximumf>, %96, %cst_59 [1] : vector<1x5xf32> to vector<1xf32>
    %103 = vector.shape_cast %102 : vector<1xf32> to vector<1x1xf32>
    %104 = vector.broadcast %103 : vector<1x1xf32> to vector<1x5xf32>
    %105 = arith.subf %96, %104 : vector<1x5xf32>
    %106 = math.exp %105 : vector<1x5xf32>
    %107 = vector.extract_strided_slice %106 {offsets = [0, 0], sizes = [1, 1], strides = [1, 1]} : vector<1x5xf32> to vector<1x1xf32>
    %108 = vector.broadcast %107 : vector<1x1xf32> to vector<1x5xf32>
    %109 = arith.mulf %108, %85 : vector<1x5xf32>
    %110 = vector.extract_strided_slice %106 {offsets = [0, 1], sizes = [1, 1], strides = [1, 1]} : vector<1x5xf32> to vector<1x1xf32>
    %111 = vector.broadcast %110 : vector<1x1xf32> to vector<1x5xf32>
    %112 = arith.mulf %111, %87 : vector<1x5xf32>
    %113 = arith.addf %109, %112 : vector<1x5xf32>
    %114 = vector.extract_strided_slice %106 {offsets = [0, 2], sizes = [1, 1], strides = [1, 1]} : vector<1x5xf32> to vector<1x1xf32>
    %115 = vector.broadcast %114 : vector<1x1xf32> to vector<1x5xf32>
    %116 = arith.mulf %115, %89 : vector<1x5xf32>
    %117 = arith.addf %113, %116 : vector<1x5xf32>
    %118 = vector.extract_strided_slice %106 {offsets = [0, 3], sizes = [1, 1], strides = [1, 1]} : vector<1x5xf32> to vector<1x1xf32>
    %119 = vector.broadcast %118 : vector<1x1xf32> to vector<1x5xf32>
    %120 = arith.mulf %119, %91 : vector<1x5xf32>
    %121 = arith.addf %117, %120 : vector<1x5xf32>
    %122 = vector.extract_strided_slice %106 {offsets = [0, 4], sizes = [1, 1], strides = [1, 1]} : vector<1x5xf32> to vector<1x1xf32>
    %123 = vector.broadcast %122 : vector<1x1xf32> to vector<1x5xf32>
    %124 = arith.mulf %123, %93 : vector<1x5xf32>
    %125 = arith.addf %121, %124 : vector<1x5xf32>
    %126 = vector.broadcast %103 : vector<1x1xf32> to vector<1x5xf32>
    %127 = arith.addf %97, %126 : vector<1x5xf32>
    %128 = arith.addf %127, %78 : vector<1x5xf32>
    %129 = math.log %125 : vector<1x5xf32>
    %130 = arith.addf %128, %129 : vector<1x5xf32>
    %131 = vector.shape_cast %101 : vector<1x1xi1> to vector<1x1xi1>
    %132 = vector.broadcast %131 : vector<1x1xi1> to vector<1x5xi1>
    %133 = arith.select %132, %130, %96 : vector<1x5xi1>, vector<1x5xf32>
    %134 = vector.extract_strided_slice %96 {offsets = [0, 0], sizes = [1, 1], strides = [1, 1]} : vector<1x5xf32> to vector<1x1xf32>
    %135 = vector.broadcast %134 : vector<1x1xf32> to vector<1x5xf32>
    %136 = arith.addf %135, %79 : vector<1x5xf32>
    %cst_60 = arith.constant 0.000000e+00 : f32
    %137 = vector.broadcast %cst_60 : f32 to vector<1x5xf32>
    %138 = vector.extract_strided_slice %96 {offsets = [0, 1], sizes = [1, 1], strides = [1, 1]} : vector<1x5xf32> to vector<1x1xf32>
    %139 = vector.broadcast %138 : vector<1x1xf32> to vector<1x5xf32>
    %140 = arith.addf %139, %80 : vector<1x5xf32>
    %141 = arith.cmpf ogt, %140, %136 : vector<1x5xf32>
    %142 = arith.select %141, %140, %136 : vector<1x5xi1>, vector<1x5xf32>
    %cst_61 = arith.constant 1.000000e+00 : f32
    %143 = vector.broadcast %cst_61 : f32 to vector<1x5xf32>
    %144 = arith.select %141, %143, %137 : vector<1x5xi1>, vector<1x5xf32>
    %145 = vector.extract_strided_slice %96 {offsets = [0, 2], sizes = [1, 1], strides = [1, 1]} : vector<1x5xf32> to vector<1x1xf32>
    %146 = vector.broadcast %145 : vector<1x1xf32> to vector<1x5xf32>
    %147 = arith.addf %146, %81 : vector<1x5xf32>
    %148 = arith.cmpf ogt, %147, %142 : vector<1x5xf32>
    %149 = arith.select %148, %147, %142 : vector<1x5xi1>, vector<1x5xf32>
    %cst_62 = arith.constant 2.000000e+00 : f32
    %150 = vector.broadcast %cst_62 : f32 to vector<1x5xf32>
    %151 = arith.select %148, %150, %144 : vector<1x5xi1>, vector<1x5xf32>
    %152 = vector.extract_strided_slice %96 {offsets = [0, 3], sizes = [1, 1], strides = [1, 1]} : vector<1x5xf32> to vector<1x1xf32>
    %153 = vector.broadcast %152 : vector<1x1xf32> to vector<1x5xf32>
    %154 = arith.addf %153, %82 : vector<1x5xf32>
    %155 = arith.cmpf ogt, %154, %149 : vector<1x5xf32>
    %156 = arith.select %155, %154, %149 : vector<1x5xi1>, vector<1x5xf32>
    %cst_63 = arith.constant 3.000000e+00 : f32
    %157 = vector.broadcast %cst_63 : f32 to vector<1x5xf32>
    %158 = arith.select %155, %157, %151 : vector<1x5xi1>, vector<1x5xf32>
    %159 = vector.extract_strided_slice %96 {offsets = [0, 4], sizes = [1, 1], strides = [1, 1]} : vector<1x5xf32> to vector<1x1xf32>
    %160 = vector.broadcast %159 : vector<1x1xf32> to vector<1x5xf32>
    %161 = arith.addf %160, %83 : vector<1x5xf32>
    %162 = arith.cmpf ogt, %161, %156 : vector<1x5xf32>
    %163 = arith.select %162, %161, %156 : vector<1x5xi1>, vector<1x5xf32>
    %cst_64 = arith.constant 4.000000e+00 : f32
    %164 = vector.broadcast %cst_64 : f32 to vector<1x5xf32>
    %165 = arith.select %162, %164, %158 : vector<1x5xi1>, vector<1x5xf32>
    %166 = arith.addf %163, %97 : vector<1x5xf32>
    %167 = vector.shape_cast %101 : vector<1x1xi1> to vector<1x1xi1>
    %168 = vector.broadcast %167 : vector<1x1xi1> to vector<1x5xi1>
    %169 = arith.select %168, %166, %96 : vector<1x5xi1>, vector<1x5xf32>
    %170 = vector.shape_cast %101 : vector<1x1xi1> to vector<1x1xi1>
    %171 = vector.broadcast %170 : vector<1x1xi1> to vector<1x5xi1>
    %172 = arith.select %171, %165, %94 : vector<1x5xi1>, vector<1x5xf32>
    %c1_65 = arith.constant 1 : index
    %c0_66 = arith.constant 0 : index
    %173 = vector.load %arg12[%c1_65, %c0_66] : memref<16x5xf32, #tpu.memory_space<vmem>>, vector<1x5xf32>
    tpu.vector_store %arg12[%c1_65, %c0_66], %172 {strides = array<i32>} : memref<16x5xf32, #tpu.memory_space<vmem>>, vector<1x5xf32>,
    %c2_67 = arith.constant 2 : index
    %c0_68 = arith.constant 0 : index
    %174 = vector.load %arg11[%c2_67, %c0_68] : memref<16x5xf32, #tpu.memory_space<vmem>>, vector<1x5xf32>
    %c0_69 = arith.constant 0 : index
    %c2_70 = arith.constant 2 : index
    %c0_71 = arith.constant 0 : index
    %175 = vector.load %arg5[%c0_69, %c2_70, %c0_71] : memref<1x16x1xf32, #tpu.memory_space<vmem>>, vector<1x1x1xf32>
    %176 = vector.shape_cast %175 : vector<1x1x1xf32> to vector<1x1xf32>
    %cst_72 = arith.constant 5.000000e-01 : f32
    %177 = vector.broadcast %cst_72 : f32 to vector<1x1xf32>
    %178 = arith.cmpf ogt, %176, %177 : vector<1x1xf32>
    %cst_73 = arith.constant dense<0xFF800000> : vector<1xf32>
    %179 = vector.multi_reduction <maximumf>, %133, %cst_73 [1] : vector<1x5xf32> to vector<1xf32>
    %180 = vector.shape_cast %179 : vector<1xf32> to vector<1x1xf32>
    %181 = vector.broadcast %180 : vector<1x1xf32> to vector<1x5xf32>
    %182 = arith.subf %133, %181 : vector<1x5xf32>
    %183 = math.exp %182 : vector<1x5xf32>
    %184 = vector.extract_strided_slice %183 {offsets = [0, 0], sizes = [1, 1], strides = [1, 1]} : vector<1x5xf32> to vector<1x1xf32>
    %185 = vector.broadcast %184 : vector<1x1xf32> to vector<1x5xf32>
    %186 = arith.mulf %185, %85 : vector<1x5xf32>
    %187 = vector.extract_strided_slice %183 {offsets = [0, 1], sizes = [1, 1], strides = [1, 1]} : vector<1x5xf32> to vector<1x1xf32>
    %188 = vector.broadcast %187 : vector<1x1xf32> to vector<1x5xf32>
    %189 = arith.mulf %188, %87 : vector<1x5xf32>
    %190 = arith.addf %186, %189 : vector<1x5xf32>
    %191 = vector.extract_strided_slice %183 {offsets = [0, 2], sizes = [1, 1], strides = [1, 1]} : vector<1x5xf32> to vector<1x1xf32>
    %192 = vector.broadcast %191 : vector<1x1xf32> to vector<1x5xf32>
    %193 = arith.mulf %192, %89 : vector<1x5xf32>
    %194 = arith.addf %190, %193 : vector<1x5xf32>
    %195 = vector.extract_strided_slice %183 {offsets = [0, 3], sizes = [1, 1], strides = [1, 1]} : vector<1x5xf32> to vector<1x1xf32>
    %196 = vector.broadcast %195 : vector<1x1xf32> to vector<1x5xf32>
    %197 = arith.mulf %196, %91 : vector<1x5xf32>
    %198 = arith.addf %194, %197 : vector<1x5xf32>
    %199 = vector.extract_strided_slice %183 {offsets = [0, 4], sizes = [1, 1], strides = [1, 1]} : vector<1x5xf32> to vector<1x1xf32>
    %200 = vector.broadcast %199 : vector<1x1xf32> to vector<1x5xf32>
    %201 = arith.mulf %200, %93 : vector<1x5xf32>
    %202 = arith.addf %198, %201 : vector<1x5xf32>
    %203 = vector.broadcast %180 : vector<1x1xf32> to vector<1x5xf32>
    %204 = arith.addf %174, %203 : vector<1x5xf32>
    %205 = arith.addf %204, %78 : vector<1x5xf32>
    %206 = math.log %202 : vector<1x5xf32>
    %207 = arith.addf %205, %206 : vector<1x5xf32>
    %208 = vector.shape_cast %178 : vector<1x1xi1> to vector<1x1xi1>
    %209 = vector.broadcast %208 : vector<1x1xi1> to vector<1x5xi1>
    %210 = arith.select %209, %207, %133 : vector<1x5xi1>, vector<1x5xf32>
    %211 = vector.extract_strided_slice %169 {offsets = [0, 0], sizes = [1, 1], strides = [1, 1]} : vector<1x5xf32> to vector<1x1xf32>
    %212 = vector.broadcast %211 : vector<1x1xf32> to vector<1x5xf32>
    %213 = arith.addf %212, %79 : vector<1x5xf32>
    %cst_74 = arith.constant 0.000000e+00 : f32
    %214 = vector.broadcast %cst_74 : f32 to vector<1x5xf32>
    %215 = vector.extract_strided_slice %169 {offsets = [0, 1], sizes = [1, 1], strides = [1, 1]} : vector<1x5xf32> to vector<1x1xf32>
    %216 = vector.broadcast %215 : vector<1x1xf32> to vector<1x5xf32>
    %217 = arith.addf %216, %80 : vector<1x5xf32>
    %218 = arith.cmpf ogt, %217, %213 : vector<1x5xf32>
    %219 = arith.select %218, %217, %213 : vector<1x5xi1>, vector<1x5xf32>
    %cst_75 = arith.constant 1.000000e+00 : f32
    %220 = vector.broadcast %cst_75 : f32 to vector<1x5xf32>
    %221 = arith.select %218, %220, %214 : vector<1x5xi1>, vector<1x5xf32>
    %222 = vector.extract_strided_slice %169 {offsets = [0, 2], sizes = [1, 1], strides = [1, 1]} : vector<1x5xf32> to vector<1x1xf32>
    %223 = vector.broadcast %222 : vector<1x1xf32> to vector<1x5xf32>
    %224 = arith.addf %223, %81 : vector<1x5xf32>
    %225 = arith.cmpf ogt, %224, %219 : vector<1x5xf32>
    %226 = arith.select %225, %224, %219 : vector<1x5xi1>, vector<1x5xf32>
    %cst_76 = arith.constant 2.000000e+00 : f32
    %227 = vector.broadcast %cst_76 : f32 to vector<1x5xf32>
    %228 = arith.select %225, %227, %221 : vector<1x5xi1>, vector<1x5xf32>
    %229 = vector.extract_strided_slice %169 {offsets = [0, 3], sizes = [1, 1], strides = [1, 1]} : vector<1x5xf32> to vector<1x1xf32>
    %230 = vector.broadcast %229 : vector<1x1xf32> to vector<1x5xf32>
    %231 = arith.addf %230, %82 : vector<1x5xf32>
    %232 = arith.cmpf ogt, %231, %226 : vector<1x5xf32>
    %233 = arith.select %232, %231, %226 : vector<1x5xi1>, vector<1x5xf32>
    %cst_77 = arith.constant 3.000000e+00 : f32
    %234 = vector.broadcast %cst_77 : f32 to vector<1x5xf32>
    %235 = arith.select %232, %234, %228 : vector<1x5xi1>, vector<1x5xf32>
    %236 = vector.extract_strided_slice %169 {offsets = [0, 4], sizes = [1, 1], strides = [1, 1]} : vector<1x5xf32> to vector<1x1xf32>
    %237 = vector.broadcast %236 : vector<1x1xf32> to vector<1x5xf32>
    %238 = arith.addf %237, %83 : vector<1x5xf32>
    %239 = arith.cmpf ogt, %238, %233 : vector<1x5xf32>
    %240 = arith.select %239, %238, %233 : vector<1x5xi1>, vector<1x5xf32>
    %cst_78 = arith.constant 4.000000e+00 : f32
    %241 = vector.broadcast %cst_78 : f32 to vector<1x5xf32>
    %242 = arith.select %239, %241, %235 : vector<1x5xi1>, vector<1x5xf32>
    %243 = arith.addf %240, %174 : vector<1x5xf32>
    %244 = vector.shape_cast %178 : vector<1x1xi1> to vector<1x1xi1>
    %245 = vector.broadcast %244 : vector<1x1xi1> to vector<1x5xi1>
    %246 = arith.select %245, %243, %169 : vector<1x5xi1>, vector<1x5xf32>
    %247 = vector.shape_cast %178 : vector<1x1xi1> to vector<1x1xi1>
    %248 = vector.broadcast %247 : vector<1x1xi1> to vector<1x5xi1>
    %249 = arith.select %248, %242, %94 : vector<1x5xi1>, vector<1x5xf32>
    %c2_79 = arith.constant 2 : index
    %c0_80 = arith.constant 0 : index
    %250 = vector.load %arg12[%c2_79, %c0_80] : memref<16x5xf32, #tpu.memory_space<vmem>>, vector<1x5xf32>
    tpu.vector_store %arg12[%c2_79, %c0_80], %249 {strides = array<i32>} : memref<16x5xf32, #tpu.memory_space<vmem>>, vector<1x5xf32>,
    %c3_81 = arith.constant 3 : index
    %c0_82 = arith.constant 0 : index
    %251 = vector.load %arg11[%c3_81, %c0_82] : memref<16x5xf32, #tpu.memory_space<vmem>>, vector<1x5xf32>
    %c0_83 = arith.constant 0 : index
    %c3_84 = arith.constant 3 : index
    %c0_85 = arith.constant 0 : index
    %252 = vector.load %arg5[%c0_83, %c3_84, %c0_85] : memref<1x16x1xf32, #tpu.memory_space<vmem>>, vector<1x1x1xf32>
    %253 = vector.shape_cast %252 : vector<1x1x1xf32> to vector<1x1xf32>
    %cst_86 = arith.constant 5.000000e-01 : f32
    %254 = vector.broadcast %cst_86 : f32 to vector<1x1xf32>
    %255 = arith.cmpf ogt, %253, %254 : vector<1x1xf32>
    %cst_87 = arith.constant dense<0xFF800000> : vector<1xf32>
    %256 = vector.multi_reduction <maximumf>, %210, %cst_87 [1] : vector<1x5xf32> to vector<1xf32>
    %257 = vector.shape_cast %256 : vector<1xf32> to vector<1x1xf32>
    %258 = vector.broadcast %257 : vector<1x1xf32> to vector<1x5xf32>
    %259 = arith.subf %210, %258 : vector<1x5xf32>
    %260 = math.exp %259 : vector<1x5xf32>
    %261 = vector.extract_strided_slice %260 {offsets = [0, 0], sizes = [1, 1], strides = [1, 1]} : vector<1x5xf32> to vector<1x1xf32>
    %262 = vector.broadcast %261 : vector<1x1xf32> to vector<1x5xf32>
    %263 = arith.mulf %262, %85 : vector<1x5xf32>
    %264 = vector.extract_strided_slice %260 {offsets = [0, 1], sizes = [1, 1], strides = [1, 1]} : vector<1x5xf32> to vector<1x1xf32>
    %265 = vector.broadcast %264 : vector<1x1xf32> to vector<1x5xf32>
    %266 = arith.mulf %265, %87 : vector<1x5xf32>
    %267 = arith.addf %263, %266 : vector<1x5xf32>
    %268 = vector.extract_strided_slice %260 {offsets = [0, 2], sizes = [1, 1], strides = [1, 1]} : vector<1x5xf32> to vector<1x1xf32>
    %269 = vector.broadcast %268 : vector<1x1xf32> to vector<1x5xf32>
    %270 = arith.mulf %269, %89 : vector<1x5xf32>
    %271 = arith.addf %267, %270 : vector<1x5xf32>
    %272 = vector.extract_strided_slice %260 {offsets = [0, 3], sizes = [1, 1], strides = [1, 1]} : vector<1x5xf32> to vector<1x1xf32>
    %273 = vector.broadcast %272 : vector<1x1xf32> to vector<1x5xf32>
    %274 = arith.mulf %273, %91 : vector<1x5xf32>
    %275 = arith.addf %271, %274 : vector<1x5xf32>
    %276 = vector.extract_strided_slice %260 {offsets = [0, 4], sizes = [1, 1], strides = [1, 1]} : vector<1x5xf32> to vector<1x1xf32>
    %277 = vector.broadcast %276 : vector<1x1xf32> to vector<1x5xf32>
    %278 = arith.mulf %277, %93 : vector<1x5xf32>
    %279 = arith.addf %275, %278 : vector<1x5xf32>
    %280 = vector.broadcast %257 : vector<1x1xf32> to vector<1x5xf32>
    %281 = arith.addf %251, %280 : vector<1x5xf32>
    %282 = arith.addf %281, %78 : vector<1x5xf32>
    %283 = math.log %279 : vector<1x5xf32>
    %284 = arith.addf %282, %283 : vector<1x5xf32>
    %285 = vector.shape_cast %255 : vector<1x1xi1> to vector<1x1xi1>
    %286 = vector.broadcast %285 : vector<1x1xi1> to vector<1x5xi1>
    %287 = arith.select %286, %284, %210 : vector<1x5xi1>, vector<1x5xf32>
    %288 = vector.extract_strided_slice %246 {offsets = [0, 0], sizes = [1, 1], strides = [1, 1]} : vector<1x5xf32> to vector<1x1xf32>
    %289 = vector.broadcast %288 : vector<1x1xf32> to vector<1x5xf32>
    %290 = arith.addf %289, %79 : vector<1x5xf32>
    %cst_88 = arith.constant 0.000000e+00 : f32
    %291 = vector.broadcast %cst_88 : f32 to vector<1x5xf32>
    %292 = vector.extract_strided_slice %246 {offsets = [0, 1], sizes = [1, 1], strides = [1, 1]} : vector<1x5xf32> to vector<1x1xf32>
    %293 = vector.broadcast %292 : vector<1x1xf32> to vector<1x5xf32>
    %294 = arith.addf %293, %80 : vector<1x5xf32>
    %295 = arith.cmpf ogt, %294, %290 : vector<1x5xf32>
    %296 = arith.select %295, %294, %290 : vector<1x5xi1>, vector<1x5xf32>
    %cst_89 = arith.constant 1.000000e+00 : f32
    %297 = vector.broadcast %cst_89 : f32 to vector<1x5xf32>
    %298 = arith.select %295, %297, %291 : vector<1x5xi1>, vector<1x5xf32>
    %299 = vector.extract_strided_slice %246 {offsets = [0, 2], sizes = [1, 1], strides = [1, 1]} : vector<1x5xf32> to vector<1x1xf32>
    %300 = vector.broadcast %299 : vector<1x1xf32> to vector<1x5xf32>
    %301 = arith.addf %300, %81 : vector<1x5xf32>
    %302 = arith.cmpf ogt, %301, %296 : vector<1x5xf32>
    %303 = arith.select %302, %301, %296 : vector<1x5xi1>, vector<1x5xf32>
    %cst_90 = arith.constant 2.000000e+00 : f32
    %304 = vector.broadcast %cst_90 : f32 to vector<1x5xf32>
    %305 = arith.select %302, %304, %298 : vector<1x5xi1>, vector<1x5xf32>
    %306 = vector.extract_strided_slice %246 {offsets = [0, 3], sizes = [1, 1], strides = [1, 1]} : vector<1x5xf32> to vector<1x1xf32>
    %307 = vector.broadcast %306 : vector<1x1xf32> to vector<1x5xf32>
    %308 = arith.addf %307, %82 : vector<1x5xf32>
    %309 = arith.cmpf ogt, %308, %303 : vector<1x5xf32>
    %310 = arith.select %309, %308, %303 : vector<1x5xi1>, vector<1x5xf32>
    %cst_91 = arith.constant 3.000000e+00 : f32
    %311 = vector.broadcast %cst_91 : f32 to vector<1x5xf32>
    %312 = arith.select %309, %311, %305 : vector<1x5xi1>, vector<1x5xf32>
    %313 = vector.extract_strided_slice %246 {offsets = [0, 4], sizes = [1, 1], strides = [1, 1]} : vector<1x5xf32> to vector<1x1xf32>
    %314 = vector.broadcast %313 : vector<1x1xf32> to vector<1x5xf32>
    %315 = arith.addf %314, %83 : vector<1x5xf32>
    %316 = arith.cmpf ogt, %315, %310 : vector<1x5xf32>
    %317 = arith.select %316, %315, %310 : vector<1x5xi1>, vector<1x5xf32>
    %cst_92 = arith.constant 4.000000e+00 : f32
    %318 = vector.broadcast %cst_92 : f32 to vector<1x5xf32>
    %319 = arith.select %316, %318, %312 : vector<1x5xi1>, vector<1x5xf32>
    %320 = arith.addf %317, %251 : vector<1x5xf32>
    %321 = vector.shape_cast %255 : vector<1x1xi1> to vector<1x1xi1>
    %322 = vector.broadcast %321 : vector<1x1xi1> to vector<1x5xi1>
    %323 = arith.select %322, %320, %246 : vector<1x5xi1>, vector<1x5xf32>
    %324 = vector.shape_cast %255 : vector<1x1xi1> to vector<1x1xi1>
    %325 = vector.broadcast %324 : vector<1x1xi1> to vector<1x5xi1>
    %326 = arith.select %325, %319, %94 : vector<1x5xi1>, vector<1x5xf32>
    %c3_93 = arith.constant 3 : index
    %c0_94 = arith.constant 0 : index
    %327 = vector.load %arg12[%c3_93, %c0_94] : memref<16x5xf32, #tpu.memory_space<vmem>>, vector<1x5xf32>
    tpu.vector_store %arg12[%c3_93, %c0_94], %326 {strides = array<i32>} : memref<16x5xf32, #tpu.memory_space<vmem>>, vector<1x5xf32>,
    %c4_95 = arith.constant 4 : index
    %c0_96 = arith.constant 0 : index
    %328 = vector.load %arg11[%c4_95, %c0_96] : memref<16x5xf32, #tpu.memory_space<vmem>>, vector<1x5xf32>
    %c0_97 = arith.constant 0 : index
    %c4_98 = arith.constant 4 : index
    %c0_99 = arith.constant 0 : index
    %329 = vector.load %arg5[%c0_97, %c4_98, %c0_99] : memref<1x16x1xf32, #tpu.memory_space<vmem>>, vector<1x1x1xf32>
    %330 = vector.shape_cast %329 : vector<1x1x1xf32> to vector<1x1xf32>
    %cst_100 = arith.constant 5.000000e-01 : f32
    %331 = vector.broadcast %cst_100 : f32 to vector<1x1xf32>
    %332 = arith.cmpf ogt, %330, %331 : vector<1x1xf32>
    %cst_101 = arith.constant dense<0xFF800000> : vector<1xf32>
    %333 = vector.multi_reduction <maximumf>, %287, %cst_101 [1] : vector<1x5xf32> to vector<1xf32>
    %334 = vector.shape_cast %333 : vector<1xf32> to vector<1x1xf32>
    %335 = vector.broadcast %334 : vector<1x1xf32> to vector<1x5xf32>
    %336 = arith.subf %287, %335 : vector<1x5xf32>
    %337 = math.exp %336 : vector<1x5xf32>
    %338 = vector.extract_strided_slice %337 {offsets = [0, 0], sizes = [1, 1], strides = [1, 1]} : vector<1x5xf32> to vector<1x1xf32>
    %339 = vector.broadcast %338 : vector<1x1xf32> to vector<1x5xf32>
    %340 = arith.mulf %339, %85 : vector<1x5xf32>
    %341 = vector.extract_strided_slice %337 {offsets = [0, 1], sizes = [1, 1], strides = [1, 1]} : vector<1x5xf32> to vector<1x1xf32>
    %342 = vector.broadcast %341 : vector<1x1xf32> to vector<1x5xf32>
    %343 = arith.mulf %342, %87 : vector<1x5xf32>
    %344 = arith.addf %340, %343 : vector<1x5xf32>
    %345 = vector.extract_strided_slice %337 {offsets = [0, 2], sizes = [1, 1], strides = [1, 1]} : vector<1x5xf32> to vector<1x1xf32>
    %346 = vector.broadcast %345 : vector<1x1xf32> to vector<1x5xf32>
    %347 = arith.mulf %346, %89 : vector<1x5xf32>
    %348 = arith.addf %344, %347 : vector<1x5xf32>
    %349 = vector.extract_strided_slice %337 {offsets = [0, 3], sizes = [1, 1], strides = [1, 1]} : vector<1x5xf32> to vector<1x1xf32>
    %350 = vector.broadcast %349 : vector<1x1xf32> to vector<1x5xf32>
    %351 = arith.mulf %350, %91 : vector<1x5xf32>
    %352 = arith.addf %348, %351 : vector<1x5xf32>
    %353 = vector.extract_strided_slice %337 {offsets = [0, 4], sizes = [1, 1], strides = [1, 1]} : vector<1x5xf32> to vector<1x1xf32>
    %354 = vector.broadcast %353 : vector<1x1xf32> to vector<1x5xf32>
    %355 = arith.mulf %354, %93 : vector<1x5xf32>
    %356 = arith.addf %352, %355 : vector<1x5xf32>
    %357 = vector.broadcast %334 : vector<1x1xf32> to vector<1x5xf32>
    %358 = arith.addf %328, %357 : vector<1x5xf32>
    %359 = arith.addf %358, %78 : vector<1x5xf32>
    %360 = math.log %356 : vector<1x5xf32>
    %361 = arith.addf %359, %360 : vector<1x5xf32>
    %362 = vector.shape_cast %332 : vector<1x1xi1> to vector<1x1xi1>
    %363 = vector.broadcast %362 : vector<1x1xi1> to vector<1x5xi1>
    %364 = arith.select %363, %361, %287 : vector<1x5xi1>, vector<1x5xf32>
    %365 = vector.extract_strided_slice %323 {offsets = [0, 0], sizes = [1, 1], strides = [1, 1]} : vector<1x5xf32> to vector<1x1xf32>
    %366 = vector.broadcast %365 : vector<1x1xf32> to vector<1x5xf32>
    %367 = arith.addf %366, %79 : vector<1x5xf32>
    %cst_102 = arith.constant 0.000000e+00 : f32
    %368 = vector.broadcast %cst_102 : f32 to vector<1x5xf32>
    %369 = vector.extract_strided_slice %323 {offsets = [0, 1], sizes = [1, 1], strides = [1, 1]} : vector<1x5xf32> to vector<1x1xf32>
    %370 = vector.broadcast %369 : vector<1x1xf32> to vector<1x5xf32>
    %371 = arith.addf %370, %80 : vector<1x5xf32>
    %372 = arith.cmpf ogt, %371, %367 : vector<1x5xf32>
    %373 = arith.select %372, %371, %367 : vector<1x5xi1>, vector<1x5xf32>
    %cst_103 = arith.constant 1.000000e+00 : f32
    %374 = vector.broadcast %cst_103 : f32 to vector<1x5xf32>
    %375 = arith.select %372, %374, %368 : vector<1x5xi1>, vector<1x5xf32>
    %376 = vector.extract_strided_slice %323 {offsets = [0, 2], sizes = [1, 1], strides = [1, 1]} : vector<1x5xf32> to vector<1x1xf32>
    %377 = vector.broadcast %376 : vector<1x1xf32> to vector<1x5xf32>
    %378 = arith.addf %377, %81 : vector<1x5xf32>
    %379 = arith.cmpf ogt, %378, %373 : vector<1x5xf32>
    %380 = arith.select %379, %378, %373 : vector<1x5xi1>, vector<1x5xf32>
    %cst_104 = arith.constant 2.000000e+00 : f32
    %381 = vector.broadcast %cst_104 : f32 to vector<1x5xf32>
    %382 = arith.select %379, %381, %375 : vector<1x5xi1>, vector<1x5xf32>
    %383 = vector.extract_strided_slice %323 {offsets = [0, 3], sizes = [1, 1], strides = [1, 1]} : vector<1x5xf32> to vector<1x1xf32>
    %384 = vector.broadcast %383 : vector<1x1xf32> to vector<1x5xf32>
    %385 = arith.addf %384, %82 : vector<1x5xf32>
    %386 = arith.cmpf ogt, %385, %380 : vector<1x5xf32>
    %387 = arith.select %386, %385, %380 : vector<1x5xi1>, vector<1x5xf32>
    %cst_105 = arith.constant 3.000000e+00 : f32
    %388 = vector.broadcast %cst_105 : f32 to vector<1x5xf32>
    %389 = arith.select %386, %388, %382 : vector<1x5xi1>, vector<1x5xf32>
    %390 = vector.extract_strided_slice %323 {offsets = [0, 4], sizes = [1, 1], strides = [1, 1]} : vector<1x5xf32> to vector<1x1xf32>
    %391 = vector.broadcast %390 : vector<1x1xf32> to vector<1x5xf32>
    %392 = arith.addf %391, %83 : vector<1x5xf32>
    %393 = arith.cmpf ogt, %392, %387 : vector<1x5xf32>
    %394 = arith.select %393, %392, %387 : vector<1x5xi1>, vector<1x5xf32>
    %cst_106 = arith.constant 4.000000e+00 : f32
    %395 = vector.broadcast %cst_106 : f32 to vector<1x5xf32>
    %396 = arith.select %393, %395, %389 : vector<1x5xi1>, vector<1x5xf32>
    %397 = arith.addf %394, %328 : vector<1x5xf32>
    %398 = vector.shape_cast %332 : vector<1x1xi1> to vector<1x1xi1>
    %399 = vector.broadcast %398 : vector<1x1xi1> to vector<1x5xi1>
    %400 = arith.select %399, %397, %323 : vector<1x5xi1>, vector<1x5xf32>
    %401 = vector.shape_cast %332 : vector<1x1xi1> to vector<1x1xi1>
    %402 = vector.broadcast %401 : vector<1x1xi1> to vector<1x5xi1>
    %403 = arith.select %402, %396, %94 : vector<1x5xi1>, vector<1x5xf32>
    %c4_107 = arith.constant 4 : index
    %c0_108 = arith.constant 0 : index
    %404 = vector.load %arg12[%c4_107, %c0_108] : memref<16x5xf32, #tpu.memory_space<vmem>>, vector<1x5xf32>
    tpu.vector_store %arg12[%c4_107, %c0_108], %403 {strides = array<i32>} : memref<16x5xf32, #tpu.memory_space<vmem>>, vector<1x5xf32>,
    %c5 = arith.constant 5 : index
    %c0_109 = arith.constant 0 : index
    %405 = vector.load %arg11[%c5, %c0_109] : memref<16x5xf32, #tpu.memory_space<vmem>>, vector<1x5xf32>
    %c0_110 = arith.constant 0 : index
    %c5_111 = arith.constant 5 : index
    %c0_112 = arith.constant 0 : index
    %406 = vector.load %arg5[%c0_110, %c5_111, %c0_112] : memref<1x16x1xf32, #tpu.memory_space<vmem>>, vector<1x1x1xf32>
    %407 = vector.shape_cast %406 : vector<1x1x1xf32> to vector<1x1xf32>
    %cst_113 = arith.constant 5.000000e-01 : f32
    %408 = vector.broadcast %cst_113 : f32 to vector<1x1xf32>
    %409 = arith.cmpf ogt, %407, %408 : vector<1x1xf32>
    %cst_114 = arith.constant dense<0xFF800000> : vector<1xf32>
    %410 = vector.multi_reduction <maximumf>, %364, %cst_114 [1] : vector<1x5xf32> to vector<1xf32>
    %411 = vector.shape_cast %410 : vector<1xf32> to vector<1x1xf32>
    %412 = vector.broadcast %411 : vector<1x1xf32> to vector<1x5xf32>
    %413 = arith.subf %364, %412 : vector<1x5xf32>
    %414 = math.exp %413 : vector<1x5xf32>
    %415 = vector.extract_strided_slice %414 {offsets = [0, 0], sizes = [1, 1], strides = [1, 1]} : vector<1x5xf32> to vector<1x1xf32>
    %416 = vector.broadcast %415 : vector<1x1xf32> to vector<1x5xf32>
    %417 = arith.mulf %416, %85 : vector<1x5xf32>
    %418 = vector.extract_strided_slice %414 {offsets = [0, 1], sizes = [1, 1], strides = [1, 1]} : vector<1x5xf32> to vector<1x1xf32>
    %419 = vector.broadcast %418 : vector<1x1xf32> to vector<1x5xf32>
    %420 = arith.mulf %419, %87 : vector<1x5xf32>
    %421 = arith.addf %417, %420 : vector<1x5xf32>
    %422 = vector.extract_strided_slice %414 {offsets = [0, 2], sizes = [1, 1], strides = [1, 1]} : vector<1x5xf32> to vector<1x1xf32>
    %423 = vector.broadcast %422 : vector<1x1xf32> to vector<1x5xf32>
    %424 = arith.mulf %423, %89 : vector<1x5xf32>
    %425 = arith.addf %421, %424 : vector<1x5xf32>
    %426 = vector.extract_strided_slice %414 {offsets = [0, 3], sizes = [1, 1], strides = [1, 1]} : vector<1x5xf32> to vector<1x1xf32>
    %427 = vector.broadcast %426 : vector<1x1xf32> to vector<1x5xf32>
    %428 = arith.mulf %427, %91 : vector<1x5xf32>
    %429 = arith.addf %425, %428 : vector<1x5xf32>
    %430 = vector.extract_strided_slice %414 {offsets = [0, 4], sizes = [1, 1], strides = [1, 1]} : vector<1x5xf32> to vector<1x1xf32>
    %431 = vector.broadcast %430 : vector<1x1xf32> to vector<1x5xf32>
    %432 = arith.mulf %431, %93 : vector<1x5xf32>
    %433 = arith.addf %429, %432 : vector<1x5xf32>
    %434 = vector.broadcast %411 : vector<1x1xf32> to vector<1x5xf32>
    %435 = arith.addf %405, %434 : vector<1x5xf32>
    %436 = arith.addf %435, %78 : vector<1x5xf32>
    %437 = math.log %433 : vector<1x5xf32>
    %438 = arith.addf %436, %437 : vector<1x5xf32>
    %439 = vector.shape_cast %409 : vector<1x1xi1> to vector<1x1xi1>
    %440 = vector.broadcast %439 : vector<1x1xi1> to vector<1x5xi1>
    %441 = arith.select %440, %438, %364 : vector<1x5xi1>, vector<1x5xf32>
    %442 = vector.extract_strided_slice %400 {offsets = [0, 0], sizes = [1, 1], strides = [1, 1]} : vector<1x5xf32> to vector<1x1xf32>
    %443 = vector.broadcast %442 : vector<1x1xf32> to vector<1x5xf32>
    %444 = arith.addf %443, %79 : vector<1x5xf32>
    %cst_115 = arith.constant 0.000000e+00 : f32
    %445 = vector.broadcast %cst_115 : f32 to vector<1x5xf32>
    %446 = vector.extract_strided_slice %400 {offsets = [0, 1], sizes = [1, 1], strides = [1, 1]} : vector<1x5xf32> to vector<1x1xf32>
    %447 = vector.broadcast %446 : vector<1x1xf32> to vector<1x5xf32>
    %448 = arith.addf %447, %80 : vector<1x5xf32>
    %449 = arith.cmpf ogt, %448, %444 : vector<1x5xf32>
    %450 = arith.select %449, %448, %444 : vector<1x5xi1>, vector<1x5xf32>
    %cst_116 = arith.constant 1.000000e+00 : f32
    %451 = vector.broadcast %cst_116 : f32 to vector<1x5xf32>
    %452 = arith.select %449, %451, %445 : vector<1x5xi1>, vector<1x5xf32>
    %453 = vector.extract_strided_slice %400 {offsets = [0, 2], sizes = [1, 1], strides = [1, 1]} : vector<1x5xf32> to vector<1x1xf32>
    %454 = vector.broadcast %453 : vector<1x1xf32> to vector<1x5xf32>
    %455 = arith.addf %454, %81 : vector<1x5xf32>
    %456 = arith.cmpf ogt, %455, %450 : vector<1x5xf32>
    %457 = arith.select %456, %455, %450 : vector<1x5xi1>, vector<1x5xf32>
    %cst_117 = arith.constant 2.000000e+00 : f32
    %458 = vector.broadcast %cst_117 : f32 to vector<1x5xf32>
    %459 = arith.select %456, %458, %452 : vector<1x5xi1>, vector<1x5xf32>
    %460 = vector.extract_strided_slice %400 {offsets = [0, 3], sizes = [1, 1], strides = [1, 1]} : vector<1x5xf32> to vector<1x1xf32>
    %461 = vector.broadcast %460 : vector<1x1xf32> to vector<1x5xf32>
    %462 = arith.addf %461, %82 : vector<1x5xf32>
    %463 = arith.cmpf ogt, %462, %457 : vector<1x5xf32>
    %464 = arith.select %463, %462, %457 : vector<1x5xi1>, vector<1x5xf32>
    %cst_118 = arith.constant 3.000000e+00 : f32
    %465 = vector.broadcast %cst_118 : f32 to vector<1x5xf32>
    %466 = arith.select %463, %465, %459 : vector<1x5xi1>, vector<1x5xf32>
    %467 = vector.extract_strided_slice %400 {offsets = [0, 4], sizes = [1, 1], strides = [1, 1]} : vector<1x5xf32> to vector<1x1xf32>
    %468 = vector.broadcast %467 : vector<1x1xf32> to vector<1x5xf32>
    %469 = arith.addf %468, %83 : vector<1x5xf32>
    %470 = arith.cmpf ogt, %469, %464 : vector<1x5xf32>
    %471 = arith.select %470, %469, %464 : vector<1x5xi1>, vector<1x5xf32>
    %cst_119 = arith.constant 4.000000e+00 : f32
    %472 = vector.broadcast %cst_119 : f32 to vector<1x5xf32>
    %473 = arith.select %470, %472, %466 : vector<1x5xi1>, vector<1x5xf32>
    %474 = arith.addf %471, %405 : vector<1x5xf32>
    %475 = vector.shape_cast %409 : vector<1x1xi1> to vector<1x1xi1>
    %476 = vector.broadcast %475 : vector<1x1xi1> to vector<1x5xi1>
    %477 = arith.select %476, %474, %400 : vector<1x5xi1>, vector<1x5xf32>
    %478 = vector.shape_cast %409 : vector<1x1xi1> to vector<1x1xi1>
    %479 = vector.broadcast %478 : vector<1x1xi1> to vector<1x5xi1>
    %480 = arith.select %479, %473, %94 : vector<1x5xi1>, vector<1x5xf32>
    %c5_120 = arith.constant 5 : index
    %c0_121 = arith.constant 0 : index
    %481 = vector.load %arg12[%c5_120, %c0_121] : memref<16x5xf32, #tpu.memory_space<vmem>>, vector<1x5xf32>
    tpu.vector_store %arg12[%c5_120, %c0_121], %480 {strides = array<i32>} : memref<16x5xf32, #tpu.memory_space<vmem>>, vector<1x5xf32>,
    %c6 = arith.constant 6 : index
    %c0_122 = arith.constant 0 : index
    %482 = vector.load %arg11[%c6, %c0_122] : memref<16x5xf32, #tpu.memory_space<vmem>>, vector<1x5xf32>
    %c0_123 = arith.constant 0 : index
    %c6_124 = arith.constant 6 : index
    %c0_125 = arith.constant 0 : index
    %483 = vector.load %arg5[%c0_123, %c6_124, %c0_125] : memref<1x16x1xf32, #tpu.memory_space<vmem>>, vector<1x1x1xf32>
    %484 = vector.shape_cast %483 : vector<1x1x1xf32> to vector<1x1xf32>
    %cst_126 = arith.constant 5.000000e-01 : f32
    %485 = vector.broadcast %cst_126 : f32 to vector<1x1xf32>
    %486 = arith.cmpf ogt, %484, %485 : vector<1x1xf32>
    %cst_127 = arith.constant dense<0xFF800000> : vector<1xf32>
    %487 = vector.multi_reduction <maximumf>, %441, %cst_127 [1] : vector<1x5xf32> to vector<1xf32>
    %488 = vector.shape_cast %487 : vector<1xf32> to vector<1x1xf32>
    %489 = vector.broadcast %488 : vector<1x1xf32> to vector<1x5xf32>
    %490 = arith.subf %441, %489 : vector<1x5xf32>
    %491 = math.exp %490 : vector<1x5xf32>
    %492 = vector.extract_strided_slice %491 {offsets = [0, 0], sizes = [1, 1], strides = [1, 1]} : vector<1x5xf32> to vector<1x1xf32>
    %493 = vector.broadcast %492 : vector<1x1xf32> to vector<1x5xf32>
    %494 = arith.mulf %493, %85 : vector<1x5xf32>
    %495 = vector.extract_strided_slice %491 {offsets = [0, 1], sizes = [1, 1], strides = [1, 1]} : vector<1x5xf32> to vector<1x1xf32>
    %496 = vector.broadcast %495 : vector<1x1xf32> to vector<1x5xf32>
    %497 = arith.mulf %496, %87 : vector<1x5xf32>
    %498 = arith.addf %494, %497 : vector<1x5xf32>
    %499 = vector.extract_strided_slice %491 {offsets = [0, 2], sizes = [1, 1], strides = [1, 1]} : vector<1x5xf32> to vector<1x1xf32>
    %500 = vector.broadcast %499 : vector<1x1xf32> to vector<1x5xf32>
    %501 = arith.mulf %500, %89 : vector<1x5xf32>
    %502 = arith.addf %498, %501 : vector<1x5xf32>
    %503 = vector.extract_strided_slice %491 {offsets = [0, 3], sizes = [1, 1], strides = [1, 1]} : vector<1x5xf32> to vector<1x1xf32>
    %504 = vector.broadcast %503 : vector<1x1xf32> to vector<1x5xf32>
    %505 = arith.mulf %504, %91 : vector<1x5xf32>
    %506 = arith.addf %502, %505 : vector<1x5xf32>
    %507 = vector.extract_strided_slice %491 {offsets = [0, 4], sizes = [1, 1], strides = [1, 1]} : vector<1x5xf32> to vector<1x1xf32>
    %508 = vector.broadcast %507 : vector<1x1xf32> to vector<1x5xf32>
    %509 = arith.mulf %508, %93 : vector<1x5xf32>
    %510 = arith.addf %506, %509 : vector<1x5xf32>
    %511 = vector.broadcast %488 : vector<1x1xf32> to vector<1x5xf32>
    %512 = arith.addf %482, %511 : vector<1x5xf32>
    %513 = arith.addf %512, %78 : vector<1x5xf32>
    %514 = math.log %510 : vector<1x5xf32>
    %515 = arith.addf %513, %514 : vector<1x5xf32>
    %516 = vector.shape_cast %486 : vector<1x1xi1> to vector<1x1xi1>
    %517 = vector.broadcast %516 : vector<1x1xi1> to vector<1x5xi1>
    %518 = arith.select %517, %515, %441 : vector<1x5xi1>, vector<1x5xf32>
    %519 = vector.extract_strided_slice %477 {offsets = [0, 0], sizes = [1, 1], strides = [1, 1]} : vector<1x5xf32> to vector<1x1xf32>
    %520 = vector.broadcast %519 : vector<1x1xf32> to vector<1x5xf32>
    %521 = arith.addf %520, %79 : vector<1x5xf32>
    %cst_128 = arith.constant 0.000000e+00 : f32
    %522 = vector.broadcast %cst_128 : f32 to vector<1x5xf32>
    %523 = vector.extract_strided_slice %477 {offsets = [0, 1], sizes = [1, 1], strides = [1, 1]} : vector<1x5xf32> to vector<1x1xf32>
    %524 = vector.broadcast %523 : vector<1x1xf32> to vector<1x5xf32>
    %525 = arith.addf %524, %80 : vector<1x5xf32>
    %526 = arith.cmpf ogt, %525, %521 : vector<1x5xf32>
    %527 = arith.select %526, %525, %521 : vector<1x5xi1>, vector<1x5xf32>
    %cst_129 = arith.constant 1.000000e+00 : f32
    %528 = vector.broadcast %cst_129 : f32 to vector<1x5xf32>
    %529 = arith.select %526, %528, %522 : vector<1x5xi1>, vector<1x5xf32>
    %530 = vector.extract_strided_slice %477 {offsets = [0, 2], sizes = [1, 1], strides = [1, 1]} : vector<1x5xf32> to vector<1x1xf32>
    %531 = vector.broadcast %530 : vector<1x1xf32> to vector<1x5xf32>
    %532 = arith.addf %531, %81 : vector<1x5xf32>
    %533 = arith.cmpf ogt, %532, %527 : vector<1x5xf32>
    %534 = arith.select %533, %532, %527 : vector<1x5xi1>, vector<1x5xf32>
    %cst_130 = arith.constant 2.000000e+00 : f32
    %535 = vector.broadcast %cst_130 : f32 to vector<1x5xf32>
    %536 = arith.select %533, %535, %529 : vector<1x5xi1>, vector<1x5xf32>
    %537 = vector.extract_strided_slice %477 {offsets = [0, 3], sizes = [1, 1], strides = [1, 1]} : vector<1x5xf32> to vector<1x1xf32>
    %538 = vector.broadcast %537 : vector<1x1xf32> to vector<1x5xf32>
    %539 = arith.addf %538, %82 : vector<1x5xf32>
    %540 = arith.cmpf ogt, %539, %534 : vector<1x5xf32>
    %541 = arith.select %540, %539, %534 : vector<1x5xi1>, vector<1x5xf32>
    %cst_131 = arith.constant 3.000000e+00 : f32
    %542 = vector.broadcast %cst_131 : f32 to vector<1x5xf32>
    %543 = arith.select %540, %542, %536 : vector<1x5xi1>, vector<1x5xf32>
    %544 = vector.extract_strided_slice %477 {offsets = [0, 4], sizes = [1, 1], strides = [1, 1]} : vector<1x5xf32> to vector<1x1xf32>
    %545 = vector.broadcast %544 : vector<1x1xf32> to vector<1x5xf32>
    %546 = arith.addf %545, %83 : vector<1x5xf32>
    %547 = arith.cmpf ogt, %546, %541 : vector<1x5xf32>
    %548 = arith.select %547, %546, %541 : vector<1x5xi1>, vector<1x5xf32>
    %cst_132 = arith.constant 4.000000e+00 : f32
    %549 = vector.broadcast %cst_132 : f32 to vector<1x5xf32>
    %550 = arith.select %547, %549, %543 : vector<1x5xi1>, vector<1x5xf32>
    %551 = arith.addf %548, %482 : vector<1x5xf32>
    %552 = vector.shape_cast %486 : vector<1x1xi1> to vector<1x1xi1>
    %553 = vector.broadcast %552 : vector<1x1xi1> to vector<1x5xi1>
    %554 = arith.select %553, %551, %477 : vector<1x5xi1>, vector<1x5xf32>
    %555 = vector.shape_cast %486 : vector<1x1xi1> to vector<1x1xi1>
    %556 = vector.broadcast %555 : vector<1x1xi1> to vector<1x5xi1>
    %557 = arith.select %556, %550, %94 : vector<1x5xi1>, vector<1x5xf32>
    %c6_133 = arith.constant 6 : index
    %c0_134 = arith.constant 0 : index
    %558 = vector.load %arg12[%c6_133, %c0_134] : memref<16x5xf32, #tpu.memory_space<vmem>>, vector<1x5xf32>
    tpu.vector_store %arg12[%c6_133, %c0_134], %557 {strides = array<i32>} : memref<16x5xf32, #tpu.memory_space<vmem>>, vector<1x5xf32>,
    %c7 = arith.constant 7 : index
    %c0_135 = arith.constant 0 : index
    %559 = vector.load %arg11[%c7, %c0_135] : memref<16x5xf32, #tpu.memory_space<vmem>>, vector<1x5xf32>
    %c0_136 = arith.constant 0 : index
    %c7_137 = arith.constant 7 : index
    %c0_138 = arith.constant 0 : index
    %560 = vector.load %arg5[%c0_136, %c7_137, %c0_138] : memref<1x16x1xf32, #tpu.memory_space<vmem>>, vector<1x1x1xf32>
    %561 = vector.shape_cast %560 : vector<1x1x1xf32> to vector<1x1xf32>
    %cst_139 = arith.constant 5.000000e-01 : f32
    %562 = vector.broadcast %cst_139 : f32 to vector<1x1xf32>
    %563 = arith.cmpf ogt, %561, %562 : vector<1x1xf32>
    %cst_140 = arith.constant dense<0xFF800000> : vector<1xf32>
    %564 = vector.multi_reduction <maximumf>, %518, %cst_140 [1] : vector<1x5xf32> to vector<1xf32>
    %565 = vector.shape_cast %564 : vector<1xf32> to vector<1x1xf32>
    %566 = vector.broadcast %565 : vector<1x1xf32> to vector<1x5xf32>
    %567 = arith.subf %518, %566 : vector<1x5xf32>
    %568 = math.exp %567 : vector<1x5xf32>
    %569 = vector.extract_strided_slice %568 {offsets = [0, 0], sizes = [1, 1], strides = [1, 1]} : vector<1x5xf32> to vector<1x1xf32>
    %570 = vector.broadcast %569 : vector<1x1xf32> to vector<1x5xf32>
    %571 = arith.mulf %570, %85 : vector<1x5xf32>
    %572 = vector.extract_strided_slice %568 {offsets = [0, 1], sizes = [1, 1], strides = [1, 1]} : vector<1x5xf32> to vector<1x1xf32>
    %573 = vector.broadcast %572 : vector<1x1xf32> to vector<1x5xf32>
    %574 = arith.mulf %573, %87 : vector<1x5xf32>
    %575 = arith.addf %571, %574 : vector<1x5xf32>
    %576 = vector.extract_strided_slice %568 {offsets = [0, 2], sizes = [1, 1], strides = [1, 1]} : vector<1x5xf32> to vector<1x1xf32>
    %577 = vector.broadcast %576 : vector<1x1xf32> to vector<1x5xf32>
    %578 = arith.mulf %577, %89 : vector<1x5xf32>
    %579 = arith.addf %575, %578 : vector<1x5xf32>
    %580 = vector.extract_strided_slice %568 {offsets = [0, 3], sizes = [1, 1], strides = [1, 1]} : vector<1x5xf32> to vector<1x1xf32>
    %581 = vector.broadcast %580 : vector<1x1xf32> to vector<1x5xf32>
    %582 = arith.mulf %581, %91 : vector<1x5xf32>
    %583 = arith.addf %579, %582 : vector<1x5xf32>
    %584 = vector.extract_strided_slice %568 {offsets = [0, 4], sizes = [1, 1], strides = [1, 1]} : vector<1x5xf32> to vector<1x1xf32>
    %585 = vector.broadcast %584 : vector<1x1xf32> to vector<1x5xf32>
    %586 = arith.mulf %585, %93 : vector<1x5xf32>
    %587 = arith.addf %583, %586 : vector<1x5xf32>
    %588 = vector.broadcast %565 : vector<1x1xf32> to vector<1x5xf32>
    %589 = arith.addf %559, %588 : vector<1x5xf32>
    %590 = arith.addf %589, %78 : vector<1x5xf32>
    %591 = math.log %587 : vector<1x5xf32>
    %592 = arith.addf %590, %591 : vector<1x5xf32>
    %593 = vector.shape_cast %563 : vector<1x1xi1> to vector<1x1xi1>
    %594 = vector.broadcast %593 : vector<1x1xi1> to vector<1x5xi1>
    %595 = arith.select %594, %592, %518 : vector<1x5xi1>, vector<1x5xf32>
    %596 = vector.extract_strided_slice %554 {offsets = [0, 0], sizes = [1, 1], strides = [1, 1]} : vector<1x5xf32> to vector<1x1xf32>
    %597 = vector.broadcast %596 : vector<1x1xf32> to vector<1x5xf32>
    %598 = arith.addf %597, %79 : vector<1x5xf32>
    %cst_141 = arith.constant 0.000000e+00 : f32
    %599 = vector.broadcast %cst_141 : f32 to vector<1x5xf32>
    %600 = vector.extract_strided_slice %554 {offsets = [0, 1], sizes = [1, 1], strides = [1, 1]} : vector<1x5xf32> to vector<1x1xf32>
    %601 = vector.broadcast %600 : vector<1x1xf32> to vector<1x5xf32>
    %602 = arith.addf %601, %80 : vector<1x5xf32>
    %603 = arith.cmpf ogt, %602, %598 : vector<1x5xf32>
    %604 = arith.select %603, %602, %598 : vector<1x5xi1>, vector<1x5xf32>
    %cst_142 = arith.constant 1.000000e+00 : f32
    %605 = vector.broadcast %cst_142 : f32 to vector<1x5xf32>
    %606 = arith.select %603, %605, %599 : vector<1x5xi1>, vector<1x5xf32>
    %607 = vector.extract_strided_slice %554 {offsets = [0, 2], sizes = [1, 1], strides = [1, 1]} : vector<1x5xf32> to vector<1x1xf32>
    %608 = vector.broadcast %607 : vector<1x1xf32> to vector<1x5xf32>
    %609 = arith.addf %608, %81 : vector<1x5xf32>
    %610 = arith.cmpf ogt, %609, %604 : vector<1x5xf32>
    %611 = arith.select %610, %609, %604 : vector<1x5xi1>, vector<1x5xf32>
    %cst_143 = arith.constant 2.000000e+00 : f32
    %612 = vector.broadcast %cst_143 : f32 to vector<1x5xf32>
    %613 = arith.select %610, %612, %606 : vector<1x5xi1>, vector<1x5xf32>
    %614 = vector.extract_strided_slice %554 {offsets = [0, 3], sizes = [1, 1], strides = [1, 1]} : vector<1x5xf32> to vector<1x1xf32>
    %615 = vector.broadcast %614 : vector<1x1xf32> to vector<1x5xf32>
    %616 = arith.addf %615, %82 : vector<1x5xf32>
    %617 = arith.cmpf ogt, %616, %611 : vector<1x5xf32>
    %618 = arith.select %617, %616, %611 : vector<1x5xi1>, vector<1x5xf32>
    %cst_144 = arith.constant 3.000000e+00 : f32
    %619 = vector.broadcast %cst_144 : f32 to vector<1x5xf32>
    %620 = arith.select %617, %619, %613 : vector<1x5xi1>, vector<1x5xf32>
    %621 = vector.extract_strided_slice %554 {offsets = [0, 4], sizes = [1, 1], strides = [1, 1]} : vector<1x5xf32> to vector<1x1xf32>
    %622 = vector.broadcast %621 : vector<1x1xf32> to vector<1x5xf32>
    %623 = arith.addf %622, %83 : vector<1x5xf32>
    %624 = arith.cmpf ogt, %623, %618 : vector<1x5xf32>
    %625 = arith.select %624, %623, %618 : vector<1x5xi1>, vector<1x5xf32>
    %cst_145 = arith.constant 4.000000e+00 : f32
    %626 = vector.broadcast %cst_145 : f32 to vector<1x5xf32>
    %627 = arith.select %624, %626, %620 : vector<1x5xi1>, vector<1x5xf32>
    %628 = arith.addf %625, %559 : vector<1x5xf32>
    %629 = vector.shape_cast %563 : vector<1x1xi1> to vector<1x1xi1>
    %630 = vector.broadcast %629 : vector<1x1xi1> to vector<1x5xi1>
    %631 = arith.select %630, %628, %554 : vector<1x5xi1>, vector<1x5xf32>
    %632 = vector.shape_cast %563 : vector<1x1xi1> to vector<1x1xi1>
    %633 = vector.broadcast %632 : vector<1x1xi1> to vector<1x5xi1>
    %634 = arith.select %633, %627, %94 : vector<1x5xi1>, vector<1x5xf32>
    %c7_146 = arith.constant 7 : index
    %c0_147 = arith.constant 0 : index
    %635 = vector.load %arg12[%c7_146, %c0_147] : memref<16x5xf32, #tpu.memory_space<vmem>>, vector<1x5xf32>
    tpu.vector_store %arg12[%c7_146, %c0_147], %634 {strides = array<i32>} : memref<16x5xf32, #tpu.memory_space<vmem>>, vector<1x5xf32>,
    %c8 = arith.constant 8 : index
    %c0_148 = arith.constant 0 : index
    %636 = vector.load %arg11[%c8, %c0_148] : memref<16x5xf32, #tpu.memory_space<vmem>>, vector<1x5xf32>
    %c0_149 = arith.constant 0 : index
    %c8_150 = arith.constant 8 : index
    %c0_151 = arith.constant 0 : index
    %637 = vector.load %arg5[%c0_149, %c8_150, %c0_151] : memref<1x16x1xf32, #tpu.memory_space<vmem>>, vector<1x1x1xf32>
    %638 = vector.shape_cast %637 : vector<1x1x1xf32> to vector<1x1xf32>
    %cst_152 = arith.constant 5.000000e-01 : f32
    %639 = vector.broadcast %cst_152 : f32 to vector<1x1xf32>
    %640 = arith.cmpf ogt, %638, %639 : vector<1x1xf32>
    %cst_153 = arith.constant dense<0xFF800000> : vector<1xf32>
    %641 = vector.multi_reduction <maximumf>, %595, %cst_153 [1] : vector<1x5xf32> to vector<1xf32>
    %642 = vector.shape_cast %641 : vector<1xf32> to vector<1x1xf32>
    %643 = vector.broadcast %642 : vector<1x1xf32> to vector<1x5xf32>
    %644 = arith.subf %595, %643 : vector<1x5xf32>
    %645 = math.exp %644 : vector<1x5xf32>
    %646 = vector.extract_strided_slice %645 {offsets = [0, 0], sizes = [1, 1], strides = [1, 1]} : vector<1x5xf32> to vector<1x1xf32>
    %647 = vector.broadcast %646 : vector<1x1xf32> to vector<1x5xf32>
    %648 = arith.mulf %647, %85 : vector<1x5xf32>
    %649 = vector.extract_strided_slice %645 {offsets = [0, 1], sizes = [1, 1], strides = [1, 1]} : vector<1x5xf32> to vector<1x1xf32>
    %650 = vector.broadcast %649 : vector<1x1xf32> to vector<1x5xf32>
    %651 = arith.mulf %650, %87 : vector<1x5xf32>
    %652 = arith.addf %648, %651 : vector<1x5xf32>
    %653 = vector.extract_strided_slice %645 {offsets = [0, 2], sizes = [1, 1], strides = [1, 1]} : vector<1x5xf32> to vector<1x1xf32>
    %654 = vector.broadcast %653 : vector<1x1xf32> to vector<1x5xf32>
    %655 = arith.mulf %654, %89 : vector<1x5xf32>
    %656 = arith.addf %652, %655 : vector<1x5xf32>
    %657 = vector.extract_strided_slice %645 {offsets = [0, 3], sizes = [1, 1], strides = [1, 1]} : vector<1x5xf32> to vector<1x1xf32>
    %658 = vector.broadcast %657 : vector<1x1xf32> to vector<1x5xf32>
    %659 = arith.mulf %658, %91 : vector<1x5xf32>
    %660 = arith.addf %656, %659 : vector<1x5xf32>
    %661 = vector.extract_strided_slice %645 {offsets = [0, 4], sizes = [1, 1], strides = [1, 1]} : vector<1x5xf32> to vector<1x1xf32>
    %662 = vector.broadcast %661 : vector<1x1xf32> to vector<1x5xf32>
    %663 = arith.mulf %662, %93 : vector<1x5xf32>
    %664 = arith.addf %660, %663 : vector<1x5xf32>
    %665 = vector.broadcast %642 : vector<1x1xf32> to vector<1x5xf32>
    %666 = arith.addf %636, %665 : vector<1x5xf32>
    %667 = arith.addf %666, %78 : vector<1x5xf32>
    %668 = math.log %664 : vector<1x5xf32>
    %669 = arith.addf %667, %668 : vector<1x5xf32>
    %670 = vector.shape_cast %640 : vector<1x1xi1> to vector<1x1xi1>
    %671 = vector.broadcast %670 : vector<1x1xi1> to vector<1x5xi1>
    %672 = arith.select %671, %669, %595 : vector<1x5xi1>, vector<1x5xf32>
    %673 = vector.extract_strided_slice %631 {offsets = [0, 0], sizes = [1, 1], strides = [1, 1]} : vector<1x5xf32> to vector<1x1xf32>
    %674 = vector.broadcast %673 : vector<1x1xf32> to vector<1x5xf32>
    %675 = arith.addf %674, %79 : vector<1x5xf32>
    %cst_154 = arith.constant 0.000000e+00 : f32
    %676 = vector.broadcast %cst_154 : f32 to vector<1x5xf32>
    %677 = vector.extract_strided_slice %631 {offsets = [0, 1], sizes = [1, 1], strides = [1, 1]} : vector<1x5xf32> to vector<1x1xf32>
    %678 = vector.broadcast %677 : vector<1x1xf32> to vector<1x5xf32>
    %679 = arith.addf %678, %80 : vector<1x5xf32>
    %680 = arith.cmpf ogt, %679, %675 : vector<1x5xf32>
    %681 = arith.select %680, %679, %675 : vector<1x5xi1>, vector<1x5xf32>
    %cst_155 = arith.constant 1.000000e+00 : f32
    %682 = vector.broadcast %cst_155 : f32 to vector<1x5xf32>
    %683 = arith.select %680, %682, %676 : vector<1x5xi1>, vector<1x5xf32>
    %684 = vector.extract_strided_slice %631 {offsets = [0, 2], sizes = [1, 1], strides = [1, 1]} : vector<1x5xf32> to vector<1x1xf32>
    %685 = vector.broadcast %684 : vector<1x1xf32> to vector<1x5xf32>
    %686 = arith.addf %685, %81 : vector<1x5xf32>
    %687 = arith.cmpf ogt, %686, %681 : vector<1x5xf32>
    %688 = arith.select %687, %686, %681 : vector<1x5xi1>, vector<1x5xf32>
    %cst_156 = arith.constant 2.000000e+00 : f32
    %689 = vector.broadcast %cst_156 : f32 to vector<1x5xf32>
    %690 = arith.select %687, %689, %683 : vector<1x5xi1>, vector<1x5xf32>
    %691 = vector.extract_strided_slice %631 {offsets = [0, 3], sizes = [1, 1], strides = [1, 1]} : vector<1x5xf32> to vector<1x1xf32>
    %692 = vector.broadcast %691 : vector<1x1xf32> to vector<1x5xf32>
    %693 = arith.addf %692, %82 : vector<1x5xf32>
    %694 = arith.cmpf ogt, %693, %688 : vector<1x5xf32>
    %695 = arith.select %694, %693, %688 : vector<1x5xi1>, vector<1x5xf32>
    %cst_157 = arith.constant 3.000000e+00 : f32
    %696 = vector.broadcast %cst_157 : f32 to vector<1x5xf32>
    %697 = arith.select %694, %696, %690 : vector<1x5xi1>, vector<1x5xf32>
    %698 = vector.extract_strided_slice %631 {offsets = [0, 4], sizes = [1, 1], strides = [1, 1]} : vector<1x5xf32> to vector<1x1xf32>
    %699 = vector.broadcast %698 : vector<1x1xf32> to vector<1x5xf32>
    %700 = arith.addf %699, %83 : vector<1x5xf32>
    %701 = arith.cmpf ogt, %700, %695 : vector<1x5xf32>
    %702 = arith.select %701, %700, %695 : vector<1x5xi1>, vector<1x5xf32>
    %cst_158 = arith.constant 4.000000e+00 : f32
    %703 = vector.broadcast %cst_158 : f32 to vector<1x5xf32>
    %704 = arith.select %701, %703, %697 : vector<1x5xi1>, vector<1x5xf32>
    %705 = arith.addf %702, %636 : vector<1x5xf32>
    %706 = vector.shape_cast %640 : vector<1x1xi1> to vector<1x1xi1>
    %707 = vector.broadcast %706 : vector<1x1xi1> to vector<1x5xi1>
    %708 = arith.select %707, %705, %631 : vector<1x5xi1>, vector<1x5xf32>
    %709 = vector.shape_cast %640 : vector<1x1xi1> to vector<1x1xi1>
    %710 = vector.broadcast %709 : vector<1x1xi1> to vector<1x5xi1>
    %711 = arith.select %710, %704, %94 : vector<1x5xi1>, vector<1x5xf32>
    %c8_159 = arith.constant 8 : index
    %c0_160 = arith.constant 0 : index
    %712 = vector.load %arg12[%c8_159, %c0_160] : memref<16x5xf32, #tpu.memory_space<vmem>>, vector<1x5xf32>
    tpu.vector_store %arg12[%c8_159, %c0_160], %711 {strides = array<i32>} : memref<16x5xf32, #tpu.memory_space<vmem>>, vector<1x5xf32>,
    %c9 = arith.constant 9 : index
    %c0_161 = arith.constant 0 : index
    %713 = vector.load %arg11[%c9, %c0_161] : memref<16x5xf32, #tpu.memory_space<vmem>>, vector<1x5xf32>
    %c0_162 = arith.constant 0 : index
    %c9_163 = arith.constant 9 : index
    %c0_164 = arith.constant 0 : index
    %714 = vector.load %arg5[%c0_162, %c9_163, %c0_164] : memref<1x16x1xf32, #tpu.memory_space<vmem>>, vector<1x1x1xf32>
    %715 = vector.shape_cast %714 : vector<1x1x1xf32> to vector<1x1xf32>
    %cst_165 = arith.constant 5.000000e-01 : f32
    %716 = vector.broadcast %cst_165 : f32 to vector<1x1xf32>
    %717 = arith.cmpf ogt, %715, %716 : vector<1x1xf32>
    %cst_166 = arith.constant dense<0xFF800000> : vector<1xf32>
    %718 = vector.multi_reduction <maximumf>, %672, %cst_166 [1] : vector<1x5xf32> to vector<1xf32>
    %719 = vector.shape_cast %718 : vector<1xf32> to vector<1x1xf32>
    %720 = vector.broadcast %719 : vector<1x1xf32> to vector<1x5xf32>
    %721 = arith.subf %672, %720 : vector<1x5xf32>
    %722 = math.exp %721 : vector<1x5xf32>
    %723 = vector.extract_strided_slice %722 {offsets = [0, 0], sizes = [1, 1], strides = [1, 1]} : vector<1x5xf32> to vector<1x1xf32>
    %724 = vector.broadcast %723 : vector<1x1xf32> to vector<1x5xf32>
    %725 = arith.mulf %724, %85 : vector<1x5xf32>
    %726 = vector.extract_strided_slice %722 {offsets = [0, 1], sizes = [1, 1], strides = [1, 1]} : vector<1x5xf32> to vector<1x1xf32>
    %727 = vector.broadcast %726 : vector<1x1xf32> to vector<1x5xf32>
    %728 = arith.mulf %727, %87 : vector<1x5xf32>
    %729 = arith.addf %725, %728 : vector<1x5xf32>
    %730 = vector.extract_strided_slice %722 {offsets = [0, 2], sizes = [1, 1], strides = [1, 1]} : vector<1x5xf32> to vector<1x1xf32>
    %731 = vector.broadcast %730 : vector<1x1xf32> to vector<1x5xf32>
    %732 = arith.mulf %731, %89 : vector<1x5xf32>
    %733 = arith.addf %729, %732 : vector<1x5xf32>
    %734 = vector.extract_strided_slice %722 {offsets = [0, 3], sizes = [1, 1], strides = [1, 1]} : vector<1x5xf32> to vector<1x1xf32>
    %735 = vector.broadcast %734 : vector<1x1xf32> to vector<1x5xf32>
    %736 = arith.mulf %735, %91 : vector<1x5xf32>
    %737 = arith.addf %733, %736 : vector<1x5xf32>
    %738 = vector.extract_strided_slice %722 {offsets = [0, 4], sizes = [1, 1], strides = [1, 1]} : vector<1x5xf32> to vector<1x1xf32>
    %739 = vector.broadcast %738 : vector<1x1xf32> to vector<1x5xf32>
    %740 = arith.mulf %739, %93 : vector<1x5xf32>
    %741 = arith.addf %737, %740 : vector<1x5xf32>
    %742 = vector.broadcast %719 : vector<1x1xf32> to vector<1x5xf32>
    %743 = arith.addf %713, %742 : vector<1x5xf32>
    %744 = arith.addf %743, %78 : vector<1x5xf32>
    %745 = math.log %741 : vector<1x5xf32>
    %746 = arith.addf %744, %745 : vector<1x5xf32>
    %747 = vector.shape_cast %717 : vector<1x1xi1> to vector<1x1xi1>
    %748 = vector.broadcast %747 : vector<1x1xi1> to vector<1x5xi1>
    %749 = arith.select %748, %746, %672 : vector<1x5xi1>, vector<1x5xf32>
    %750 = vector.extract_strided_slice %708 {offsets = [0, 0], sizes = [1, 1], strides = [1, 1]} : vector<1x5xf32> to vector<1x1xf32>
    %751 = vector.broadcast %750 : vector<1x1xf32> to vector<1x5xf32>
    %752 = arith.addf %751, %79 : vector<1x5xf32>
    %cst_167 = arith.constant 0.000000e+00 : f32
    %753 = vector.broadcast %cst_167 : f32 to vector<1x5xf32>
    %754 = vector.extract_strided_slice %708 {offsets = [0, 1], sizes = [1, 1], strides = [1, 1]} : vector<1x5xf32> to vector<1x1xf32>
    %755 = vector.broadcast %754 : vector<1x1xf32> to vector<1x5xf32>
    %756 = arith.addf %755, %80 : vector<1x5xf32>
    %757 = arith.cmpf ogt, %756, %752 : vector<1x5xf32>
    %758 = arith.select %757, %756, %752 : vector<1x5xi1>, vector<1x5xf32>
    %cst_168 = arith.constant 1.000000e+00 : f32
    %759 = vector.broadcast %cst_168 : f32 to vector<1x5xf32>
    %760 = arith.select %757, %759, %753 : vector<1x5xi1>, vector<1x5xf32>
    %761 = vector.extract_strided_slice %708 {offsets = [0, 2], sizes = [1, 1], strides = [1, 1]} : vector<1x5xf32> to vector<1x1xf32>
    %762 = vector.broadcast %761 : vector<1x1xf32> to vector<1x5xf32>
    %763 = arith.addf %762, %81 : vector<1x5xf32>
    %764 = arith.cmpf ogt, %763, %758 : vector<1x5xf32>
    %765 = arith.select %764, %763, %758 : vector<1x5xi1>, vector<1x5xf32>
    %cst_169 = arith.constant 2.000000e+00 : f32
    %766 = vector.broadcast %cst_169 : f32 to vector<1x5xf32>
    %767 = arith.select %764, %766, %760 : vector<1x5xi1>, vector<1x5xf32>
    %768 = vector.extract_strided_slice %708 {offsets = [0, 3], sizes = [1, 1], strides = [1, 1]} : vector<1x5xf32> to vector<1x1xf32>
    %769 = vector.broadcast %768 : vector<1x1xf32> to vector<1x5xf32>
    %770 = arith.addf %769, %82 : vector<1x5xf32>
    %771 = arith.cmpf ogt, %770, %765 : vector<1x5xf32>
    %772 = arith.select %771, %770, %765 : vector<1x5xi1>, vector<1x5xf32>
    %cst_170 = arith.constant 3.000000e+00 : f32
    %773 = vector.broadcast %cst_170 : f32 to vector<1x5xf32>
    %774 = arith.select %771, %773, %767 : vector<1x5xi1>, vector<1x5xf32>
    %775 = vector.extract_strided_slice %708 {offsets = [0, 4], sizes = [1, 1], strides = [1, 1]} : vector<1x5xf32> to vector<1x1xf32>
    %776 = vector.broadcast %775 : vector<1x1xf32> to vector<1x5xf32>
    %777 = arith.addf %776, %83 : vector<1x5xf32>
    %778 = arith.cmpf ogt, %777, %772 : vector<1x5xf32>
    %779 = arith.select %778, %777, %772 : vector<1x5xi1>, vector<1x5xf32>
    %cst_171 = arith.constant 4.000000e+00 : f32
    %780 = vector.broadcast %cst_171 : f32 to vector<1x5xf32>
    %781 = arith.select %778, %780, %774 : vector<1x5xi1>, vector<1x5xf32>
    %782 = arith.addf %779, %713 : vector<1x5xf32>
    %783 = vector.shape_cast %717 : vector<1x1xi1> to vector<1x1xi1>
    %784 = vector.broadcast %783 : vector<1x1xi1> to vector<1x5xi1>
    %785 = arith.select %784, %782, %708 : vector<1x5xi1>, vector<1x5xf32>
    %786 = vector.shape_cast %717 : vector<1x1xi1> to vector<1x1xi1>
    %787 = vector.broadcast %786 : vector<1x1xi1> to vector<1x5xi1>
    %788 = arith.select %787, %781, %94 : vector<1x5xi1>, vector<1x5xf32>
    %c9_172 = arith.constant 9 : index
    %c0_173 = arith.constant 0 : index
    %789 = vector.load %arg12[%c9_172, %c0_173] : memref<16x5xf32, #tpu.memory_space<vmem>>, vector<1x5xf32>
    tpu.vector_store %arg12[%c9_172, %c0_173], %788 {strides = array<i32>} : memref<16x5xf32, #tpu.memory_space<vmem>>, vector<1x5xf32>,
    %c10 = arith.constant 10 : index
    %c0_174 = arith.constant 0 : index
    %790 = vector.load %arg11[%c10, %c0_174] : memref<16x5xf32, #tpu.memory_space<vmem>>, vector<1x5xf32>
    %c0_175 = arith.constant 0 : index
    %c10_176 = arith.constant 10 : index
    %c0_177 = arith.constant 0 : index
    %791 = vector.load %arg5[%c0_175, %c10_176, %c0_177] : memref<1x16x1xf32, #tpu.memory_space<vmem>>, vector<1x1x1xf32>
    %792 = vector.shape_cast %791 : vector<1x1x1xf32> to vector<1x1xf32>
    %cst_178 = arith.constant 5.000000e-01 : f32
    %793 = vector.broadcast %cst_178 : f32 to vector<1x1xf32>
    %794 = arith.cmpf ogt, %792, %793 : vector<1x1xf32>
    %cst_179 = arith.constant dense<0xFF800000> : vector<1xf32>
    %795 = vector.multi_reduction <maximumf>, %749, %cst_179 [1] : vector<1x5xf32> to vector<1xf32>
    %796 = vector.shape_cast %795 : vector<1xf32> to vector<1x1xf32>
    %797 = vector.broadcast %796 : vector<1x1xf32> to vector<1x5xf32>
    %798 = arith.subf %749, %797 : vector<1x5xf32>
    %799 = math.exp %798 : vector<1x5xf32>
    %800 = vector.extract_strided_slice %799 {offsets = [0, 0], sizes = [1, 1], strides = [1, 1]} : vector<1x5xf32> to vector<1x1xf32>
    %801 = vector.broadcast %800 : vector<1x1xf32> to vector<1x5xf32>
    %802 = arith.mulf %801, %85 : vector<1x5xf32>
    %803 = vector.extract_strided_slice %799 {offsets = [0, 1], sizes = [1, 1], strides = [1, 1]} : vector<1x5xf32> to vector<1x1xf32>
    %804 = vector.broadcast %803 : vector<1x1xf32> to vector<1x5xf32>
    %805 = arith.mulf %804, %87 : vector<1x5xf32>
    %806 = arith.addf %802, %805 : vector<1x5xf32>
    %807 = vector.extract_strided_slice %799 {offsets = [0, 2], sizes = [1, 1], strides = [1, 1]} : vector<1x5xf32> to vector<1x1xf32>
    %808 = vector.broadcast %807 : vector<1x1xf32> to vector<1x5xf32>
    %809 = arith.mulf %808, %89 : vector<1x5xf32>
    %810 = arith.addf %806, %809 : vector<1x5xf32>
    %811 = vector.extract_strided_slice %799 {offsets = [0, 3], sizes = [1, 1], strides = [1, 1]} : vector<1x5xf32> to vector<1x1xf32>
    %812 = vector.broadcast %811 : vector<1x1xf32> to vector<1x5xf32>
    %813 = arith.mulf %812, %91 : vector<1x5xf32>
    %814 = arith.addf %810, %813 : vector<1x5xf32>
    %815 = vector.extract_strided_slice %799 {offsets = [0, 4], sizes = [1, 1], strides = [1, 1]} : vector<1x5xf32> to vector<1x1xf32>
    %816 = vector.broadcast %815 : vector<1x1xf32> to vector<1x5xf32>
    %817 = arith.mulf %816, %93 : vector<1x5xf32>
    %818 = arith.addf %814, %817 : vector<1x5xf32>
    %819 = vector.broadcast %796 : vector<1x1xf32> to vector<1x5xf32>
    %820 = arith.addf %790, %819 : vector<1x5xf32>
    %821 = arith.addf %820, %78 : vector<1x5xf32>
    %822 = math.log %818 : vector<1x5xf32>
    %823 = arith.addf %821, %822 : vector<1x5xf32>
    %824 = vector.shape_cast %794 : vector<1x1xi1> to vector<1x1xi1>
    %825 = vector.broadcast %824 : vector<1x1xi1> to vector<1x5xi1>
    %826 = arith.select %825, %823, %749 : vector<1x5xi1>, vector<1x5xf32>
    %827 = vector.extract_strided_slice %785 {offsets = [0, 0], sizes = [1, 1], strides = [1, 1]} : vector<1x5xf32> to vector<1x1xf32>
    %828 = vector.broadcast %827 : vector<1x1xf32> to vector<1x5xf32>
    %829 = arith.addf %828, %79 : vector<1x5xf32>
    %cst_180 = arith.constant 0.000000e+00 : f32
    %830 = vector.broadcast %cst_180 : f32 to vector<1x5xf32>
    %831 = vector.extract_strided_slice %785 {offsets = [0, 1], sizes = [1, 1], strides = [1, 1]} : vector<1x5xf32> to vector<1x1xf32>
    %832 = vector.broadcast %831 : vector<1x1xf32> to vector<1x5xf32>
    %833 = arith.addf %832, %80 : vector<1x5xf32>
    %834 = arith.cmpf ogt, %833, %829 : vector<1x5xf32>
    %835 = arith.select %834, %833, %829 : vector<1x5xi1>, vector<1x5xf32>
    %cst_181 = arith.constant 1.000000e+00 : f32
    %836 = vector.broadcast %cst_181 : f32 to vector<1x5xf32>
    %837 = arith.select %834, %836, %830 : vector<1x5xi1>, vector<1x5xf32>
    %838 = vector.extract_strided_slice %785 {offsets = [0, 2], sizes = [1, 1], strides = [1, 1]} : vector<1x5xf32> to vector<1x1xf32>
    %839 = vector.broadcast %838 : vector<1x1xf32> to vector<1x5xf32>
    %840 = arith.addf %839, %81 : vector<1x5xf32>
    %841 = arith.cmpf ogt, %840, %835 : vector<1x5xf32>
    %842 = arith.select %841, %840, %835 : vector<1x5xi1>, vector<1x5xf32>
    %cst_182 = arith.constant 2.000000e+00 : f32
    %843 = vector.broadcast %cst_182 : f32 to vector<1x5xf32>
    %844 = arith.select %841, %843, %837 : vector<1x5xi1>, vector<1x5xf32>
    %845 = vector.extract_strided_slice %785 {offsets = [0, 3], sizes = [1, 1], strides = [1, 1]} : vector<1x5xf32> to vector<1x1xf32>
    %846 = vector.broadcast %845 : vector<1x1xf32> to vector<1x5xf32>
    %847 = arith.addf %846, %82 : vector<1x5xf32>
    %848 = arith.cmpf ogt, %847, %842 : vector<1x5xf32>
    %849 = arith.select %848, %847, %842 : vector<1x5xi1>, vector<1x5xf32>
    %cst_183 = arith.constant 3.000000e+00 : f32
    %850 = vector.broadcast %cst_183 : f32 to vector<1x5xf32>
    %851 = arith.select %848, %850, %844 : vector<1x5xi1>, vector<1x5xf32>
    %852 = vector.extract_strided_slice %785 {offsets = [0, 4], sizes = [1, 1], strides = [1, 1]} : vector<1x5xf32> to vector<1x1xf32>
    %853 = vector.broadcast %852 : vector<1x1xf32> to vector<1x5xf32>
    %854 = arith.addf %853, %83 : vector<1x5xf32>
    %855 = arith.cmpf ogt, %854, %849 : vector<1x5xf32>
    %856 = arith.select %855, %854, %849 : vector<1x5xi1>, vector<1x5xf32>
    %cst_184 = arith.constant 4.000000e+00 : f32
    %857 = vector.broadcast %cst_184 : f32 to vector<1x5xf32>
    %858 = arith.select %855, %857, %851 : vector<1x5xi1>, vector<1x5xf32>
    %859 = arith.addf %856, %790 : vector<1x5xf32>
    %860 = vector.shape_cast %794 : vector<1x1xi1> to vector<1x1xi1>
    %861 = vector.broadcast %860 : vector<1x1xi1> to vector<1x5xi1>
    %862 = arith.select %861, %859, %785 : vector<1x5xi1>, vector<1x5xf32>
    %863 = vector.shape_cast %794 : vector<1x1xi1> to vector<1x1xi1>
    %864 = vector.broadcast %863 : vector<1x1xi1> to vector<1x5xi1>
    %865 = arith.select %864, %858, %94 : vector<1x5xi1>, vector<1x5xf32>
    %c10_185 = arith.constant 10 : index
    %c0_186 = arith.constant 0 : index
    %866 = vector.load %arg12[%c10_185, %c0_186] : memref<16x5xf32, #tpu.memory_space<vmem>>, vector<1x5xf32>
    tpu.vector_store %arg12[%c10_185, %c0_186], %865 {strides = array<i32>} : memref<16x5xf32, #tpu.memory_space<vmem>>, vector<1x5xf32>,
    %c11 = arith.constant 11 : index
    %c0_187 = arith.constant 0 : index
    %867 = vector.load %arg11[%c11, %c0_187] : memref<16x5xf32, #tpu.memory_space<vmem>>, vector<1x5xf32>
    %c0_188 = arith.constant 0 : index
    %c11_189 = arith.constant 11 : index
    %c0_190 = arith.constant 0 : index
    %868 = vector.load %arg5[%c0_188, %c11_189, %c0_190] : memref<1x16x1xf32, #tpu.memory_space<vmem>>, vector<1x1x1xf32>
    %869 = vector.shape_cast %868 : vector<1x1x1xf32> to vector<1x1xf32>
    %cst_191 = arith.constant 5.000000e-01 : f32
    %870 = vector.broadcast %cst_191 : f32 to vector<1x1xf32>
    %871 = arith.cmpf ogt, %869, %870 : vector<1x1xf32>
    %cst_192 = arith.constant dense<0xFF800000> : vector<1xf32>
    %872 = vector.multi_reduction <maximumf>, %826, %cst_192 [1] : vector<1x5xf32> to vector<1xf32>
    %873 = vector.shape_cast %872 : vector<1xf32> to vector<1x1xf32>
    %874 = vector.broadcast %873 : vector<1x1xf32> to vector<1x5xf32>
    %875 = arith.subf %826, %874 : vector<1x5xf32>
    %876 = math.exp %875 : vector<1x5xf32>
    %877 = vector.extract_strided_slice %876 {offsets = [0, 0], sizes = [1, 1], strides = [1, 1]} : vector<1x5xf32> to vector<1x1xf32>
    %878 = vector.broadcast %877 : vector<1x1xf32> to vector<1x5xf32>
    %879 = arith.mulf %878, %85 : vector<1x5xf32>
    %880 = vector.extract_strided_slice %876 {offsets = [0, 1], sizes = [1, 1], strides = [1, 1]} : vector<1x5xf32> to vector<1x1xf32>
    %881 = vector.broadcast %880 : vector<1x1xf32> to vector<1x5xf32>
    %882 = arith.mulf %881, %87 : vector<1x5xf32>
    %883 = arith.addf %879, %882 : vector<1x5xf32>
    %884 = vector.extract_strided_slice %876 {offsets = [0, 2], sizes = [1, 1], strides = [1, 1]} : vector<1x5xf32> to vector<1x1xf32>
    %885 = vector.broadcast %884 : vector<1x1xf32> to vector<1x5xf32>
    %886 = arith.mulf %885, %89 : vector<1x5xf32>
    %887 = arith.addf %883, %886 : vector<1x5xf32>
    %888 = vector.extract_strided_slice %876 {offsets = [0, 3], sizes = [1, 1], strides = [1, 1]} : vector<1x5xf32> to vector<1x1xf32>
    %889 = vector.broadcast %888 : vector<1x1xf32> to vector<1x5xf32>
    %890 = arith.mulf %889, %91 : vector<1x5xf32>
    %891 = arith.addf %887, %890 : vector<1x5xf32>
    %892 = vector.extract_strided_slice %876 {offsets = [0, 4], sizes = [1, 1], strides = [1, 1]} : vector<1x5xf32> to vector<1x1xf32>
    %893 = vector.broadcast %892 : vector<1x1xf32> to vector<1x5xf32>
    %894 = arith.mulf %893, %93 : vector<1x5xf32>
    %895 = arith.addf %891, %894 : vector<1x5xf32>
    %896 = vector.broadcast %873 : vector<1x1xf32> to vector<1x5xf32>
    %897 = arith.addf %867, %896 : vector<1x5xf32>
    %898 = arith.addf %897, %78 : vector<1x5xf32>
    %899 = math.log %895 : vector<1x5xf32>
    %900 = arith.addf %898, %899 : vector<1x5xf32>
    %901 = vector.shape_cast %871 : vector<1x1xi1> to vector<1x1xi1>
    %902 = vector.broadcast %901 : vector<1x1xi1> to vector<1x5xi1>
    %903 = arith.select %902, %900, %826 : vector<1x5xi1>, vector<1x5xf32>
    %904 = vector.extract_strided_slice %862 {offsets = [0, 0], sizes = [1, 1], strides = [1, 1]} : vector<1x5xf32> to vector<1x1xf32>
    %905 = vector.broadcast %904 : vector<1x1xf32> to vector<1x5xf32>
    %906 = arith.addf %905, %79 : vector<1x5xf32>
    %cst_193 = arith.constant 0.000000e+00 : f32
    %907 = vector.broadcast %cst_193 : f32 to vector<1x5xf32>
    %908 = vector.extract_strided_slice %862 {offsets = [0, 1], sizes = [1, 1], strides = [1, 1]} : vector<1x5xf32> to vector<1x1xf32>
    %909 = vector.broadcast %908 : vector<1x1xf32> to vector<1x5xf32>
    %910 = arith.addf %909, %80 : vector<1x5xf32>
    %911 = arith.cmpf ogt, %910, %906 : vector<1x5xf32>
    %912 = arith.select %911, %910, %906 : vector<1x5xi1>, vector<1x5xf32>
    %cst_194 = arith.constant 1.000000e+00 : f32
    %913 = vector.broadcast %cst_194 : f32 to vector<1x5xf32>
    %914 = arith.select %911, %913, %907 : vector<1x5xi1>, vector<1x5xf32>
    %915 = vector.extract_strided_slice %862 {offsets = [0, 2], sizes = [1, 1], strides = [1, 1]} : vector<1x5xf32> to vector<1x1xf32>
    %916 = vector.broadcast %915 : vector<1x1xf32> to vector<1x5xf32>
    %917 = arith.addf %916, %81 : vector<1x5xf32>
    %918 = arith.cmpf ogt, %917, %912 : vector<1x5xf32>
    %919 = arith.select %918, %917, %912 : vector<1x5xi1>, vector<1x5xf32>
    %cst_195 = arith.constant 2.000000e+00 : f32
    %920 = vector.broadcast %cst_195 : f32 to vector<1x5xf32>
    %921 = arith.select %918, %920, %914 : vector<1x5xi1>, vector<1x5xf32>
    %922 = vector.extract_strided_slice %862 {offsets = [0, 3], sizes = [1, 1], strides = [1, 1]} : vector<1x5xf32> to vector<1x1xf32>
    %923 = vector.broadcast %922 : vector<1x1xf32> to vector<1x5xf32>
    %924 = arith.addf %923, %82 : vector<1x5xf32>
    %925 = arith.cmpf ogt, %924, %919 : vector<1x5xf32>
    %926 = arith.select %925, %924, %919 : vector<1x5xi1>, vector<1x5xf32>
    %cst_196 = arith.constant 3.000000e+00 : f32
    %927 = vector.broadcast %cst_196 : f32 to vector<1x5xf32>
    %928 = arith.select %925, %927, %921 : vector<1x5xi1>, vector<1x5xf32>
    %929 = vector.extract_strided_slice %862 {offsets = [0, 4], sizes = [1, 1], strides = [1, 1]} : vector<1x5xf32> to vector<1x1xf32>
    %930 = vector.broadcast %929 : vector<1x1xf32> to vector<1x5xf32>
    %931 = arith.addf %930, %83 : vector<1x5xf32>
    %932 = arith.cmpf ogt, %931, %926 : vector<1x5xf32>
    %933 = arith.select %932, %931, %926 : vector<1x5xi1>, vector<1x5xf32>
    %cst_197 = arith.constant 4.000000e+00 : f32
    %934 = vector.broadcast %cst_197 : f32 to vector<1x5xf32>
    %935 = arith.select %932, %934, %928 : vector<1x5xi1>, vector<1x5xf32>
    %936 = arith.addf %933, %867 : vector<1x5xf32>
    %937 = vector.shape_cast %871 : vector<1x1xi1> to vector<1x1xi1>
    %938 = vector.broadcast %937 : vector<1x1xi1> to vector<1x5xi1>
    %939 = arith.select %938, %936, %862 : vector<1x5xi1>, vector<1x5xf32>
    %940 = vector.shape_cast %871 : vector<1x1xi1> to vector<1x1xi1>
    %941 = vector.broadcast %940 : vector<1x1xi1> to vector<1x5xi1>
    %942 = arith.select %941, %935, %94 : vector<1x5xi1>, vector<1x5xf32>
    %c11_198 = arith.constant 11 : index
    %c0_199 = arith.constant 0 : index
    %943 = vector.load %arg12[%c11_198, %c0_199] : memref<16x5xf32, #tpu.memory_space<vmem>>, vector<1x5xf32>
    tpu.vector_store %arg12[%c11_198, %c0_199], %942 {strides = array<i32>} : memref<16x5xf32, #tpu.memory_space<vmem>>, vector<1x5xf32>,
    %c12 = arith.constant 12 : index
    %c0_200 = arith.constant 0 : index
    %944 = vector.load %arg11[%c12, %c0_200] : memref<16x5xf32, #tpu.memory_space<vmem>>, vector<1x5xf32>
    %c0_201 = arith.constant 0 : index
    %c12_202 = arith.constant 12 : index
    %c0_203 = arith.constant 0 : index
    %945 = vector.load %arg5[%c0_201, %c12_202, %c0_203] : memref<1x16x1xf32, #tpu.memory_space<vmem>>, vector<1x1x1xf32>
    %946 = vector.shape_cast %945 : vector<1x1x1xf32> to vector<1x1xf32>
    %cst_204 = arith.constant 5.000000e-01 : f32
    %947 = vector.broadcast %cst_204 : f32 to vector<1x1xf32>
    %948 = arith.cmpf ogt, %946, %947 : vector<1x1xf32>
    %cst_205 = arith.constant dense<0xFF800000> : vector<1xf32>
    %949 = vector.multi_reduction <maximumf>, %903, %cst_205 [1] : vector<1x5xf32> to vector<1xf32>
    %950 = vector.shape_cast %949 : vector<1xf32> to vector<1x1xf32>
    %951 = vector.broadcast %950 : vector<1x1xf32> to vector<1x5xf32>
    %952 = arith.subf %903, %951 : vector<1x5xf32>
    %953 = math.exp %952 : vector<1x5xf32>
    %954 = vector.extract_strided_slice %953 {offsets = [0, 0], sizes = [1, 1], strides = [1, 1]} : vector<1x5xf32> to vector<1x1xf32>
    %955 = vector.broadcast %954 : vector<1x1xf32> to vector<1x5xf32>
    %956 = arith.mulf %955, %85 : vector<1x5xf32>
    %957 = vector.extract_strided_slice %953 {offsets = [0, 1], sizes = [1, 1], strides = [1, 1]} : vector<1x5xf32> to vector<1x1xf32>
    %958 = vector.broadcast %957 : vector<1x1xf32> to vector<1x5xf32>
    %959 = arith.mulf %958, %87 : vector<1x5xf32>
    %960 = arith.addf %956, %959 : vector<1x5xf32>
    %961 = vector.extract_strided_slice %953 {offsets = [0, 2], sizes = [1, 1], strides = [1, 1]} : vector<1x5xf32> to vector<1x1xf32>
    %962 = vector.broadcast %961 : vector<1x1xf32> to vector<1x5xf32>
    %963 = arith.mulf %962, %89 : vector<1x5xf32>
    %964 = arith.addf %960, %963 : vector<1x5xf32>
    %965 = vector.extract_strided_slice %953 {offsets = [0, 3], sizes = [1, 1], strides = [1, 1]} : vector<1x5xf32> to vector<1x1xf32>
    %966 = vector.broadcast %965 : vector<1x1xf32> to vector<1x5xf32>
    %967 = arith.mulf %966, %91 : vector<1x5xf32>
    %968 = arith.addf %964, %967 : vector<1x5xf32>
    %969 = vector.extract_strided_slice %953 {offsets = [0, 4], sizes = [1, 1], strides = [1, 1]} : vector<1x5xf32> to vector<1x1xf32>
    %970 = vector.broadcast %969 : vector<1x1xf32> to vector<1x5xf32>
    %971 = arith.mulf %970, %93 : vector<1x5xf32>
    %972 = arith.addf %968, %971 : vector<1x5xf32>
    %973 = vector.broadcast %950 : vector<1x1xf32> to vector<1x5xf32>
    %974 = arith.addf %944, %973 : vector<1x5xf32>
    %975 = arith.addf %974, %78 : vector<1x5xf32>
    %976 = math.log %972 : vector<1x5xf32>
    %977 = arith.addf %975, %976 : vector<1x5xf32>
    %978 = vector.shape_cast %948 : vector<1x1xi1> to vector<1x1xi1>
    %979 = vector.broadcast %978 : vector<1x1xi1> to vector<1x5xi1>
    %980 = arith.select %979, %977, %903 : vector<1x5xi1>, vector<1x5xf32>
    %981 = vector.extract_strided_slice %939 {offsets = [0, 0], sizes = [1, 1], strides = [1, 1]} : vector<1x5xf32> to vector<1x1xf32>
    %982 = vector.broadcast %981 : vector<1x1xf32> to vector<1x5xf32>
    %983 = arith.addf %982, %79 : vector<1x5xf32>
    %cst_206 = arith.constant 0.000000e+00 : f32
    %984 = vector.broadcast %cst_206 : f32 to vector<1x5xf32>
    %985 = vector.extract_strided_slice %939 {offsets = [0, 1], sizes = [1, 1], strides = [1, 1]} : vector<1x5xf32> to vector<1x1xf32>
    %986 = vector.broadcast %985 : vector<1x1xf32> to vector<1x5xf32>
    %987 = arith.addf %986, %80 : vector<1x5xf32>
    %988 = arith.cmpf ogt, %987, %983 : vector<1x5xf32>
    %989 = arith.select %988, %987, %983 : vector<1x5xi1>, vector<1x5xf32>
    %cst_207 = arith.constant 1.000000e+00 : f32
    %990 = vector.broadcast %cst_207 : f32 to vector<1x5xf32>
    %991 = arith.select %988, %990, %984 : vector<1x5xi1>, vector<1x5xf32>
    %992 = vector.extract_strided_slice %939 {offsets = [0, 2], sizes = [1, 1], strides = [1, 1]} : vector<1x5xf32> to vector<1x1xf32>
    %993 = vector.broadcast %992 : vector<1x1xf32> to vector<1x5xf32>
    %994 = arith.addf %993, %81 : vector<1x5xf32>
    %995 = arith.cmpf ogt, %994, %989 : vector<1x5xf32>
    %996 = arith.select %995, %994, %989 : vector<1x5xi1>, vector<1x5xf32>
    %cst_208 = arith.constant 2.000000e+00 : f32
    %997 = vector.broadcast %cst_208 : f32 to vector<1x5xf32>
    %998 = arith.select %995, %997, %991 : vector<1x5xi1>, vector<1x5xf32>
    %999 = vector.extract_strided_slice %939 {offsets = [0, 3], sizes = [1, 1], strides = [1, 1]} : vector<1x5xf32> to vector<1x1xf32>
    %1000 = vector.broadcast %999 : vector<1x1xf32> to vector<1x5xf32>
    %1001 = arith.addf %1000, %82 : vector<1x5xf32>
    %1002 = arith.cmpf ogt, %1001, %996 : vector<1x5xf32>
    %1003 = arith.select %1002, %1001, %996 : vector<1x5xi1>, vector<1x5xf32>
    %cst_209 = arith.constant 3.000000e+00 : f32
    %1004 = vector.broadcast %cst_209 : f32 to vector<1x5xf32>
    %1005 = arith.select %1002, %1004, %998 : vector<1x5xi1>, vector<1x5xf32>
    %1006 = vector.extract_strided_slice %939 {offsets = [0, 4], sizes = [1, 1], strides = [1, 1]} : vector<1x5xf32> to vector<1x1xf32>
    %1007 = vector.broadcast %1006 : vector<1x1xf32> to vector<1x5xf32>
    %1008 = arith.addf %1007, %83 : vector<1x5xf32>
    %1009 = arith.cmpf ogt, %1008, %1003 : vector<1x5xf32>
    %1010 = arith.select %1009, %1008, %1003 : vector<1x5xi1>, vector<1x5xf32>
    %cst_210 = arith.constant 4.000000e+00 : f32
    %1011 = vector.broadcast %cst_210 : f32 to vector<1x5xf32>
    %1012 = arith.select %1009, %1011, %1005 : vector<1x5xi1>, vector<1x5xf32>
    %1013 = arith.addf %1010, %944 : vector<1x5xf32>
    %1014 = vector.shape_cast %948 : vector<1x1xi1> to vector<1x1xi1>
    %1015 = vector.broadcast %1014 : vector<1x1xi1> to vector<1x5xi1>
    %1016 = arith.select %1015, %1013, %939 : vector<1x5xi1>, vector<1x5xf32>
    %1017 = vector.shape_cast %948 : vector<1x1xi1> to vector<1x1xi1>
    %1018 = vector.broadcast %1017 : vector<1x1xi1> to vector<1x5xi1>
    %1019 = arith.select %1018, %1012, %94 : vector<1x5xi1>, vector<1x5xf32>
    %c12_211 = arith.constant 12 : index
    %c0_212 = arith.constant 0 : index
    %1020 = vector.load %arg12[%c12_211, %c0_212] : memref<16x5xf32, #tpu.memory_space<vmem>>, vector<1x5xf32>
    tpu.vector_store %arg12[%c12_211, %c0_212], %1019 {strides = array<i32>} : memref<16x5xf32, #tpu.memory_space<vmem>>, vector<1x5xf32>,
    %c13 = arith.constant 13 : index
    %c0_213 = arith.constant 0 : index
    %1021 = vector.load %arg11[%c13, %c0_213] : memref<16x5xf32, #tpu.memory_space<vmem>>, vector<1x5xf32>
    %c0_214 = arith.constant 0 : index
    %c13_215 = arith.constant 13 : index
    %c0_216 = arith.constant 0 : index
    %1022 = vector.load %arg5[%c0_214, %c13_215, %c0_216] : memref<1x16x1xf32, #tpu.memory_space<vmem>>, vector<1x1x1xf32>
    %1023 = vector.shape_cast %1022 : vector<1x1x1xf32> to vector<1x1xf32>
    %cst_217 = arith.constant 5.000000e-01 : f32
    %1024 = vector.broadcast %cst_217 : f32 to vector<1x1xf32>
    %1025 = arith.cmpf ogt, %1023, %1024 : vector<1x1xf32>
    %cst_218 = arith.constant dense<0xFF800000> : vector<1xf32>
    %1026 = vector.multi_reduction <maximumf>, %980, %cst_218 [1] : vector<1x5xf32> to vector<1xf32>
    %1027 = vector.shape_cast %1026 : vector<1xf32> to vector<1x1xf32>
    %1028 = vector.broadcast %1027 : vector<1x1xf32> to vector<1x5xf32>
    %1029 = arith.subf %980, %1028 : vector<1x5xf32>
    %1030 = math.exp %1029 : vector<1x5xf32>
    %1031 = vector.extract_strided_slice %1030 {offsets = [0, 0], sizes = [1, 1], strides = [1, 1]} : vector<1x5xf32> to vector<1x1xf32>
    %1032 = vector.broadcast %1031 : vector<1x1xf32> to vector<1x5xf32>
    %1033 = arith.mulf %1032, %85 : vector<1x5xf32>
    %1034 = vector.extract_strided_slice %1030 {offsets = [0, 1], sizes = [1, 1], strides = [1, 1]} : vector<1x5xf32> to vector<1x1xf32>
    %1035 = vector.broadcast %1034 : vector<1x1xf32> to vector<1x5xf32>
    %1036 = arith.mulf %1035, %87 : vector<1x5xf32>
    %1037 = arith.addf %1033, %1036 : vector<1x5xf32>
    %1038 = vector.extract_strided_slice %1030 {offsets = [0, 2], sizes = [1, 1], strides = [1, 1]} : vector<1x5xf32> to vector<1x1xf32>
    %1039 = vector.broadcast %1038 : vector<1x1xf32> to vector<1x5xf32>
    %1040 = arith.mulf %1039, %89 : vector<1x5xf32>
    %1041 = arith.addf %1037, %1040 : vector<1x5xf32>
    %1042 = vector.extract_strided_slice %1030 {offsets = [0, 3], sizes = [1, 1], strides = [1, 1]} : vector<1x5xf32> to vector<1x1xf32>
    %1043 = vector.broadcast %1042 : vector<1x1xf32> to vector<1x5xf32>
    %1044 = arith.mulf %1043, %91 : vector<1x5xf32>
    %1045 = arith.addf %1041, %1044 : vector<1x5xf32>
    %1046 = vector.extract_strided_slice %1030 {offsets = [0, 4], sizes = [1, 1], strides = [1, 1]} : vector<1x5xf32> to vector<1x1xf32>
    %1047 = vector.broadcast %1046 : vector<1x1xf32> to vector<1x5xf32>
    %1048 = arith.mulf %1047, %93 : vector<1x5xf32>
    %1049 = arith.addf %1045, %1048 : vector<1x5xf32>
    %1050 = vector.broadcast %1027 : vector<1x1xf32> to vector<1x5xf32>
    %1051 = arith.addf %1021, %1050 : vector<1x5xf32>
    %1052 = arith.addf %1051, %78 : vector<1x5xf32>
    %1053 = math.log %1049 : vector<1x5xf32>
    %1054 = arith.addf %1052, %1053 : vector<1x5xf32>
    %1055 = vector.shape_cast %1025 : vector<1x1xi1> to vector<1x1xi1>
    %1056 = vector.broadcast %1055 : vector<1x1xi1> to vector<1x5xi1>
    %1057 = arith.select %1056, %1054, %980 : vector<1x5xi1>, vector<1x5xf32>
    %1058 = vector.extract_strided_slice %1016 {offsets = [0, 0], sizes = [1, 1], strides = [1, 1]} : vector<1x5xf32> to vector<1x1xf32>
    %1059 = vector.broadcast %1058 : vector<1x1xf32> to vector<1x5xf32>
    %1060 = arith.addf %1059, %79 : vector<1x5xf32>
    %cst_219 = arith.constant 0.000000e+00 : f32
    %1061 = vector.broadcast %cst_219 : f32 to vector<1x5xf32>
    %1062 = vector.extract_strided_slice %1016 {offsets = [0, 1], sizes = [1, 1], strides = [1, 1]} : vector<1x5xf32> to vector<1x1xf32>
    %1063 = vector.broadcast %1062 : vector<1x1xf32> to vector<1x5xf32>
    %1064 = arith.addf %1063, %80 : vector<1x5xf32>
    %1065 = arith.cmpf ogt, %1064, %1060 : vector<1x5xf32>
    %1066 = arith.select %1065, %1064, %1060 : vector<1x5xi1>, vector<1x5xf32>
    %cst_220 = arith.constant 1.000000e+00 : f32
    %1067 = vector.broadcast %cst_220 : f32 to vector<1x5xf32>
    %1068 = arith.select %1065, %1067, %1061 : vector<1x5xi1>, vector<1x5xf32>
    %1069 = vector.extract_strided_slice %1016 {offsets = [0, 2], sizes = [1, 1], strides = [1, 1]} : vector<1x5xf32> to vector<1x1xf32>
    %1070 = vector.broadcast %1069 : vector<1x1xf32> to vector<1x5xf32>
    %1071 = arith.addf %1070, %81 : vector<1x5xf32>
    %1072 = arith.cmpf ogt, %1071, %1066 : vector<1x5xf32>
    %1073 = arith.select %1072, %1071, %1066 : vector<1x5xi1>, vector<1x5xf32>
    %cst_221 = arith.constant 2.000000e+00 : f32
    %1074 = vector.broadcast %cst_221 : f32 to vector<1x5xf32>
    %1075 = arith.select %1072, %1074, %1068 : vector<1x5xi1>, vector<1x5xf32>
    %1076 = vector.extract_strided_slice %1016 {offsets = [0, 3], sizes = [1, 1], strides = [1, 1]} : vector<1x5xf32> to vector<1x1xf32>
    %1077 = vector.broadcast %1076 : vector<1x1xf32> to vector<1x5xf32>
    %1078 = arith.addf %1077, %82 : vector<1x5xf32>
    %1079 = arith.cmpf ogt, %1078, %1073 : vector<1x5xf32>
    %1080 = arith.select %1079, %1078, %1073 : vector<1x5xi1>, vector<1x5xf32>
    %cst_222 = arith.constant 3.000000e+00 : f32
    %1081 = vector.broadcast %cst_222 : f32 to vector<1x5xf32>
    %1082 = arith.select %1079, %1081, %1075 : vector<1x5xi1>, vector<1x5xf32>
    %1083 = vector.extract_strided_slice %1016 {offsets = [0, 4], sizes = [1, 1], strides = [1, 1]} : vector<1x5xf32> to vector<1x1xf32>
    %1084 = vector.broadcast %1083 : vector<1x1xf32> to vector<1x5xf32>
    %1085 = arith.addf %1084, %83 : vector<1x5xf32>
    %1086 = arith.cmpf ogt, %1085, %1080 : vector<1x5xf32>
    %1087 = arith.select %1086, %1085, %1080 : vector<1x5xi1>, vector<1x5xf32>
    %cst_223 = arith.constant 4.000000e+00 : f32
    %1088 = vector.broadcast %cst_223 : f32 to vector<1x5xf32>
    %1089 = arith.select %1086, %1088, %1082 : vector<1x5xi1>, vector<1x5xf32>
    %1090 = arith.addf %1087, %1021 : vector<1x5xf32>
    %1091 = vector.shape_cast %1025 : vector<1x1xi1> to vector<1x1xi1>
    %1092 = vector.broadcast %1091 : vector<1x1xi1> to vector<1x5xi1>
    %1093 = arith.select %1092, %1090, %1016 : vector<1x5xi1>, vector<1x5xf32>
    %1094 = vector.shape_cast %1025 : vector<1x1xi1> to vector<1x1xi1>
    %1095 = vector.broadcast %1094 : vector<1x1xi1> to vector<1x5xi1>
    %1096 = arith.select %1095, %1089, %94 : vector<1x5xi1>, vector<1x5xf32>
    %c13_224 = arith.constant 13 : index
    %c0_225 = arith.constant 0 : index
    %1097 = vector.load %arg12[%c13_224, %c0_225] : memref<16x5xf32, #tpu.memory_space<vmem>>, vector<1x5xf32>
    tpu.vector_store %arg12[%c13_224, %c0_225], %1096 {strides = array<i32>} : memref<16x5xf32, #tpu.memory_space<vmem>>, vector<1x5xf32>,
    %c14 = arith.constant 14 : index
    %c0_226 = arith.constant 0 : index
    %1098 = vector.load %arg11[%c14, %c0_226] : memref<16x5xf32, #tpu.memory_space<vmem>>, vector<1x5xf32>
    %c0_227 = arith.constant 0 : index
    %c14_228 = arith.constant 14 : index
    %c0_229 = arith.constant 0 : index
    %1099 = vector.load %arg5[%c0_227, %c14_228, %c0_229] : memref<1x16x1xf32, #tpu.memory_space<vmem>>, vector<1x1x1xf32>
    %1100 = vector.shape_cast %1099 : vector<1x1x1xf32> to vector<1x1xf32>
    %cst_230 = arith.constant 5.000000e-01 : f32
    %1101 = vector.broadcast %cst_230 : f32 to vector<1x1xf32>
    %1102 = arith.cmpf ogt, %1100, %1101 : vector<1x1xf32>
    %cst_231 = arith.constant dense<0xFF800000> : vector<1xf32>
    %1103 = vector.multi_reduction <maximumf>, %1057, %cst_231 [1] : vector<1x5xf32> to vector<1xf32>
    %1104 = vector.shape_cast %1103 : vector<1xf32> to vector<1x1xf32>
    %1105 = vector.broadcast %1104 : vector<1x1xf32> to vector<1x5xf32>
    %1106 = arith.subf %1057, %1105 : vector<1x5xf32>
    %1107 = math.exp %1106 : vector<1x5xf32>
    %1108 = vector.extract_strided_slice %1107 {offsets = [0, 0], sizes = [1, 1], strides = [1, 1]} : vector<1x5xf32> to vector<1x1xf32>
    %1109 = vector.broadcast %1108 : vector<1x1xf32> to vector<1x5xf32>
    %1110 = arith.mulf %1109, %85 : vector<1x5xf32>
    %1111 = vector.extract_strided_slice %1107 {offsets = [0, 1], sizes = [1, 1], strides = [1, 1]} : vector<1x5xf32> to vector<1x1xf32>
    %1112 = vector.broadcast %1111 : vector<1x1xf32> to vector<1x5xf32>
    %1113 = arith.mulf %1112, %87 : vector<1x5xf32>
    %1114 = arith.addf %1110, %1113 : vector<1x5xf32>
    %1115 = vector.extract_strided_slice %1107 {offsets = [0, 2], sizes = [1, 1], strides = [1, 1]} : vector<1x5xf32> to vector<1x1xf32>
    %1116 = vector.broadcast %1115 : vector<1x1xf32> to vector<1x5xf32>
    %1117 = arith.mulf %1116, %89 : vector<1x5xf32>
    %1118 = arith.addf %1114, %1117 : vector<1x5xf32>
    %1119 = vector.extract_strided_slice %1107 {offsets = [0, 3], sizes = [1, 1], strides = [1, 1]} : vector<1x5xf32> to vector<1x1xf32>
    %1120 = vector.broadcast %1119 : vector<1x1xf32> to vector<1x5xf32>
    %1121 = arith.mulf %1120, %91 : vector<1x5xf32>
    %1122 = arith.addf %1118, %1121 : vector<1x5xf32>
    %1123 = vector.extract_strided_slice %1107 {offsets = [0, 4], sizes = [1, 1], strides = [1, 1]} : vector<1x5xf32> to vector<1x1xf32>
    %1124 = vector.broadcast %1123 : vector<1x1xf32> to vector<1x5xf32>
    %1125 = arith.mulf %1124, %93 : vector<1x5xf32>
    %1126 = arith.addf %1122, %1125 : vector<1x5xf32>
    %1127 = vector.broadcast %1104 : vector<1x1xf32> to vector<1x5xf32>
    %1128 = arith.addf %1098, %1127 : vector<1x5xf32>
    %1129 = arith.addf %1128, %78 : vector<1x5xf32>
    %1130 = math.log %1126 : vector<1x5xf32>
    %1131 = arith.addf %1129, %1130 : vector<1x5xf32>
    %1132 = vector.shape_cast %1102 : vector<1x1xi1> to vector<1x1xi1>
    %1133 = vector.broadcast %1132 : vector<1x1xi1> to vector<1x5xi1>
    %1134 = arith.select %1133, %1131, %1057 : vector<1x5xi1>, vector<1x5xf32>
    %1135 = vector.extract_strided_slice %1093 {offsets = [0, 0], sizes = [1, 1], strides = [1, 1]} : vector<1x5xf32> to vector<1x1xf32>
    %1136 = vector.broadcast %1135 : vector<1x1xf32> to vector<1x5xf32>
    %1137 = arith.addf %1136, %79 : vector<1x5xf32>
    %cst_232 = arith.constant 0.000000e+00 : f32
    %1138 = vector.broadcast %cst_232 : f32 to vector<1x5xf32>
    %1139 = vector.extract_strided_slice %1093 {offsets = [0, 1], sizes = [1, 1], strides = [1, 1]} : vector<1x5xf32> to vector<1x1xf32>
    %1140 = vector.broadcast %1139 : vector<1x1xf32> to vector<1x5xf32>
    %1141 = arith.addf %1140, %80 : vector<1x5xf32>
    %1142 = arith.cmpf ogt, %1141, %1137 : vector<1x5xf32>
    %1143 = arith.select %1142, %1141, %1137 : vector<1x5xi1>, vector<1x5xf32>
    %cst_233 = arith.constant 1.000000e+00 : f32
    %1144 = vector.broadcast %cst_233 : f32 to vector<1x5xf32>
    %1145 = arith.select %1142, %1144, %1138 : vector<1x5xi1>, vector<1x5xf32>
    %1146 = vector.extract_strided_slice %1093 {offsets = [0, 2], sizes = [1, 1], strides = [1, 1]} : vector<1x5xf32> to vector<1x1xf32>
    %1147 = vector.broadcast %1146 : vector<1x1xf32> to vector<1x5xf32>
    %1148 = arith.addf %1147, %81 : vector<1x5xf32>
    %1149 = arith.cmpf ogt, %1148, %1143 : vector<1x5xf32>
    %1150 = arith.select %1149, %1148, %1143 : vector<1x5xi1>, vector<1x5xf32>
    %cst_234 = arith.constant 2.000000e+00 : f32
    %1151 = vector.broadcast %cst_234 : f32 to vector<1x5xf32>
    %1152 = arith.select %1149, %1151, %1145 : vector<1x5xi1>, vector<1x5xf32>
    %1153 = vector.extract_strided_slice %1093 {offsets = [0, 3], sizes = [1, 1], strides = [1, 1]} : vector<1x5xf32> to vector<1x1xf32>
    %1154 = vector.broadcast %1153 : vector<1x1xf32> to vector<1x5xf32>
    %1155 = arith.addf %1154, %82 : vector<1x5xf32>
    %1156 = arith.cmpf ogt, %1155, %1150 : vector<1x5xf32>
    %1157 = arith.select %1156, %1155, %1150 : vector<1x5xi1>, vector<1x5xf32>
    %cst_235 = arith.constant 3.000000e+00 : f32
    %1158 = vector.broadcast %cst_235 : f32 to vector<1x5xf32>
    %1159 = arith.select %1156, %1158, %1152 : vector<1x5xi1>, vector<1x5xf32>
    %1160 = vector.extract_strided_slice %1093 {offsets = [0, 4], sizes = [1, 1], strides = [1, 1]} : vector<1x5xf32> to vector<1x1xf32>
    %1161 = vector.broadcast %1160 : vector<1x1xf32> to vector<1x5xf32>
    %1162 = arith.addf %1161, %83 : vector<1x5xf32>
    %1163 = arith.cmpf ogt, %1162, %1157 : vector<1x5xf32>
    %1164 = arith.select %1163, %1162, %1157 : vector<1x5xi1>, vector<1x5xf32>
    %cst_236 = arith.constant 4.000000e+00 : f32
    %1165 = vector.broadcast %cst_236 : f32 to vector<1x5xf32>
    %1166 = arith.select %1163, %1165, %1159 : vector<1x5xi1>, vector<1x5xf32>
    %1167 = arith.addf %1164, %1098 : vector<1x5xf32>
    %1168 = vector.shape_cast %1102 : vector<1x1xi1> to vector<1x1xi1>
    %1169 = vector.broadcast %1168 : vector<1x1xi1> to vector<1x5xi1>
    %1170 = arith.select %1169, %1167, %1093 : vector<1x5xi1>, vector<1x5xf32>
    %1171 = vector.shape_cast %1102 : vector<1x1xi1> to vector<1x1xi1>
    %1172 = vector.broadcast %1171 : vector<1x1xi1> to vector<1x5xi1>
    %1173 = arith.select %1172, %1166, %94 : vector<1x5xi1>, vector<1x5xf32>
    %c14_237 = arith.constant 14 : index
    %c0_238 = arith.constant 0 : index
    %1174 = vector.load %arg12[%c14_237, %c0_238] : memref<16x5xf32, #tpu.memory_space<vmem>>, vector<1x5xf32>
    tpu.vector_store %arg12[%c14_237, %c0_238], %1173 {strides = array<i32>} : memref<16x5xf32, #tpu.memory_space<vmem>>, vector<1x5xf32>,
    %c15 = arith.constant 15 : index
    %c0_239 = arith.constant 0 : index
    %1175 = vector.load %arg11[%c15, %c0_239] : memref<16x5xf32, #tpu.memory_space<vmem>>, vector<1x5xf32>
    %c0_240 = arith.constant 0 : index
    %c15_241 = arith.constant 15 : index
    %c0_242 = arith.constant 0 : index
    %1176 = vector.load %arg5[%c0_240, %c15_241, %c0_242] : memref<1x16x1xf32, #tpu.memory_space<vmem>>, vector<1x1x1xf32>
    %1177 = vector.shape_cast %1176 : vector<1x1x1xf32> to vector<1x1xf32>
    %cst_243 = arith.constant 5.000000e-01 : f32
    %1178 = vector.broadcast %cst_243 : f32 to vector<1x1xf32>
    %1179 = arith.cmpf ogt, %1177, %1178 : vector<1x1xf32>
    %cst_244 = arith.constant dense<0xFF800000> : vector<1xf32>
    %1180 = vector.multi_reduction <maximumf>, %1134, %cst_244 [1] : vector<1x5xf32> to vector<1xf32>
    %1181 = vector.shape_cast %1180 : vector<1xf32> to vector<1x1xf32>
    %1182 = vector.broadcast %1181 : vector<1x1xf32> to vector<1x5xf32>
    %1183 = arith.subf %1134, %1182 : vector<1x5xf32>
    %1184 = math.exp %1183 : vector<1x5xf32>
    %1185 = vector.extract_strided_slice %1184 {offsets = [0, 0], sizes = [1, 1], strides = [1, 1]} : vector<1x5xf32> to vector<1x1xf32>
    %1186 = vector.broadcast %1185 : vector<1x1xf32> to vector<1x5xf32>
    %1187 = arith.mulf %1186, %85 : vector<1x5xf32>
    %1188 = vector.extract_strided_slice %1184 {offsets = [0, 1], sizes = [1, 1], strides = [1, 1]} : vector<1x5xf32> to vector<1x1xf32>
    %1189 = vector.broadcast %1188 : vector<1x1xf32> to vector<1x5xf32>
    %1190 = arith.mulf %1189, %87 : vector<1x5xf32>
    %1191 = arith.addf %1187, %1190 : vector<1x5xf32>
    %1192 = vector.extract_strided_slice %1184 {offsets = [0, 2], sizes = [1, 1], strides = [1, 1]} : vector<1x5xf32> to vector<1x1xf32>
    %1193 = vector.broadcast %1192 : vector<1x1xf32> to vector<1x5xf32>
    %1194 = arith.mulf %1193, %89 : vector<1x5xf32>
    %1195 = arith.addf %1191, %1194 : vector<1x5xf32>
    %1196 = vector.extract_strided_slice %1184 {offsets = [0, 3], sizes = [1, 1], strides = [1, 1]} : vector<1x5xf32> to vector<1x1xf32>
    %1197 = vector.broadcast %1196 : vector<1x1xf32> to vector<1x5xf32>
    %1198 = arith.mulf %1197, %91 : vector<1x5xf32>
    %1199 = arith.addf %1195, %1198 : vector<1x5xf32>
    %1200 = vector.extract_strided_slice %1184 {offsets = [0, 4], sizes = [1, 1], strides = [1, 1]} : vector<1x5xf32> to vector<1x1xf32>
    %1201 = vector.broadcast %1200 : vector<1x1xf32> to vector<1x5xf32>
    %1202 = arith.mulf %1201, %93 : vector<1x5xf32>
    %1203 = arith.addf %1199, %1202 : vector<1x5xf32>
    %1204 = vector.broadcast %1181 : vector<1x1xf32> to vector<1x5xf32>
    %1205 = arith.addf %1175, %1204 : vector<1x5xf32>
    %1206 = arith.addf %1205, %78 : vector<1x5xf32>
    %1207 = math.log %1203 : vector<1x5xf32>
    %1208 = arith.addf %1206, %1207 : vector<1x5xf32>
    %1209 = vector.shape_cast %1179 : vector<1x1xi1> to vector<1x1xi1>
    %1210 = vector.broadcast %1209 : vector<1x1xi1> to vector<1x5xi1>
    %1211 = arith.select %1210, %1208, %1134 : vector<1x5xi1>, vector<1x5xf32>
    %1212 = vector.extract_strided_slice %1170 {offsets = [0, 0], sizes = [1, 1], strides = [1, 1]} : vector<1x5xf32> to vector<1x1xf32>
    %1213 = vector.broadcast %1212 : vector<1x1xf32> to vector<1x5xf32>
    %1214 = arith.addf %1213, %79 : vector<1x5xf32>
    %cst_245 = arith.constant 0.000000e+00 : f32
    %1215 = vector.broadcast %cst_245 : f32 to vector<1x5xf32>
    %1216 = vector.extract_strided_slice %1170 {offsets = [0, 1], sizes = [1, 1], strides = [1, 1]} : vector<1x5xf32> to vector<1x1xf32>
    %1217 = vector.broadcast %1216 : vector<1x1xf32> to vector<1x5xf32>
    %1218 = arith.addf %1217, %80 : vector<1x5xf32>
    %1219 = arith.cmpf ogt, %1218, %1214 : vector<1x5xf32>
    %1220 = arith.select %1219, %1218, %1214 : vector<1x5xi1>, vector<1x5xf32>
    %cst_246 = arith.constant 1.000000e+00 : f32
    %1221 = vector.broadcast %cst_246 : f32 to vector<1x5xf32>
    %1222 = arith.select %1219, %1221, %1215 : vector<1x5xi1>, vector<1x5xf32>
    %1223 = vector.extract_strided_slice %1170 {offsets = [0, 2], sizes = [1, 1], strides = [1, 1]} : vector<1x5xf32> to vector<1x1xf32>
    %1224 = vector.broadcast %1223 : vector<1x1xf32> to vector<1x5xf32>
    %1225 = arith.addf %1224, %81 : vector<1x5xf32>
    %1226 = arith.cmpf ogt, %1225, %1220 : vector<1x5xf32>
    %1227 = arith.select %1226, %1225, %1220 : vector<1x5xi1>, vector<1x5xf32>
    %cst_247 = arith.constant 2.000000e+00 : f32
    %1228 = vector.broadcast %cst_247 : f32 to vector<1x5xf32>
    %1229 = arith.select %1226, %1228, %1222 : vector<1x5xi1>, vector<1x5xf32>
    %1230 = vector.extract_strided_slice %1170 {offsets = [0, 3], sizes = [1, 1], strides = [1, 1]} : vector<1x5xf32> to vector<1x1xf32>
    %1231 = vector.broadcast %1230 : vector<1x1xf32> to vector<1x5xf32>
    %1232 = arith.addf %1231, %82 : vector<1x5xf32>
    %1233 = arith.cmpf ogt, %1232, %1227 : vector<1x5xf32>
    %1234 = arith.select %1233, %1232, %1227 : vector<1x5xi1>, vector<1x5xf32>
    %cst_248 = arith.constant 3.000000e+00 : f32
    %1235 = vector.broadcast %cst_248 : f32 to vector<1x5xf32>
    %1236 = arith.select %1233, %1235, %1229 : vector<1x5xi1>, vector<1x5xf32>
    %1237 = vector.extract_strided_slice %1170 {offsets = [0, 4], sizes = [1, 1], strides = [1, 1]} : vector<1x5xf32> to vector<1x1xf32>
    %1238 = vector.broadcast %1237 : vector<1x1xf32> to vector<1x5xf32>
    %1239 = arith.addf %1238, %83 : vector<1x5xf32>
    %1240 = arith.cmpf ogt, %1239, %1234 : vector<1x5xf32>
    %1241 = arith.select %1240, %1239, %1234 : vector<1x5xi1>, vector<1x5xf32>
    %cst_249 = arith.constant 4.000000e+00 : f32
    %1242 = vector.broadcast %cst_249 : f32 to vector<1x5xf32>
    %1243 = arith.select %1240, %1242, %1236 : vector<1x5xi1>, vector<1x5xf32>
    %1244 = arith.addf %1241, %1175 : vector<1x5xf32>
    %1245 = vector.shape_cast %1179 : vector<1x1xi1> to vector<1x1xi1>
    %1246 = vector.broadcast %1245 : vector<1x1xi1> to vector<1x5xi1>
    %1247 = arith.select %1246, %1244, %1170 : vector<1x5xi1>, vector<1x5xf32>
    %1248 = vector.shape_cast %1179 : vector<1x1xi1> to vector<1x1xi1>
    %1249 = vector.broadcast %1248 : vector<1x1xi1> to vector<1x5xi1>
    %1250 = arith.select %1249, %1243, %94 : vector<1x5xi1>, vector<1x5xf32>
    %c15_250 = arith.constant 15 : index
    %c0_251 = arith.constant 0 : index
    %1251 = vector.load %arg12[%c15_250, %c0_251] : memref<16x5xf32, #tpu.memory_space<vmem>>, vector<1x5xf32>
    tpu.vector_store %arg12[%c15_250, %c0_251], %1250 {strides = array<i32>} : memref<16x5xf32, #tpu.memory_space<vmem>>, vector<1x5xf32>,
    %1252 = arith.addf %1211, %13 : vector<1x5xf32>
    %cst_252 = arith.constant dense<0xFF800000> : vector<1xf32>
    %1253 = vector.multi_reduction <maximumf>, %1252, %cst_252 [1] : vector<1x5xf32> to vector<1xf32>
    %1254 = vector.shape_cast %1253 : vector<1xf32> to vector<1x1xf32>
    %1255 = vector.broadcast %1254 : vector<1x1xf32> to vector<1x5xf32>
    %1256 = arith.subf %1252, %1255 : vector<1x5xf32>
    %1257 = math.exp %1256 : vector<1x5xf32>
    %cst_253 = arith.constant dense<0.000000e+00> : vector<1xf32>
    %1258 = vector.multi_reduction <add>, %1257, %cst_253 [1] : vector<1x5xf32> to vector<1xf32>
    %1259 = vector.shape_cast %1258 : vector<1xf32> to vector<1x1xf32>
    %1260 = math.log %1259 : vector<1x1xf32>
    %1261 = arith.addf %1254, %1260 : vector<1x1xf32>
    %1262 = arith.subf %1261, %76 : vector<1x1xf32>
    %c0_254 = arith.constant 0 : index
    %c0_255 = arith.constant 0 : index
    %c0_256 = arith.constant 0 : index
    %1263 = vector.load %arg9[%c0_254, %c0_255, %c0_256] : memref<1x1x1xf32, #tpu.memory_space<vmem>>, vector<1x1x1xf32>
    %1264 = vector.shape_cast %1263 : vector<1x1x1xf32> to vector<1x1xf32>
    %1265 = vector.shape_cast %1262 : vector<1x1xf32> to vector<1x1x1xf32>
    tpu.vector_store %arg9[%c0_254, %c0_255, %c0_256], %1265 {strides = array<i32>} : memref<1x1x1xf32, #tpu.memory_space<vmem>>, vector<1x1x1xf32>,
    %1266 = arith.addf %1247, %13 : vector<1x5xf32>
    %cst_257 = arith.constant dense<0xFF800000> : vector<1xf32>
    %1267 = vector.multi_reduction <maximumf>, %1266, %cst_257 [1] : vector<1x5xf32> to vector<1xf32>
    %1268 = vector.shape_cast %1267 : vector<1xf32> to vector<1x1xf32>
    %1269 = vector.broadcast %1268 : vector<1x1xf32> to vector<1x5xf32>
    %1270 = arith.cmpf oeq, %1266, %1269 : vector<1x5xf32>
    %cst_258 = arith.constant 5.000000e+00 : f32
    %1271 = vector.broadcast %cst_258 : f32 to vector<1x5xf32>
    %1272 = arith.select %1270, %94, %1271 : vector<1x5xi1>, vector<1x5xf32>
    %cst_259 = arith.constant dense<0x7F800000> : vector<1xf32>
    %1273 = vector.multi_reduction <minimumf>, %1272, %cst_259 [1] : vector<1x5xf32> to vector<1xf32>
    %1274 = vector.shape_cast %1273 : vector<1xf32> to vector<1x1xf32>
    %1275 = tpu.iota {dimensions = array<i32: 1>} : vector<1x128xi32>
    %1276 = arith.sitofp %1275 : vector<1x128xi32> to vector<1x128xf32>
    %cst_260 = arith.constant 1.500000e+01 : f32
    %1277 = vector.broadcast %cst_260 : f32 to vector<1x128xf32>
    %1278 = arith.cmpf oeq, %1276, %1277 : vector<1x128xf32>
    %cst_261 = arith.constant 0.000000e+00 : f32
    %1279 = vector.shape_cast %1274 : vector<1x1xf32> to vector<1x1xf32>
    %1280 = vector.broadcast %1279 : vector<1x1xf32> to vector<1x128xf32>
    %1281 = vector.broadcast %cst_261 : f32 to vector<1x128xf32>
    %1282 = arith.select %1278, %1280, %1281 : vector<1x128xi1>, vector<1x128xf32>
    %c15_262 = arith.constant 15 : index
    %c0_263 = arith.constant 0 : index
    %1283 = vector.load %arg12[%c15_262, %c0_263] : memref<16x5xf32, #tpu.memory_space<vmem>>, vector<1x5xf32>
    %1284 = vector.broadcast %1274 : vector<1x1xf32> to vector<1x5xf32>
    %1285 = arith.cmpf oeq, %94, %1284 : vector<1x5xf32>
    %cst_264 = arith.constant 0.000000e+00 : f32
    %1286 = vector.broadcast %cst_264 : f32 to vector<1x5xf32>
    %1287 = arith.select %1285, %1283, %1286 : vector<1x5xi1>, vector<1x5xf32>
    %cst_265 = arith.constant dense<0.000000e+00> : vector<1xf32>
    %1288 = vector.multi_reduction <add>, %1287, %cst_265 [1] : vector<1x5xf32> to vector<1xf32>
    %1289 = vector.shape_cast %1288 : vector<1xf32> to vector<1x1xf32>
    %cst_266 = arith.constant 1.400000e+01 : f32
    %1290 = vector.broadcast %cst_266 : f32 to vector<1x128xf32>
    %1291 = arith.cmpf oeq, %1276, %1290 : vector<1x128xf32>
    %1292 = vector.shape_cast %1289 : vector<1x1xf32> to vector<1x1xf32>
    %1293 = vector.broadcast %1292 : vector<1x1xf32> to vector<1x128xf32>
    %1294 = arith.select %1291, %1293, %1282 : vector<1x128xi1>, vector<1x128xf32>
    %c14_267 = arith.constant 14 : index
    %c0_268 = arith.constant 0 : index
    %1295 = vector.load %arg12[%c14_267, %c0_268] : memref<16x5xf32, #tpu.memory_space<vmem>>, vector<1x5xf32>
    %1296 = vector.broadcast %1289 : vector<1x1xf32> to vector<1x5xf32>
    %1297 = arith.cmpf oeq, %94, %1296 : vector<1x5xf32>
    %cst_269 = arith.constant 0.000000e+00 : f32
    %1298 = vector.broadcast %cst_269 : f32 to vector<1x5xf32>
    %1299 = arith.select %1297, %1295, %1298 : vector<1x5xi1>, vector<1x5xf32>
    %cst_270 = arith.constant dense<0.000000e+00> : vector<1xf32>
    %1300 = vector.multi_reduction <add>, %1299, %cst_270 [1] : vector<1x5xf32> to vector<1xf32>
    %1301 = vector.shape_cast %1300 : vector<1xf32> to vector<1x1xf32>
    %cst_271 = arith.constant 1.300000e+01 : f32
    %1302 = vector.broadcast %cst_271 : f32 to vector<1x128xf32>
    %1303 = arith.cmpf oeq, %1276, %1302 : vector<1x128xf32>
    %1304 = vector.shape_cast %1301 : vector<1x1xf32> to vector<1x1xf32>
    %1305 = vector.broadcast %1304 : vector<1x1xf32> to vector<1x128xf32>
    %1306 = arith.select %1303, %1305, %1294 : vector<1x128xi1>, vector<1x128xf32>
    %c13_272 = arith.constant 13 : index
    %c0_273 = arith.constant 0 : index
    %1307 = vector.load %arg12[%c13_272, %c0_273] : memref<16x5xf32, #tpu.memory_space<vmem>>, vector<1x5xf32>
    %1308 = vector.broadcast %1301 : vector<1x1xf32> to vector<1x5xf32>
    %1309 = arith.cmpf oeq, %94, %1308 : vector<1x5xf32>
    %cst_274 = arith.constant 0.000000e+00 : f32
    %1310 = vector.broadcast %cst_274 : f32 to vector<1x5xf32>
    %1311 = arith.select %1309, %1307, %1310 : vector<1x5xi1>, vector<1x5xf32>
    %cst_275 = arith.constant dense<0.000000e+00> : vector<1xf32>
    %1312 = vector.multi_reduction <add>, %1311, %cst_275 [1] : vector<1x5xf32> to vector<1xf32>
    %1313 = vector.shape_cast %1312 : vector<1xf32> to vector<1x1xf32>
    %cst_276 = arith.constant 1.200000e+01 : f32
    %1314 = vector.broadcast %cst_276 : f32 to vector<1x128xf32>
    %1315 = arith.cmpf oeq, %1276, %1314 : vector<1x128xf32>
    %1316 = vector.shape_cast %1313 : vector<1x1xf32> to vector<1x1xf32>
    %1317 = vector.broadcast %1316 : vector<1x1xf32> to vector<1x128xf32>
    %1318 = arith.select %1315, %1317, %1306 : vector<1x128xi1>, vector<1x128xf32>
    %c12_277 = arith.constant 12 : index
    %c0_278 = arith.constant 0 : index
    %1319 = vector.load %arg12[%c12_277, %c0_278] : memref<16x5xf32, #tpu.memory_space<vmem>>, vector<1x5xf32>
    %1320 = vector.broadcast %1313 : vector<1x1xf32> to vector<1x5xf32>
    %1321 = arith.cmpf oeq, %94, %1320 : vector<1x5xf32>
    %cst_279 = arith.constant 0.000000e+00 : f32
    %1322 = vector.broadcast %cst_279 : f32 to vector<1x5xf32>
    %1323 = arith.select %1321, %1319, %1322 : vector<1x5xi1>, vector<1x5xf32>
    %cst_280 = arith.constant dense<0.000000e+00> : vector<1xf32>
    %1324 = vector.multi_reduction <add>, %1323, %cst_280 [1] : vector<1x5xf32> to vector<1xf32>
    %1325 = vector.shape_cast %1324 : vector<1xf32> to vector<1x1xf32>
    %cst_281 = arith.constant 1.100000e+01 : f32
    %1326 = vector.broadcast %cst_281 : f32 to vector<1x128xf32>
    %1327 = arith.cmpf oeq, %1276, %1326 : vector<1x128xf32>
    %1328 = vector.shape_cast %1325 : vector<1x1xf32> to vector<1x1xf32>
    %1329 = vector.broadcast %1328 : vector<1x1xf32> to vector<1x128xf32>
    %1330 = arith.select %1327, %1329, %1318 : vector<1x128xi1>, vector<1x128xf32>
    %c11_282 = arith.constant 11 : index
    %c0_283 = arith.constant 0 : index
    %1331 = vector.load %arg12[%c11_282, %c0_283] : memref<16x5xf32, #tpu.memory_space<vmem>>, vector<1x5xf32>
    %1332 = vector.broadcast %1325 : vector<1x1xf32> to vector<1x5xf32>
    %1333 = arith.cmpf oeq, %94, %1332 : vector<1x5xf32>
    %cst_284 = arith.constant 0.000000e+00 : f32
    %1334 = vector.broadcast %cst_284 : f32 to vector<1x5xf32>
    %1335 = arith.select %1333, %1331, %1334 : vector<1x5xi1>, vector<1x5xf32>
    %cst_285 = arith.constant dense<0.000000e+00> : vector<1xf32>
    %1336 = vector.multi_reduction <add>, %1335, %cst_285 [1] : vector<1x5xf32> to vector<1xf32>
    %1337 = vector.shape_cast %1336 : vector<1xf32> to vector<1x1xf32>
    %cst_286 = arith.constant 1.000000e+01 : f32
    %1338 = vector.broadcast %cst_286 : f32 to vector<1x128xf32>
    %1339 = arith.cmpf oeq, %1276, %1338 : vector<1x128xf32>
    %1340 = vector.shape_cast %1337 : vector<1x1xf32> to vector<1x1xf32>
    %1341 = vector.broadcast %1340 : vector<1x1xf32> to vector<1x128xf32>
    %1342 = arith.select %1339, %1341, %1330 : vector<1x128xi1>, vector<1x128xf32>
    %c10_287 = arith.constant 10 : index
    %c0_288 = arith.constant 0 : index
    %1343 = vector.load %arg12[%c10_287, %c0_288] : memref<16x5xf32, #tpu.memory_space<vmem>>, vector<1x5xf32>
    %1344 = vector.broadcast %1337 : vector<1x1xf32> to vector<1x5xf32>
    %1345 = arith.cmpf oeq, %94, %1344 : vector<1x5xf32>
    %cst_289 = arith.constant 0.000000e+00 : f32
    %1346 = vector.broadcast %cst_289 : f32 to vector<1x5xf32>
    %1347 = arith.select %1345, %1343, %1346 : vector<1x5xi1>, vector<1x5xf32>
    %cst_290 = arith.constant dense<0.000000e+00> : vector<1xf32>
    %1348 = vector.multi_reduction <add>, %1347, %cst_290 [1] : vector<1x5xf32> to vector<1xf32>
    %1349 = vector.shape_cast %1348 : vector<1xf32> to vector<1x1xf32>
    %cst_291 = arith.constant 9.000000e+00 : f32
    %1350 = vector.broadcast %cst_291 : f32 to vector<1x128xf32>
    %1351 = arith.cmpf oeq, %1276, %1350 : vector<1x128xf32>
    %1352 = vector.shape_cast %1349 : vector<1x1xf32> to vector<1x1xf32>
    %1353 = vector.broadcast %1352 : vector<1x1xf32> to vector<1x128xf32>
    %1354 = arith.select %1351, %1353, %1342 : vector<1x128xi1>, vector<1x128xf32>
    %c9_292 = arith.constant 9 : index
    %c0_293 = arith.constant 0 : index
    %1355 = vector.load %arg12[%c9_292, %c0_293] : memref<16x5xf32, #tpu.memory_space<vmem>>, vector<1x5xf32>
    %1356 = vector.broadcast %1349 : vector<1x1xf32> to vector<1x5xf32>
    %1357 = arith.cmpf oeq, %94, %1356 : vector<1x5xf32>
    %cst_294 = arith.constant 0.000000e+00 : f32
    %1358 = vector.broadcast %cst_294 : f32 to vector<1x5xf32>
    %1359 = arith.select %1357, %1355, %1358 : vector<1x5xi1>, vector<1x5xf32>
    %cst_295 = arith.constant dense<0.000000e+00> : vector<1xf32>
    %1360 = vector.multi_reduction <add>, %1359, %cst_295 [1] : vector<1x5xf32> to vector<1xf32>
    %1361 = vector.shape_cast %1360 : vector<1xf32> to vector<1x1xf32>
    %cst_296 = arith.constant 8.000000e+00 : f32
    %1362 = vector.broadcast %cst_296 : f32 to vector<1x128xf32>
    %1363 = arith.cmpf oeq, %1276, %1362 : vector<1x128xf32>
    %1364 = vector.shape_cast %1361 : vector<1x1xf32> to vector<1x1xf32>
    %1365 = vector.broadcast %1364 : vector<1x1xf32> to vector<1x128xf32>
    %1366 = arith.select %1363, %1365, %1354 : vector<1x128xi1>, vector<1x128xf32>
    %c8_297 = arith.constant 8 : index
    %c0_298 = arith.constant 0 : index
    %1367 = vector.load %arg12[%c8_297, %c0_298] : memref<16x5xf32, #tpu.memory_space<vmem>>, vector<1x5xf32>
    %1368 = vector.broadcast %1361 : vector<1x1xf32> to vector<1x5xf32>
    %1369 = arith.cmpf oeq, %94, %1368 : vector<1x5xf32>
    %cst_299 = arith.constant 0.000000e+00 : f32
    %1370 = vector.broadcast %cst_299 : f32 to vector<1x5xf32>
    %1371 = arith.select %1369, %1367, %1370 : vector<1x5xi1>, vector<1x5xf32>
    %cst_300 = arith.constant dense<0.000000e+00> : vector<1xf32>
    %1372 = vector.multi_reduction <add>, %1371, %cst_300 [1] : vector<1x5xf32> to vector<1xf32>
    %1373 = vector.shape_cast %1372 : vector<1xf32> to vector<1x1xf32>
    %cst_301 = arith.constant 7.000000e+00 : f32
    %1374 = vector.broadcast %cst_301 : f32 to vector<1x128xf32>
    %1375 = arith.cmpf oeq, %1276, %1374 : vector<1x128xf32>
    %1376 = vector.shape_cast %1373 : vector<1x1xf32> to vector<1x1xf32>
    %1377 = vector.broadcast %1376 : vector<1x1xf32> to vector<1x128xf32>
    %1378 = arith.select %1375, %1377, %1366 : vector<1x128xi1>, vector<1x128xf32>
    %c7_302 = arith.constant 7 : index
    %c0_303 = arith.constant 0 : index
    %1379 = vector.load %arg12[%c7_302, %c0_303] : memref<16x5xf32, #tpu.memory_space<vmem>>, vector<1x5xf32>
    %1380 = vector.broadcast %1373 : vector<1x1xf32> to vector<1x5xf32>
    %1381 = arith.cmpf oeq, %94, %1380 : vector<1x5xf32>
    %cst_304 = arith.constant 0.000000e+00 : f32
    %1382 = vector.broadcast %cst_304 : f32 to vector<1x5xf32>
    %1383 = arith.select %1381, %1379, %1382 : vector<1x5xi1>, vector<1x5xf32>
    %cst_305 = arith.constant dense<0.000000e+00> : vector<1xf32>
    %1384 = vector.multi_reduction <add>, %1383, %cst_305 [1] : vector<1x5xf32> to vector<1xf32>
    %1385 = vector.shape_cast %1384 : vector<1xf32> to vector<1x1xf32>
    %cst_306 = arith.constant 6.000000e+00 : f32
    %1386 = vector.broadcast %cst_306 : f32 to vector<1x128xf32>
    %1387 = arith.cmpf oeq, %1276, %1386 : vector<1x128xf32>
    %1388 = vector.shape_cast %1385 : vector<1x1xf32> to vector<1x1xf32>
    %1389 = vector.broadcast %1388 : vector<1x1xf32> to vector<1x128xf32>
    %1390 = arith.select %1387, %1389, %1378 : vector<1x128xi1>, vector<1x128xf32>
    %c6_307 = arith.constant 6 : index
    %c0_308 = arith.constant 0 : index
    %1391 = vector.load %arg12[%c6_307, %c0_308] : memref<16x5xf32, #tpu.memory_space<vmem>>, vector<1x5xf32>
    %1392 = vector.broadcast %1385 : vector<1x1xf32> to vector<1x5xf32>
    %1393 = arith.cmpf oeq, %94, %1392 : vector<1x5xf32>
    %cst_309 = arith.constant 0.000000e+00 : f32
    %1394 = vector.broadcast %cst_309 : f32 to vector<1x5xf32>
    %1395 = arith.select %1393, %1391, %1394 : vector<1x5xi1>, vector<1x5xf32>
    %cst_310 = arith.constant dense<0.000000e+00> : vector<1xf32>
    %1396 = vector.multi_reduction <add>, %1395, %cst_310 [1] : vector<1x5xf32> to vector<1xf32>
    %1397 = vector.shape_cast %1396 : vector<1xf32> to vector<1x1xf32>
    %cst_311 = arith.constant 5.000000e+00 : f32
    %1398 = vector.broadcast %cst_311 : f32 to vector<1x128xf32>
    %1399 = arith.cmpf oeq, %1276, %1398 : vector<1x128xf32>
    %1400 = vector.shape_cast %1397 : vector<1x1xf32> to vector<1x1xf32>
    %1401 = vector.broadcast %1400 : vector<1x1xf32> to vector<1x128xf32>
    %1402 = arith.select %1399, %1401, %1390 : vector<1x128xi1>, vector<1x128xf32>
    %c5_312 = arith.constant 5 : index
    %c0_313 = arith.constant 0 : index
    %1403 = vector.load %arg12[%c5_312, %c0_313] : memref<16x5xf32, #tpu.memory_space<vmem>>, vector<1x5xf32>
    %1404 = vector.broadcast %1397 : vector<1x1xf32> to vector<1x5xf32>
    %1405 = arith.cmpf oeq, %94, %1404 : vector<1x5xf32>
    %cst_314 = arith.constant 0.000000e+00 : f32
    %1406 = vector.broadcast %cst_314 : f32 to vector<1x5xf32>
    %1407 = arith.select %1405, %1403, %1406 : vector<1x5xi1>, vector<1x5xf32>
    %cst_315 = arith.constant dense<0.000000e+00> : vector<1xf32>
    %1408 = vector.multi_reduction <add>, %1407, %cst_315 [1] : vector<1x5xf32> to vector<1xf32>
    %1409 = vector.shape_cast %1408 : vector<1xf32> to vector<1x1xf32>
    %cst_316 = arith.constant 4.000000e+00 : f32
    %1410 = vector.broadcast %cst_316 : f32 to vector<1x128xf32>
    %1411 = arith.cmpf oeq, %1276, %1410 : vector<1x128xf32>
    %1412 = vector.shape_cast %1409 : vector<1x1xf32> to vector<1x1xf32>
    %1413 = vector.broadcast %1412 : vector<1x1xf32> to vector<1x128xf32>
    %1414 = arith.select %1411, %1413, %1402 : vector<1x128xi1>, vector<1x128xf32>
    %c4_317 = arith.constant 4 : index
    %c0_318 = arith.constant 0 : index
    %1415 = vector.load %arg12[%c4_317, %c0_318] : memref<16x5xf32, #tpu.memory_space<vmem>>, vector<1x5xf32>
    %1416 = vector.broadcast %1409 : vector<1x1xf32> to vector<1x5xf32>
    %1417 = arith.cmpf oeq, %94, %1416 : vector<1x5xf32>
    %cst_319 = arith.constant 0.000000e+00 : f32
    %1418 = vector.broadcast %cst_319 : f32 to vector<1x5xf32>
    %1419 = arith.select %1417, %1415, %1418 : vector<1x5xi1>, vector<1x5xf32>
    %cst_320 = arith.constant dense<0.000000e+00> : vector<1xf32>
    %1420 = vector.multi_reduction <add>, %1419, %cst_320 [1] : vector<1x5xf32> to vector<1xf32>
    %1421 = vector.shape_cast %1420 : vector<1xf32> to vector<1x1xf32>
    %cst_321 = arith.constant 3.000000e+00 : f32
    %1422 = vector.broadcast %cst_321 : f32 to vector<1x128xf32>
    %1423 = arith.cmpf oeq, %1276, %1422 : vector<1x128xf32>
    %1424 = vector.shape_cast %1421 : vector<1x1xf32> to vector<1x1xf32>
    %1425 = vector.broadcast %1424 : vector<1x1xf32> to vector<1x128xf32>
    %1426 = arith.select %1423, %1425, %1414 : vector<1x128xi1>, vector<1x128xf32>
    %c3_322 = arith.constant 3 : index
    %c0_323 = arith.constant 0 : index
    %1427 = vector.load %arg12[%c3_322, %c0_323] : memref<16x5xf32, #tpu.memory_space<vmem>>, vector<1x5xf32>
    %1428 = vector.broadcast %1421 : vector<1x1xf32> to vector<1x5xf32>
    %1429 = arith.cmpf oeq, %94, %1428 : vector<1x5xf32>
    %cst_324 = arith.constant 0.000000e+00 : f32
    %1430 = vector.broadcast %cst_324 : f32 to vector<1x5xf32>
    %1431 = arith.select %1429, %1427, %1430 : vector<1x5xi1>, vector<1x5xf32>
    %cst_325 = arith.constant dense<0.000000e+00> : vector<1xf32>
    %1432 = vector.multi_reduction <add>, %1431, %cst_325 [1] : vector<1x5xf32> to vector<1xf32>
    %1433 = vector.shape_cast %1432 : vector<1xf32> to vector<1x1xf32>
    %cst_326 = arith.constant 2.000000e+00 : f32
    %1434 = vector.broadcast %cst_326 : f32 to vector<1x128xf32>
    %1435 = arith.cmpf oeq, %1276, %1434 : vector<1x128xf32>
    %1436 = vector.shape_cast %1433 : vector<1x1xf32> to vector<1x1xf32>
    %1437 = vector.broadcast %1436 : vector<1x1xf32> to vector<1x128xf32>
    %1438 = arith.select %1435, %1437, %1426 : vector<1x128xi1>, vector<1x128xf32>
    %c2_327 = arith.constant 2 : index
    %c0_328 = arith.constant 0 : index
    %1439 = vector.load %arg12[%c2_327, %c0_328] : memref<16x5xf32, #tpu.memory_space<vmem>>, vector<1x5xf32>
    %1440 = vector.broadcast %1433 : vector<1x1xf32> to vector<1x5xf32>
    %1441 = arith.cmpf oeq, %94, %1440 : vector<1x5xf32>
    %cst_329 = arith.constant 0.000000e+00 : f32
    %1442 = vector.broadcast %cst_329 : f32 to vector<1x5xf32>
    %1443 = arith.select %1441, %1439, %1442 : vector<1x5xi1>, vector<1x5xf32>
    %cst_330 = arith.constant dense<0.000000e+00> : vector<1xf32>
    %1444 = vector.multi_reduction <add>, %1443, %cst_330 [1] : vector<1x5xf32> to vector<1xf32>
    %1445 = vector.shape_cast %1444 : vector<1xf32> to vector<1x1xf32>
    %cst_331 = arith.constant 1.000000e+00 : f32
    %1446 = vector.broadcast %cst_331 : f32 to vector<1x128xf32>
    %1447 = arith.cmpf oeq, %1276, %1446 : vector<1x128xf32>
    %1448 = vector.shape_cast %1445 : vector<1x1xf32> to vector<1x1xf32>
    %1449 = vector.broadcast %1448 : vector<1x1xf32> to vector<1x128xf32>
    %1450 = arith.select %1447, %1449, %1438 : vector<1x128xi1>, vector<1x128xf32>
    %c1_332 = arith.constant 1 : index
    %c0_333 = arith.constant 0 : index
    %1451 = vector.load %arg12[%c1_332, %c0_333] : memref<16x5xf32, #tpu.memory_space<vmem>>, vector<1x5xf32>
    %1452 = vector.broadcast %1445 : vector<1x1xf32> to vector<1x5xf32>
    %1453 = arith.cmpf oeq, %94, %1452 : vector<1x5xf32>
    %cst_334 = arith.constant 0.000000e+00 : f32
    %1454 = vector.broadcast %cst_334 : f32 to vector<1x5xf32>
    %1455 = arith.select %1453, %1451, %1454 : vector<1x5xi1>, vector<1x5xf32>
    %cst_335 = arith.constant dense<0.000000e+00> : vector<1xf32>
    %1456 = vector.multi_reduction <add>, %1455, %cst_335 [1] : vector<1x5xf32> to vector<1xf32>
    %1457 = vector.shape_cast %1456 : vector<1xf32> to vector<1x1xf32>
    %cst_336 = arith.constant 0.000000e+00 : f32
    %1458 = vector.broadcast %cst_336 : f32 to vector<1x128xf32>
    %1459 = arith.cmpf oeq, %1276, %1458 : vector<1x128xf32>
    %1460 = vector.shape_cast %1457 : vector<1x1xf32> to vector<1x1xf32>
    %1461 = vector.broadcast %1460 : vector<1x1xf32> to vector<1x128xf32>
    %1462 = arith.select %1459, %1461, %1450 : vector<1x128xi1>, vector<1x128xf32>
    %1463 = arith.fptosi %1462 : vector<1x128xf32> to vector<1x128xi32>
    %c0_337 = arith.constant 0 : index
    %c0_338 = arith.constant 0 : index
    %c0_339 = arith.constant 0 : index
    %1464 = vector.load %arg10[%c0_337, %c0_338, %c0_339] : memref<1x1x128xi32, #tpu.memory_space<vmem>>, vector<1x1x128xi32>
    %1465 = vector.shape_cast %1464 : vector<1x1x128xi32> to vector<1x128xi32>
    %1466 = vector.shape_cast %1463 : vector<1x128xi32> to vector<1x1x128xi32>
    tpu.vector_store %arg10[%c0_337, %c0_338, %c0_339], %1466 {strides = array<i32>} : memref<1x1x128xi32, #tpu.memory_space<vmem>>, vector<1x1x128xi32>,
    return
  }
  func.func @transform_0(%arg0: i32) -> (i32, i32, i32) {
    %c0_i32 = arith.constant 0 : i32
    %c0_i32_0 = arith.constant 0 : i32
    %c0_i32_1 = arith.constant 0 : i32
    return %arg0, %c0_i32, %c0_i32_0 : i32, i32, i32
  }
  func.func @transform_1(%arg0: i32) -> (i32, i32) {
    %c0_i32 = arith.constant 0 : i32
    %c0_i32_0 = arith.constant 0 : i32
    %c0_i32_1 = arith.constant 0 : i32
    return %c0_i32, %c0_i32_0 : i32, i32
  }
  func.func @transform_2(%arg0: i32) -> (i32, i32) {
    %c0_i32 = arith.constant 0 : i32
    %c0_i32_0 = arith.constant 0 : i32
    %c0_i32_1 = arith.constant 0 : i32
    return %c0_i32, %c0_i32_0 : i32, i32
  }
  func.func @transform_3(%arg0: i32) -> (i32, i32, i32) {
    %c0_i32 = arith.constant 0 : i32
    %c0_i32_0 = arith.constant 0 : i32
    %c0_i32_1 = arith.constant 0 : i32
    return %arg0, %c0_i32, %c0_i32_0 : i32, i32, i32
  }
  func.func @transform_4(%arg0: i32) -> (i32, i32, i32) {
    %c0_i32 = arith.constant 0 : i32
    %c0_i32_0 = arith.constant 0 : i32
    %c0_i32_1 = arith.constant 0 : i32
    return %arg0, %c0_i32, %c0_i32_0 : i32, i32, i32
  }
  func.func @transform_5(%arg0: i32) -> (i32, i32) {
    %c0_i32 = arith.constant 0 : i32
    %c0_i32_0 = arith.constant 0 : i32
    %c0_i32_1 = arith.constant 0 : i32
    return %c0_i32, %c0_i32_0 : i32, i32
  }
  func.func @transform_6(%arg0: i32) -> (i32, i32) {
    %c0_i32 = arith.constant 0 : i32
    %c0_i32_0 = arith.constant 0 : i32
    %c0_i32_1 = arith.constant 0 : i32
    return %c0_i32, %c0_i32_0 : i32, i32
  }
  func.func @transform_7(%arg0: i32) -> (i32, i32) {
    %c0_i32 = arith.constant 0 : i32
    %c0_i32_0 = arith.constant 0 : i32
    %c0_i32_1 = arith.constant 0 : i32
    return %c0_i32, %c0_i32_0 : i32, i32
  }
  func.func @transform_8(%arg0: i32) -> (i32, i32, i32) {
    %c0_i32 = arith.constant 0 : i32
    %c0_i32_0 = arith.constant 0 : i32
    %c0_i32_1 = arith.constant 0 : i32
    return %arg0, %c0_i32, %c0_i32_0 : i32, i32, i32
  }
  func.func @transform_9(%arg0: i32) -> (i32, i32, i32) {
    %c0_i32 = arith.constant 0 : i32
    %c0_i32_0 = arith.constant 0 : i32
    %c0_i32_1 = arith.constant 0 : i32
    return %arg0, %c0_i32, %c0_i32_0 : i32, i32, i32
  }
}

</mosaic_0001>

<bundles_post_ra>
// kernel: tpu_custom_call.1
= control target key start
LH: loop header
LB: loop body
LE: loop exit
PB: predicated region body
PF: predicated region fallthrough
CT: control target
= control target key end

     0   :  { %15 = vsyncpa [#allocation5], 0  ;;  %s3807_s0 = inlined_call_operand.vmem [shape: f32[2,16,32], index: 0, kind: input, shape index: {}]   ;;  %s3808_s1 = inlined_call_operand.vmem [shape: f32[32,5], index: 1, kind: input, shape index: {}]   ;;  %s3809_s2 = inlined_call_operand.vmem [shape: f32[1,5], index: 2, kind: input, shape index: {}]   ;;  %s3810_s3 = inlined_call_operand.vmem [shape: s32[2,16,1], index: 3, kind: input, shape index: {}]   ;;  %s3811_s4 = inlined_call_operand.vmem [shape: f32[2,16,1], index: 4, kind: input, shape index: {}]   ;;  %s3812_s5 = inlined_call_operand.vmem [shape: f32[5,5], index: 5, kind: input, shape index: {}]   ;;  %s3813_s6 = inlined_call_operand.vmem [shape: f32[1,5], index: 6, kind: input, shape index: {}]   ;;  %s3814_s7 = inlined_call_operand.vmem [shape: f32[1,5], index: 7, kind: input, shape index: {}]   ;;  %s3815_s8 = inlined_call_operand.vmem [shape: f32[2,1,1], index: 8, kind: output, shape index: {0}]   ;;  %s3816_s9 = inlined_call_operand.hbm [shape: s32[2,1,128], index: 9, kind: output, shape index: {1}]  }
   0x1   :  { %17 = vsyncpa [#allocation5 + $0x1], 0  ;;  %s2730_s30 = smov 0   ;;  %s2732_s10 = smov 0  }
   0x2   :  { %s2734_s11 = smov 0   ;;  %s2736_s12 = smov 0  }
   0x3 LB: > { %s2751_s13 = sadd.s32 4294967295, %s2672_s12   ;;  %s2293_s14 = sadd.s32 4294967294, %s2672_s12   ;;  %s2672_s12 = sphi %s2736_s12, %s3822_s12   ;;  %s2668_s11 = sphi %s2734_s11, %s3821_s11   ;;  %s2664_s10 = sphi %s2732_s10, %s3820_s10   ;;  %s2660_s30 = sphi %s2730_s30, %s3819_s30  }
   0x4   : > { %s2755_s15 = sadd.s32 1, %s2672_s12   ;;  %s239_s16 = sadd.s32 1, %s2668_s11 }
   0x5   : > { %s236_s17 = ssub.s32 %s2672_s12, %s2755_s15  ;;  %p249_p0 = scmp.ne.s32.totalorder %s2668_s11, %s2664_s10 }
   0x6   : > { %p237_p1 = scmp.eq.s32.totalorder %s236_s17, 0  ;;  %p250_p2 = scmp.eq.s32.totalorder %s2751_s13, 1 }
   0x7   : > { %p255_p3 = scmp.ne.s32.totalorder %s2664_s10, %s2660_s30  ;;  %p256_p4 = scmp.eq.s32.totalorder %s2293_s14, 1 }
   0x8   : > { %s2766_s18 = scalar_select %p237_p1, %s2668_s11, %s239_s16  }
   0x9   : > { %p2768_p5 = por %p250_p2, %p249_p0  ;;  %p2772_p6 = por %p256_p4, %p255_p3 }
   0xa   : > { %p2296_p7 = scmp.ge.s32.totalorder %s2672_s12, 1  ;;  %p313_p8 = scmp.lt.s32.totalorder %s2672_s12, 3 }
   0xc   : > { %p314_p9 = pnand %p2296_p7, %p313_p8 }
   0xd   : > { %p361_p10 = scmp.lt.s32.totalorder (!%p314_p9), %s2751_s13, 1  ;;  %s359_s17 = sand.u32 (!%p314_p9), 1, %s2664_s10  }
   0xe   : > { %317 = sbr.rel (%p314_p9) target bundleno = 5019 (0x139b), region = 52  ;;  %s2191_s23 = scalar_lea.hbm (!%p314_p9), %s3816_s9, %s2751_s13 }
   0xf   : > { %s2180_s25 = scalar_lea.sflag (!%p314_p9), [#allocation5], %s359_s17 }
  0x13   : > { %v384_v0 = vld [vmem:[%s3808_s1 + $0x18] sm:$0xff]  ;;  %v383_v1 = vld [vmem:[%s3808_s1 + $0x10] sm:$0xff]  ;;  %v382_v2 = vld [vmem:[%s3808_s1 + $0x8] sm:$0xff]  ;;  %s2789_s27 = scalar_select %p361_p10, %s2751_s13, 1  ;;  %vm389_vm0 = vcmask 261120   ;;  %vm419_vm1 = vcmask 39936  }
  0x14   : > { %408 = vmatpush.msra.mxu0 %v384_v0  ;;  %2320 = vmatpush.msra.mxu2 %v384_v0  ;;  %v381_v3 = vld [vmem:[%s3808_s1] sm:$0xff]  ;;  %vm557_vm2 = vcmask 32768   ;;  %v2674_v12 = vmov 3   ;;  %v2675_v13 = vmov 1   ;;  %v2676_v14 = vmov 0  }
  0x15   : > { %s2795_s14 = sshll.u32 %s2789_s27, 4  ;;  %v2526_v5 = vld [vmem:[%s3809_s2] ss:$0 sm:$0xff]  ;;  %2378 = vset.pattern.permute.xlu2 %v2674_v12  ;;  %2376 = vset.pattern.permute.xlu1 %v2675_v13  ;;  %v2677_v19 = vmov 4   ;;  %v2678_v20 = vmov 2   ;;  %vm606_vm4 = vcmask 36864   ;;  %s378_s16 = scalar_lea.vmem %s3815_s8, %s2789_s27 }
  0x16   : > { %409 = vmatpush.msra.mxu0 %v383_v1  ;;  %2321 = vmatpush.msra.mxu2 %v383_v1  ;;  %s2801_s21 = scalar_lea.vmem %s3807_s0, %s2795_s14  ;;  %v427_v8 = vld [vmem:[%s3813_s6] sm:$0x1]  ;;  %s2827_s29 = scalar_lea.vmem %s3811_s4, %s2795_s14  ;;  %v2842_v30 = vld [vmem:[%s3812_s5 + $0x1] sm:$0x1]  ;;  %v2858_v35 = vld [vmem:[%s3812_s5 + $0x2] sm:$0x1] }
  0x17   : > { %v379_v4 = vld [vmem:[%s2801_s21] sm:$0xff]  ;;  %2375 = vset.pattern.permute.xlu0 %v2676_v14  ;;  %s3643_s22 = scalar_lea.vmem %s3810_s3, %s2795_s14  ;;  %s2195_s27 = sshll.u32 %s2191_s23, 4  ;;  %s2196_s27 = int_to_ptr.hbm [resolvable:$true] %s2195_s27 }
  0x18   : > { %410 = vmatpush.msra.mxu0 %v382_v2  ;;  %2322 = vmatpush.msra.mxu2 %v382_v2  ;;  %v638_v21 = vld [vmem:[%s2827_s29 + $0x1] sm:$0x1]  ;;  %v2849_v32 = vld [vmem:[%s3812_s5] sm:$0x1]  ;;  %v2863_v36 = vld [vmem:[%s3812_s5 + $0x3] sm:$0x1] }
  0x19   : > { %vm639_vm3 = vcmp.gt.f32.partialorder %v638_v21, 0.5  ;;  %v426_v23 = vld [vmem:[%s3812_s5] sm:$0x1f]  ;;  %s2624_s26 = sshra.s32 %s2196_s27, 4  ;;  %s2625_s26 = int_to_ptr.hbm [resolvable:$true] %s2624_s26 }
  0x1a   : > { %411 = vmatpush.msra.mxu0 %v381_v3  ;;  %2323 = vmatpush.msra.mxu2 %v381_v3  ;;  %v686_v22 = vsel %vm639_vm3, 1, %v2676_v14  ;;  %v607_v24 = vsel %vm606_vm4, %v426_v23, -inf  ;;  %v2870_v40 = vld [vmem:[%s3812_s5 + $0x4] sm:$0x1]  ;;  %p2631_p0 = scmp.lt.s32.totalorder %s2625_s26, %s3816_s9 }
  0x1b   : > { %2303 = vmatmul.msk.f32.vlgmr.msra.gmra.mxu0 %vm389_vm0, %v379_v4  ;;  %v608_v25 = vrot.slane %v607_v24, 4 }
  0x1d   : > { %v609_v26 = vmax.f32 %v607_v24, %v608_v25  ;;  %v740_v25 = vld [vmem:[%s2827_s29 + $0x2] sm:$0x1] }
  0x1e   : > { %vm741_vm6 = vcmp.gt.f32.partialorder %v740_v25, 0.5 }
  0x1f   : > { %v610_v27 = vrot.slane %v609_v26, 2 }
  0x21   : > { %v611_v28 = vmax.f32 %v609_v26, %v610_v27  ;;  %v783_v26 = vsel %vm741_vm6, 1, %v2676_v14 }
  0x23   : > { %v612_v29 = vrot.slane %v611_v28, 1 }
  0x25   : > { %v2844_v31 = vmax.f32 %v611_v28, %v612_v29 }
  0x27   : > { %v622_v33 = vsub.f32 %v2842_v30, %v2844_v31  ;;  %v619_v34 = vsub.f32 %v2849_v32, %v2844_v31  ;;  %v625_v39 = vsub.f32 %v2858_v35, %v2844_v31  ;;  %v628_v41 = vsub.f32 %v2863_v36, %v2844_v31 }
  0x28   : > { %v631_v43 = vsub.f32 %v2870_v40, %v2844_v31 }
  0x29   : > { %v623_v37 = vmul.f32 1.442695, %v622_v33  ;;  %v620_v38 = vmul.f32 1.442695, %v619_v34  ;;  %v626_v44 = vmul.f32 1.442695, %v625_v39 }
  0x2a   : > { %v629_v46 = vmul.f32 1.442695, %v628_v41  ;;  %v632_v48 = vmul.f32 1.442695, %v631_v43 }
  0x98   : > { %v413_v6 = vpop.f32.mrf.mxu0 }
  0x99   : > { %v414_v7 = vadd.f32 %v2526_v5, %v413_v6 }
  0x9b   : > { %420 = vst.msk [vmem:[#allocation2] sm:$0xff] %vm419_vm1, %v414_v7 }
  0xa2   : > { %v635_v9 = vld [vmem:[#allocation2] sm:$0x1]  ;;  %v2891_v6 = vld [vmem:[#allocation2 + $0x1] sm:$0x1] }
  0xa3   : > { %v2812_v10 = vadd.f32 %v635_v9, %v427_v8 }
  0xa5   : > { %v640_v11 = vsel %vm557_vm2, %v2812_v10, -inf }
  0xa6   : > { %641 = vmax.xlane.f32.xlu0 %v640_v11 }
 0x119   : > { %v2819_v15 = vpop.xlane.xlu0 %641 }
 0x11a   : > { %v643_v16 = vsub.f32 %v2812_v10, %v2819_v15  ;;  %v681_v7 = vadd.f32 %v2819_v15, %v2891_v6 }
 0x11c   : > { %v644_v17 = vmul.f32 1.442695, %v643_v16  ;;  %v682_v11 = vadd.f32 %v681_v7, %v2844_v31 }
 0x11e   : > { %2528 = vpow2.f32 %v644_v17 }
 0x11f   : > { %2530 = vpow2.f32 %v623_v37 }
 0x120   : > { %2532 = vpow2.f32 %v620_v38 }
 0x121   : > { %2534 = vpow2.f32 %v626_v44 }
 0x122   : > { %2536 = vpow2.f32 %v629_v46 }
 0x123   : > { %2538 = vpow2.f32 %v632_v48 }
 0x124   : > { %v2529_v18 = vpop.eup %2528 }
 0x125   : > { %668 = vperm.xlu2 %2378, %v2529_v18   ;;  %654 = vperm.xlu1 %2376, %v2529_v18   ;;  %v2876_v49 = vpop.eup %2530 }
 0x126   : > { %648 = vperm.xlu0 %2375, %v2529_v18   ;;  %v2878_v52 = vpop.eup %2532 }
 0x127   : > { %v2882_v55 = vpop.eup %2534 }
 0x128   : > { %v2884_v60 = vpop.eup %2536 }
 0x129   : > { %v2887_v0 = vpop.eup %2538 }
 0x12d   : > { %2379 = vset.pattern.permute.xlu2 %v2677_v19  ;;  %2377 = vset.pattern.permute.xlu1 %v2678_v20 }
 0x12e   : > { %675 = vperm.xlu2 %2379, %v2529_v18   ;;  %661 = vperm.xlu1 %2377, %v2529_v18  }
 0x12f   : > { %2383 = vset.pattern.permute.xlu0 %v2674_v12 }
 0x136   : > { %2380 = vset.pattern.permute.xlu1 %v2676_v14  ;;  %2388 = vset.pattern.permute.xlu2 %v2678_v20 }
 0x137   : > { %688 = vperm.xlu1 %2380, %v686_v22  }
 0x17f   : > { %v669_v42 = vpop.permute.xlu2 %668 }
 0x180   : > { %v671_v58 = vperm.slane %v669_v42, 0 }
 0x182   : > { %v672_v1 = vmul.f32 %v2884_v60, %v671_v58 }
 0x188   : > { %v676_v56 = vpop.permute.xlu2 %675 }
 0x189   : > { %v678_v61 = vperm.slane %v676_v56, 0 }
 0x18b   : > { %v679_v3 = vmul.f32 %v2887_v0, %v678_v61 }
 0x197   : > { %v655_v45 = vpop.permute.xlu1 %654 }
 0x198   : > { %v649_v47 = vpop.permute.xlu0 %648  ;;  %v657_v50 = vperm.slane %v655_v45, 0 }
 0x199   : > { %v651_v51 = vperm.slane %v649_v47, 0  ;;  %v2918_v47 = vld [vmem:[#allocation2 + $0x2] sm:$0x1] }
 0x19a   : > { %v658_v53 = vmul.f32 %v2876_v49, %v657_v50 }
 0x19b   : > { %v652_v54 = vmul.f32 %v2878_v52, %v651_v51 }
 0x19d   : > { %v659_v62 = vadd.f32 %v658_v53, %v652_v54 }
 0x1a0   : > { %v662_v57 = vpop.permute.xlu1 %661 }
 0x1a1   : > { %v664_v59 = vperm.slane %v662_v57, 0 }
 0x1a3   : > { %v665_v63 = vmul.f32 %v2882_v55, %v664_v59 }
 0x1a5   : > { %v666_v2 = vadd.f32 %v665_v63, %v659_v62 }
 0x1a7   : > { %v673_v4 = vadd.f32 %v672_v1, %v666_v2  ;;  %v832_v1 = vld [vmem:[%s2827_s29 + $0x3] sm:$0x1] }
 0x1a8   : > { %vm833_vm8 = vcmp.gt.f32.partialorder %v832_v1, 0.5 }
 0x1a9   : > { %v680_v5 = vadd.f32 %v679_v3, %v673_v4  ;;  %v2895_v8 = vpop.permute.xlu1 %688  ;;  %v875_v2 = vsel %vm833_vm8, 1, %v2676_v14 }
 0x1aa   : > { %vm690_vm5 = vcmp.eq.s32.totalorder %v2895_v8, 1 }
 0x1ab   : > { %2540 = vlog2.f32 %v680_v5 }
 0x1b1   : > { %v2541_v9 = vpop.eup %2540 }
 0x1b2   : > { %v684_v16 = vmul.f32 0.6931472, %v2541_v9 }
 0x1b4   : > { %v685_v17 = vadd.f32 %v684_v16, %v682_v11 }
 0x1b6   : > { %v691_v18 = vsel %vm690_vm5, %v685_v17, %v2812_v10 }
 0x1b7   : > { %v742_v21 = vsel %vm557_vm2, %v691_v18, -inf }
 0x1b8   : > { %743 = vmax.xlane.f32.xlu2 %v742_v21 }
 0x22b   : > { %v744_v22 = vpop.xlane.xlu2 %743 }
 0x22c   : > { %v745_v23 = vsub.f32 %v691_v18, %v744_v22  ;;  %v778_v48 = vadd.f32 %v744_v22, %v2918_v47 }
 0x22e   : > { %v746_v15 = vmul.f32 1.442695, %v745_v23  ;;  %v779_v51 = vadd.f32 %v778_v48, %v2844_v31 }
 0x230   : > { %2542 = vpow2.f32 %v746_v15 }
 0x236   : > { %v2543_v24 = vpop.eup %2542 }
 0x237   : > { %767 = vperm.xlu0 %2383, %v2543_v24   ;;  %750 = vperm.xlu1 %2380, %v2543_v24  }
 0x23f   : > { %2386 = vset.pattern.permute.xlu0 %v2676_v14  ;;  %2381 = vset.pattern.permute.xlu1 %v2675_v13 }
 0x240   : > { %694 = vperm.xlu0 %2386, %v2812_v10   ;;  %755 = vperm.xlu1 %2381, %v2543_v24  }
 0x248   : > { %2382 = vset.pattern.permute.xlu1 %v2678_v20 }
 0x249   : > { %761 = vperm.xlu1 %2382, %v2543_v24  }
 0x251   : > { %2384 = vset.pattern.permute.xlu1 %v2677_v19 }
 0x252   : > { %773 = vperm.xlu1 %2384, %v2543_v24  }
 0x25a   : > { %2385 = vset.pattern.permute.xlu1 %v2676_v14 }
 0x25b   : > { %785 = vperm.xlu1 %2385, %v783_v26   ;;  %v429_v26 = vlaneseq }
 0x263   : > { %2387 = vset.pattern.permute.xlu1 %v2675_v13 }
 0x264   : > { %700 = vperm.xlu1 %2387, %v2812_v10  }
 0x2a9   : > { %v751_v27 = vpop.permute.xlu1 %750  ;;  %v768_v39 = vpop.permute.xlu0 %767 }
 0x2aa   : > { %v753_v34 = vmul.f32 %v2878_v52, %v751_v27  ;;  %v770_v42 = vmul.f32 %v2884_v60, %v768_v39 }
 0x2b2   : > { %v756_v28 = vpop.permute.xlu1 %755  ;;  %v695_v9 = vpop.permute.xlu0 %694 }
 0x2b3   : > { %v758_v29 = vmul.f32 %v2876_v49, %v756_v28  ;;  %v697_v16 = vperm.slane %v695_v9, 0 }
 0x2b5   : > { %v759_v38 = vadd.f32 %v758_v29, %v753_v34  ;;  %v2953_v29 = vand.u32 127, %v429_v26  ;;  %v2679_v34 = vmov 0.0  }
 0x2bb   : > { %v762_v33 = vpop.permute.xlu1 %761 }
 0x2bc   : > { %v764_v37 = vmul.f32 %v2882_v55, %v762_v33 }
 0x2be   : > { %v765_v41 = vadd.f32 %v764_v37, %v759_v38 }
 0x2c0   : > { %v771_v44 = vadd.f32 %v770_v42, %v765_v41  ;;  %v2957_v41 = vcvt.s32.f32 %v2953_v29 }
 0x2c4   : > { %v774_v43 = vpop.permute.xlu1 %773 }
 0x2c5   : > { %v776_v45 = vmul.f32 %v2887_v0, %v774_v43 }
 0x2c7   : > { %v777_v46 = vadd.f32 %v776_v45, %v771_v44 }
 0x2c9   : > { %2544 = vlog2.f32 %v777_v46 }
 0x2cd   : > { %v2922_v54 = vpop.permute.xlu1 %785 }
 0x2ce   : > { %vm787_vm7 = vcmp.eq.s32.totalorder %v2922_v54, 1 }
 0x2cf   : > { %v2545_v50 = vpop.eup %2544 }
 0x2d0   : > { %v781_v53 = vmul.f32 0.6931472, %v2545_v50 }
 0x2d2   : > { %v782_v56 = vadd.f32 %v781_v53, %v779_v51 }
 0x2d4   : > { %v2927_v57 = vsel %vm787_vm7, %v782_v56, %v691_v18  ;;  %v698_v18 = vadd.f32 %v697_v16, %v2849_v32 }
 0x2d5   : > { %v834_v58 = vsel %vm557_vm2, %v2927_v57, -inf }
 0x2d6   : > { %835 = vmax.xlane.f32.xlu2 %v834_v58  ;;  %v701_v3 = vpop.permute.xlu1 %700 }
 0x2d7   : > { %v703_v11 = vperm.slane %v701_v3, 0 }
 0x2d9   : > { %v704_v17 = vadd.f32 %v703_v11, %v2842_v30 }
 0x2db   : > { %vm705_vm9 = vcmp.gt.f32.partialorder %v704_v17, %v698_v18 }
 0x2dc   : > { %v706_v25 = vsel %vm705_vm9, %v704_v17, %v698_v18  ;;  %v707_v37 = vsel %vm705_vm9, 1.0, %v2679_v34 }
 0x349   : > { %v2931_v59 = vpop.xlane.xlu2 %835 }
 0x34a   : > { %v837_v61 = vsub.f32 %v2927_v57, %v2931_v59 }
 0x34c   : > { %v838_v62 = vmul.f32 1.442695, %v837_v61 }
 0x34e   : > { %2546 = vpow2.f32 %v838_v62 }
 0x354   : > { %v2547_v63 = vpop.eup %2546 }
 0x355   : > { %853 = vperm.xlu2 %2388, %v2547_v63   ;;  %847 = vperm.xlu1 %2387, %v2547_v63  }
 0x356   : > { %842 = vperm.xlu0 %2386, %v2547_v63  }
 0x35d   : > { %2392 = vset.pattern.permute.xlu2 %v2674_v12  ;;  %2389 = vset.pattern.permute.xlu1 %v2674_v12 }
 0x35e   : > { %2390 = vset.pattern.permute.xlu0 %v2677_v19  ;;  %718 = vperm.xlu2 %2392, %v2812_v10  }
 0x35f   : > { %859 = vperm.xlu1 %2389, %v2547_v63   ;;  %865 = vperm.xlu0 %2390, %v2547_v63  }
 0x366   : > { %2394 = vset.pattern.permute.xlu2 %v2676_v14 }
 0x367   : > { %2391 = vset.pattern.permute.xlu1 %v2678_v20  ;;  %877 = vperm.xlu2 %2394, %v875_v2  }
 0x368   : > { %709 = vperm.xlu1 %2391, %v2812_v10   ;;  %2395 = vset.pattern.permute.xlu0 %v2676_v14 }
 0x36f   : > { %2397 = vset.pattern.permute.xlu2 %v2678_v20 }
 0x370   : > { %2393 = vset.pattern.permute.xlu1 %v2677_v19 }
 0x371   : > { %727 = vperm.xlu1 %2393, %v2812_v10  }
 0x379   : > { %2396 = vset.pattern.permute.xlu1 %v2675_v13 }
 0x3af   : > { %v854_v5 = vpop.permute.xlu2 %853 }
 0x3b8   : > { %v719_v22 = vpop.permute.xlu2 %718 }
 0x3b9   : > { %v721_v24 = vperm.slane %v719_v22, 0 }
 0x3bb   : > { %v722_v28 = vadd.f32 %v721_v24, %v2863_v36 }
 0x3c1   : > { %v2983_v11 = vpop.permute.xlu2 %877 }
 0x3c2   : > { %vm879_vm13 = vcmp.eq.s32.totalorder %v2983_v11, 1 }
 0x3c7   : > { %v848_v4 = vpop.permute.xlu1 %847 }
 0x3c8   : > { %v843_v53 = vpop.permute.xlu0 %842  ;;  %v850_v58 = vmul.f32 %v2876_v49, %v848_v4  ;;  %v2978_v4 = vld [vmem:[#allocation2 + $0x3] sm:$0x1] }
 0x3c9   : > { %v845_v56 = vmul.f32 %v2878_v52, %v843_v53  ;;  %v924_v53 = vld [vmem:[%s2827_s29 + $0x4] sm:$0x1] }
 0x3cb   : > { %v851_v61 = vadd.f32 %v850_v58, %v845_v56 }
 0x3d1   : > { %v860_v7 = vpop.permute.xlu1 %859  ;;  %v866_v8 = vpop.permute.xlu0 %865 }
 0x3d2   : > { %v862_v62 = vmul.f32 %v2884_v60, %v860_v7  ;;  %v868_v1 = vmul.f32 %v2887_v0, %v866_v8 }
 0x3da   : > { %v710_v21 = vpop.permute.xlu1 %709 }
 0x3db   : > { %v712_v23 = vperm.slane %v710_v21, 0 }
 0x3dd   : > { %v713_v15 = vadd.f32 %v712_v23, %v2858_v35 }
 0x3df   : > { %vm714_vm10 = vcmp.gt.f32.partialorder %v713_v15, %v706_v25 }
 0x3e0   : > { %v715_v27 = vsel %vm714_vm10, %v713_v15, %v706_v25  ;;  %v716_v39 = vsel %vm714_vm10, 2.0, %v707_v37 }
 0x3e1   : > { %vm723_vm11 = vcmp.gt.f32.partialorder %v722_v28, %v715_v27 }
 0x3e2   : > { %v724_v43 = vsel %vm723_vm11, %v722_v28, %v715_v27  ;;  %v725_v44 = vsel %vm723_vm11, 3.0, %v716_v39 }
 0x3e3   : > { %v728_v33 = vpop.permute.xlu1 %727 }
 0x3e4   : > { %v730_v38 = vperm.slane %v728_v33, 0 }
 0x3e6   : > { %v731_v42 = vadd.f32 %v730_v38, %v2870_v40 }
 0x3e8   : > { %vm732_vm12 = vcmp.gt.f32.partialorder %v731_v42, %v724_v43 }
 0x3e9   : > { %v733_v45 = vsel %vm732_vm12, %v731_v42, %v724_v43  ;;  %v734_v46 = vsel %vm732_vm12, 4.0, %v725_v44 }
 0x3ea   : > { %v735_v48 = vadd.f32 %v733_v45, %v2891_v6  ;;  %v737_v50 = vsel %vm690_vm5, %v734_v46, %v2957_v41  ;;  %v856_v6 = vmul.f32 %v2882_v55, %v854_v5  ;;  %v870_v5 = vadd.f32 %v2931_v59, %v2978_v4 }
 0x3eb   : > { %738 = vst.msk [vmem:[#allocation3 + $0x1] sm:$0x1] %vm557_vm2, %v737_v50 }
 0x3ec   : > { %v736_v51 = vsel %vm690_vm5, %v735_v48, %v2812_v10  ;;  %v857_v10 = vadd.f32 %v856_v6, %v851_v61  ;;  %v871_v9 = vadd.f32 %v870_v5, %v2844_v31  ;;  %vm925_vm5 = vcmp.gt.f32.partialorder %v924_v53, 0.5 }
 0x3ed   : > { %804 = vperm.xlu2 %2397, %v736_v51   ;;  %796 = vperm.xlu1 %2396, %v736_v51   ;;  %v967_v56 = vsel %vm925_vm5, 1, %v2676_v14 }
 0x3ee   : > { %791 = vperm.xlu0 %2395, %v736_v51   ;;  %v863_v63 = vadd.f32 %v862_v62, %v857_v10 }
 0x3f0   : > { %v869_v2 = vadd.f32 %v868_v1, %v863_v63 }
 0x3f2   : > { %2548 = vlog2.f32 %v869_v2 }
 0x3f5   : > { %2398 = vset.pattern.permute.xlu2 %v2674_v12  ;;  %2404 = vset.pattern.permute.xlu1 %v2677_v19 }
 0x3f6   : > { %2399 = vset.pattern.permute.xlu0 %v2677_v19  ;;  %812 = vperm.xlu2 %2398, %v736_v51  }
 0x3f7   : > { %820 = vperm.xlu0 %2399, %v736_v51  }
 0x3f8   : > { %v2549_v3 = vpop.eup %2548 }
 0x3f9   : > { %v873_v7 = vmul.f32 0.6931472, %v2549_v3 }
 0x3fb   : > { %v874_v16 = vadd.f32 %v873_v7, %v871_v9 }
 0x3fd   : > { %v2989_v17 = vsel %vm879_vm13, %v874_v16, %v2927_v57 }
 0x3fe   : > { %2400 = vset.pattern.permute.xlu2 %v2676_v14  ;;  %v926_v18 = vsel %vm557_vm2, %v2989_v17, -inf }
 0x3ff   : > { %2402 = vset.pattern.permute.xlu0 %v2678_v20 }
 0x417   : > { %927 = vmax.xlane.f32.xlu1 %v926_v18 }
 0x447   : > { %v805_v21 = vpop.permute.xlu2 %804 }
 0x448   : > { %v807_v24 = vadd.f32 %v805_v21, %v2858_v35 }
 0x450   : > { %v813_v25 = vpop.permute.xlu2 %812 }
 0x451   : > { %v815_v57 = vadd.f32 %v813_v25, %v2863_v36 }
 0x45f   : > { %v797_v22 = vpop.permute.xlu1 %796 }
 0x460   : > { %v799_v59 = vadd.f32 %v797_v22, %v2842_v30  ;;  %v792_v23 = vpop.permute.xlu0 %791 }
 0x461   : > { %v794_v15 = vadd.f32 %v792_v23, %v2849_v32 }
 0x463   : > { %vm800_vm14 = vcmp.gt.f32.partialorder %v799_v59, %v794_v15 }
 0x464   : > { %v801_v26 = vsel %vm800_vm14, %v799_v59, %v794_v15  ;;  %v802_v27 = vsel %vm800_vm14, 1.0, %v2679_v34 }
 0x465   : > { %vm808_vm15 = vcmp.gt.f32.partialorder %v807_v24, %v801_v26 }
 0x466   : > { %v809_v28 = vsel %vm808_vm15, %v807_v24, %v801_v26  ;;  %v810_v33 = vsel %vm808_vm15, 2.0, %v802_v27 }
 0x467   : > { %vm816_vm3 = vcmp.gt.f32.partialorder %v815_v57, %v809_v28 }
 0x468   : > { %v817_v39 = vsel %vm816_vm3, %v815_v57, %v809_v28  ;;  %v818_v42 = vsel %vm816_vm3, 3.0, %v810_v33 }
 0x469   : > { %v821_v37 = vpop.permute.xlu0 %820 }
 0x46a   : > { %v823_v38 = vadd.f32 %v821_v37, %v2870_v40 }
 0x46c   : > { %vm824_vm4 = vcmp.gt.f32.partialorder %v823_v38, %v817_v39 }
 0x46d   : > { %v825_v43 = vsel %vm824_vm4, %v823_v38, %v817_v39  ;;  %v826_v44 = vsel %vm824_vm4, 4.0, %v818_v42 }
 0x46e   : > { %v827_v45 = vadd.f32 %v825_v43, %v2918_v47  ;;  %v829_v46 = vsel %vm787_vm7, %v826_v44, %v2957_v41 }
 0x46f   : > { %830 = vst.msk [vmem:[#allocation3 + $0x2] sm:$0x1] %vm557_vm2, %v829_v46  ;;  %v923_v46 = vld [vmem:[#allocation2 + $0x4] sm:$0x1] }
 0x470   : > { %v828_v48 = vsel %vm787_vm7, %v827_v45, %v736_v51 }
 0x471   : > { %912 = vperm.xlu1 %2404, %v828_v48   ;;  %896 = vperm.xlu0 %2402, %v828_v48  }
 0x472   : > { %883 = vperm.xlu2 %2400, %v828_v48  }
 0x479   : > { %2403 = vset.pattern.permute.xlu0 %v2674_v12  ;;  %2411 = vset.pattern.permute.xlu1 %v2675_v13 }
 0x47a   : > { %2401 = vset.pattern.permute.xlu2 %v2675_v13  ;;  %904 = vperm.xlu0 %2403, %v828_v48  }
 0x47b   : > { %888 = vperm.xlu2 %2401, %v828_v48  }
 0x482   : > { %2409 = vset.pattern.permute.xlu0 %v2677_v19 }
 0x483   : > { %2405 = vset.pattern.permute.xlu2 %v2676_v14 }
 0x48a   : > { %v3011_v47 = vpop.xlane.xlu1 %927 }
 0x48b   : > { %v929_v54 = vsub.f32 %v2989_v17, %v3011_v47 }
 0x48d   : > { %v930_v50 = vmul.f32 1.442695, %v929_v54 }
 0x48f   : > { %2550 = vpow2.f32 %v930_v50 }
 0x495   : > { %v2551_v51 = vpop.eup %2550 }
 0x496   : > { %957 = vperm.xlu0 %2409, %v2551_v51   ;;  %934 = vperm.xlu2 %2405, %v2551_v51  }
 0x49e   : > { %2406 = vset.pattern.permute.xlu2 %v2675_v13  ;;  %2412 = vset.pattern.permute.xlu0 %v2678_v20 }
 0x49f   : > { %939 = vperm.xlu2 %2406, %v2551_v51  }
 0x4a7   : > { %2407 = vset.pattern.permute.xlu2 %v2678_v20 }
 0x4a8   : > { %945 = vperm.xlu2 %2407, %v2551_v51  }
 0x4b0   : > { %2408 = vset.pattern.permute.xlu2 %v2674_v12 }
 0x4b1   : > { %951 = vperm.xlu2 %2408, %v2551_v51  }
 0x4b9   : > { %2410 = vset.pattern.permute.xlu2 %v2676_v14 }
 0x4ba   : > { %969 = vperm.xlu2 %2410, %v967_v56  }
 0x4cc   : > { %v884_v58 = vpop.permute.xlu2 %883 }
 0x4cd   : > { %v886_v10 = vadd.f32 %v884_v58, %v2849_v32 }
 0x4d5   : > { %v889_v61 = vpop.permute.xlu2 %888 }
 0x4d6   : > { %v891_v6 = vadd.f32 %v889_v61, %v2842_v30 }
 0x4d8   : > { %vm892_vm6 = vcmp.gt.f32.partialorder %v891_v6, %v886_v10 }
 0x4d9   : > { %v893_v63 = vsel %vm892_vm6, %v891_v6, %v886_v10  ;;  %v894_v5 = vsel %vm892_vm6, 1.0, %v2679_v34 }
 0x4e3   : > { %v897_v62 = vpop.permute.xlu0 %896  ;;  %v913_v1 = vpop.permute.xlu1 %912 }
 0x4e4   : > { %v899_v8 = vadd.f32 %v897_v62, %v2858_v35  ;;  %v915_v9 = vadd.f32 %v913_v1, %v2870_v40 }
 0x4e6   : > { %vm900_vm7 = vcmp.gt.f32.partialorder %v899_v8, %v893_v63 }
 0x4e7   : > { %v901_v7 = vsel %vm900_vm7, %v899_v8, %v893_v63  ;;  %v902_v16 = vsel %vm900_vm7, 2.0, %v894_v5 }
 0x4ec   : > { %v905_v2 = vpop.permute.xlu0 %904 }
 0x4ed   : > { %v907_v3 = vadd.f32 %v905_v2, %v2863_v36 }
 0x4ef   : > { %vm908_vm8 = vcmp.gt.f32.partialorder %v907_v3, %v901_v7 }
 0x4f0   : > { %v909_v18 = vsel %vm908_vm8, %v907_v3, %v901_v7  ;;  %v910_v21 = vsel %vm908_vm8, 3.0, %v902_v16  ;;  %v935_v22 = vpop.permute.xlu2 %934 }
 0x4f1   : > { %vm916_vm9 = vcmp.gt.f32.partialorder %v915_v9, %v909_v18  ;;  %v937_v11 = vmul.f32 %v2878_v52, %v935_v22 }
 0x4f2   : > { %v917_v59 = vsel %vm916_vm9, %v915_v9, %v909_v18  ;;  %v918_v23 = vsel %vm916_vm9, 4.0, %v910_v21 }
 0x4f3   : > { %v919_v15 = vadd.f32 %v917_v59, %v2978_v4  ;;  %v921_v24 = vsel %vm879_vm13, %v918_v23, %v2957_v41 }
 0x4f4   : > { %922 = vst.msk [vmem:[#allocation3 + $0x3] sm:$0x1] %vm557_vm2, %v921_v24  ;;  %v1016_v24 = vld [vmem:[%s2827_s29 + $0x5] sm:$0x1] }
 0x4f5   : > { %v920_v25 = vsel %vm879_vm13, %v919_v15, %v828_v48  ;;  %v962_v48 = vadd.f32 %v3011_v47, %v923_v46  ;;  %vm1017_vm15 = vcmp.gt.f32.partialorder %v1016_v24, 0.5 }
 0x4f6   : > { %988 = vperm.xlu0 %2412, %v920_v25   ;;  %980 = vperm.xlu1 %2411, %v920_v25  }
 0x4f7   : > { %975 = vperm.xlu2 %2410, %v920_v25   ;;  %v963_v50 = vadd.f32 %v962_v48, %v2844_v31 }
 0x4f9   : > { %v940_v26 = vpop.permute.xlu2 %939 }
 0x4fa   : > { %v942_v57 = vmul.f32 %v2876_v49, %v940_v26  ;;  %v1059_v26 = vsel %vm1017_vm15, 1, %v2676_v14 }
 0x4fc   : > { %v943_v28 = vadd.f32 %v942_v57, %v937_v11 }
 0x4fe   : > { %2414 = vset.pattern.permute.xlu1 %v2677_v19  ;;  %2416 = vset.pattern.permute.xlu0 %v2675_v13 }
 0x4ff   : > { %2413 = vset.pattern.permute.xlu2 %v2674_v12  ;;  %1004 = vperm.xlu1 %2414, %v920_v25  }
 0x500   : > { %996 = vperm.xlu2 %2413, %v920_v25  }
 0x502   : > { %v946_v4 = vpop.permute.xlu2 %945 }
 0x503   : > { %v948_v27 = vmul.f32 %v2882_v55, %v946_v4 }
 0x505   : > { %v949_v38 = vadd.f32 %v948_v27, %v943_v28 }
 0x507   : > { %2415 = vset.pattern.permute.xlu1 %v2676_v14 }
 0x508   : > { %2423 = vset.pattern.permute.xlu2 %v2678_v20  ;;  %v958_v33 = vpop.permute.xlu0 %957 }
 0x509   : > { %v960_v42 = vmul.f32 %v2887_v0, %v958_v33 }
 0x50b   : > { %v952_v37 = vpop.permute.xlu2 %951 }
 0x50c   : > { %v954_v39 = vmul.f32 %v2884_v60, %v952_v37 }
 0x50e   : > { %v955_v43 = vadd.f32 %v954_v39, %v949_v38 }
 0x510   : > { %v961_v44 = vadd.f32 %v960_v42, %v955_v43 }
 0x512   : > { %2552 = vlog2.f32 %v961_v44 }
 0x514   : > { %v970_v51 = vpop.permute.xlu2 %969 }
 0x515   : > { %vm971_vm10 = vcmp.eq.s32.totalorder %v970_v51, 1 }
 0x518   : > { %v2553_v45 = vpop.eup %2552 }
 0x519   : > { %v965_v54 = vmul.f32 0.6931472, %v2553_v45 }
 0x51b   : > { %v966_v53 = vadd.f32 %v965_v54, %v963_v50 }
 0x51d   : > { %v3049_v56 = vsel %vm971_vm10, %v966_v53, %v2989_v17 }
 0x51e   : > { %v1018_v58 = vsel %vm557_vm2, %v3049_v56, -inf }
 0x529   : > { %1019 = vmax.xlane.f32.xlu2 %v1018_v58 }
 0x551   : > { %v976_v61 = vpop.permute.xlu2 %975 }
 0x552   : > { %v978_v10 = vadd.f32 %v976_v61, %v2849_v32  ;;  %v1015_v61 = vld [vmem:[#allocation2 + $0x5] sm:$0x1] }
 0x55a   : > { %v997_v8 = vpop.permute.xlu2 %996 }
 0x55b   : > { %v999_v17 = vadd.f32 %v997_v8, %v2863_v36 }
 0x568   : > { %v989_v6 = vpop.permute.xlu0 %988  ;;  %v981_v62 = vpop.permute.xlu1 %980 }
 0x569   : > { %v983_v47 = vadd.f32 %v981_v62, %v2842_v30  ;;  %v991_v63 = vadd.f32 %v989_v6, %v2858_v35 }
 0x56b   : > { %vm984_vm11 = vcmp.gt.f32.partialorder %v983_v47, %v978_v10 }
 0x56c   : > { %v985_v1 = vsel %vm984_vm11, %v983_v47, %v978_v10  ;;  %v986_v2 = vsel %vm984_vm11, 1.0, %v2679_v34 }
 0x56d   : > { %vm992_vm12 = vcmp.gt.f32.partialorder %v991_v63, %v985_v1 }
 0x56e   : > { %v993_v3 = vsel %vm992_vm12, %v991_v63, %v985_v1  ;;  %v994_v5 = vsel %vm992_vm12, 2.0, %v986_v2  ;;  %v1108_v63 = vld [vmem:[%s2827_s29 + $0x6] sm:$0x1] }
 0x56f   : > { %vm1000_vm13 = vcmp.gt.f32.partialorder %v999_v17, %v993_v3  ;;  %vm1109_vm8 = vcmp.gt.f32.partialorder %v1108_v63, 0.5 }
 0x570   : > { %v1001_v16 = vsel %vm1000_vm13, %v999_v17, %v993_v3  ;;  %v1002_v18 = vsel %vm1000_vm13, 3.0, %v994_v5  ;;  %v1151_v1 = vsel %vm1109_vm8, 1, %v2676_v14 }
 0x571   : > { %v1005_v7 = vpop.permute.xlu1 %1004 }
 0x572   : > { %v1007_v9 = vadd.f32 %v1005_v7, %v2870_v40 }
 0x574   : > { %vm1008_vm14 = vcmp.gt.f32.partialorder %v1007_v9, %v1001_v16 }
 0x575   : > { %v1009_v21 = vsel %vm1008_vm14, %v1007_v9, %v1001_v16  ;;  %v1010_v22 = vsel %vm1008_vm14, 4.0, %v1002_v18 }
 0x576   : > { %v1011_v59 = vadd.f32 %v1009_v21, %v923_v46  ;;  %v1013_v23 = vsel %vm971_vm10, %v1010_v22, %v2957_v41 }
 0x577   : > { %1014 = vst.msk [vmem:[#allocation3 + $0x4] sm:$0x1] %vm557_vm2, %v1013_v23 }
 0x578   : > { %v1012_v15 = vsel %vm971_vm10, %v1011_v59, %v920_v25 }
 0x579   : > { %1072 = vperm.xlu0 %2416, %v1012_v15   ;;  %1067 = vperm.xlu1 %2415, %v1012_v15  }
 0x581   : > { %2419 = vset.pattern.permute.xlu0 %v2677_v19  ;;  %2417 = vset.pattern.permute.xlu1 %v2678_v20 }
 0x582   : > { %1096 = vperm.xlu0 %2419, %v1012_v15   ;;  %1080 = vperm.xlu1 %2417, %v1012_v15  }
 0x58a   : > { %2418 = vset.pattern.permute.xlu1 %v2674_v12  ;;  %2420 = vset.pattern.permute.xlu0 %v2676_v14 }
 0x58b   : > { %1088 = vperm.xlu1 %2418, %v1012_v15   ;;  %1061 = vperm.xlu0 %2420, %v1059_v26  }
 0x593   : > { %2421 = vset.pattern.permute.xlu1 %v2676_v14 }
 0x59c   : > { %v3070_v25 = vpop.xlane.xlu2 %1019 }
 0x59d   : > { %v1021_v4 = vsub.f32 %v3049_v56, %v3070_v25  ;;  %v1054_v26 = vadd.f32 %v3070_v25, %v1015_v61 }
 0x59f   : > { %v1022_v57 = vmul.f32 1.442695, %v1021_v4 }
 0x5a1   : > { %2554 = vpow2.f32 %v1022_v57  ;;  %v1055_v57 = vadd.f32 %v1054_v26, %v2844_v31 }
 0x5a7   : > { %v2555_v11 = vpop.eup %2554 }
 0x5a8   : > { %1037 = vperm.xlu2 %2423, %v2555_v11   ;;  %1026 = vperm.xlu1 %2421, %v2555_v11  }
 0x5b0   : > { %2422 = vset.pattern.permute.xlu1 %v2675_v13  ;;  %2428 = vset.pattern.permute.xlu2 %v2674_v12 }
 0x5b1   : > { %1031 = vperm.xlu1 %2422, %v2555_v11  }
 0x5b9   : > { %2424 = vset.pattern.permute.xlu1 %v2674_v12 }
 0x5ba   : > { %1043 = vperm.xlu1 %2424, %v2555_v11  }
 0x5c2   : > { %2425 = vset.pattern.permute.xlu1 %v2677_v19 }
 0x5c3   : > { %1049 = vperm.xlu1 %2425, %v2555_v11  }
 0x5cb   : > { %2426 = vset.pattern.permute.xlu1 %v2675_v13 }
 0x5eb   : > { %v1068_v27 = vpop.permute.xlu1 %1067  ;;  %v1073_v28 = vpop.permute.xlu0 %1072 }
 0x5ec   : > { %v1075_v33 = vadd.f32 %v1073_v28, %v2842_v30  ;;  %v1070_v37 = vadd.f32 %v1068_v27, %v2849_v32 }
 0x5ee   : > { %vm1076_vm3 = vcmp.gt.f32.partialorder %v1075_v33, %v1070_v37 }
 0x5ef   : > { %v1077_v43 = vsel %vm1076_vm3, %v1075_v33, %v1070_v37  ;;  %v1078_v48 = vsel %vm1076_vm3, 1.0, %v2679_v34 }
 0x5f4   : > { %v1081_v38 = vpop.permute.xlu1 %1080  ;;  %v1097_v39 = vpop.permute.xlu0 %1096 }
 0x5f5   : > { %v1083_v42 = vadd.f32 %v1081_v38, %v2858_v35  ;;  %v1099_v50 = vadd.f32 %v1097_v39, %v2870_v40 }
 0x5f7   : > { %vm1084_vm4 = vcmp.gt.f32.partialorder %v1083_v42, %v1077_v43 }
 0x5f8   : > { %v1085_v54 = vsel %vm1084_vm4, %v1083_v42, %v1077_v43  ;;  %v1086_v51 = vsel %vm1084_vm4, 2.0, %v1078_v48 }
 0x5fd   : > { %v1089_v44 = vpop.permute.xlu1 %1088  ;;  %v1062_v46 = vpop.permute.xlu0 %1061 }
 0x5fe   : > { %v1091_v45 = vadd.f32 %v1089_v44, %v2863_v36  ;;  %vm1063_vm6 = vcmp.eq.s32.totalorder %v1062_v46, 1 }
 0x600   : > { %vm1092_vm5 = vcmp.gt.f32.partialorder %v1091_v45, %v1085_v54 }
 0x601   : > { %v1093_v53 = vsel %vm1092_vm5, %v1091_v45, %v1085_v54  ;;  %v1094_v58 = vsel %vm1092_vm5, 3.0, %v1086_v51 }
 0x602   : > { %vm1100_vm7 = vcmp.gt.f32.partialorder %v1099_v50, %v1093_v53  ;;  %v1038_v9 = vpop.permute.xlu2 %1037 }
 0x603   : > { %v1101_v6 = vsel %vm1100_vm7, %v1099_v50, %v1093_v53  ;;  %v1102_v62 = vsel %vm1100_vm7, 4.0, %v1094_v58  ;;  %v1040_v18 = vmul.f32 %v2882_v55, %v1038_v9  ;;  %v380_v9 = vld [vmem:[%s2801_s21 + $0x8] sm:$0xff]  ;;  %s360_s21 = scalar_lea.vmem [#allocation4], %s359_s17 }
 0x604   : > { %v1103_v10 = vadd.f32 %v1101_v6, %v1015_v61  ;;  %v1105_v47 = vsel %vm1063_vm6, %v1102_v62, %v2957_v41  ;;  %v3126_v6 = vld [vmem:[#allocation2 + $0x6] sm:$0x1]  ;;  %2304 = vmatmul.msk.f32.vlgmr.msra.gmra.mxu2 %vm389_vm0, %v380_v9  ;;  %s2193_s24 = sshll.u32 %s360_s21, 4  ;;  %s2194_s24 = int_to_ptr.vmem [resolvable:$true] %s2193_s24 }
 0x605   : > { %1106 = vst.msk [vmem:[#allocation3 + $0x5] sm:$0x1] %vm557_vm2, %v1105_v47 }
 0x606   : > { %v3089_v8 = vsel %vm1063_vm6, %v1103_v10, %v1012_v15 }
 0x607   : > { %1159 = vperm.xlu0 %2420, %v3089_v8   ;;  %1180 = vperm.xlu2 %2428, %v3089_v8  }
 0x608   : > { %1164 = vperm.xlu1 %2426, %v3089_v8  }
 0x60f   : > { %2427 = vset.pattern.permute.xlu0 %v2678_v20  ;;  %2430 = vset.pattern.permute.xlu2 %v2676_v14 }
 0x610   : > { %2429 = vset.pattern.permute.xlu1 %v2677_v19  ;;  %1172 = vperm.xlu0 %2427, %v3089_v8  }
 0x611   : > { %1188 = vperm.xlu1 %2429, %v3089_v8   ;;  %1153 = vperm.xlu2 %2430, %v1151_v1  }
 0x618   : > { %2431 = vset.pattern.permute.xlu0 %v2676_v14 }
 0x619   : > { %2432 = vset.pattern.permute.xlu2 %v2675_v13  ;;  %2439 = vset.pattern.permute.xlu1 %v2678_v20 }
 0x61a   : > { %v1027_v17 = vpop.permute.xlu1 %1026 }
 0x61b   : > { %v1029_v7 = vmul.f32 %v2878_v52, %v1027_v17  ;;  %v1200_v17 = vld [vmem:[%s2827_s29 + $0x7] sm:$0x1] }
 0x61c   : > { %vm1201_vm14 = vcmp.gt.f32.partialorder %v1200_v17, 0.5 }
 0x623   : > { %v1032_v2 = vpop.permute.xlu1 %1031 }
 0x624   : > { %v1034_v3 = vmul.f32 %v2876_v49, %v1032_v2  ;;  %v1243_v2 = vsel %vm1201_vm14, 1, %v2676_v14 }
 0x626   : > { %v1035_v16 = vadd.f32 %v1034_v3, %v1029_v7 }
 0x628   : > { %v1041_v22 = vadd.f32 %v1040_v18, %v1035_v16 }
 0x62c   : > { %v1044_v5 = vpop.permute.xlu1 %1043 }
 0x62d   : > { %v1046_v21 = vmul.f32 %v2884_v60, %v1044_v5 }
 0x62f   : > { %v1047_v23 = vadd.f32 %v1046_v21, %v1041_v22 }
 0x635   : > { %v1050_v59 = vpop.permute.xlu1 %1049 }
 0x636   : > { %v1052_v15 = vmul.f32 %v2887_v0, %v1050_v59 }
 0x638   : > { %v1053_v24 = vadd.f32 %v1052_v15, %v1047_v23 }
 0x63a   : > { %2556 = vlog2.f32 %v1053_v24 }
 0x640   : > { %v2557_v4 = vpop.eup %2556 }
 0x641   : > { %v1057_v11 = vmul.f32 0.6931472, %v2557_v4 }
 0x643   : > { %v1058_v27 = vadd.f32 %v1057_v11, %v1055_v57 }
 0x645   : > { %v3113_v28 = vsel %vm1063_vm6, %v1058_v27, %v3049_v56 }
 0x646   : > { %v1110_v33 = vsel %vm557_vm2, %v3113_v28, -inf }
 0x647   : > { %1111 = vmax.xlane.f32.xlu1 %v1110_v33 }
 0x661   : > { %v1181_v39 = vpop.permute.xlu2 %1180 }
 0x662   : > { %v1183_v56 = vadd.f32 %v1181_v39, %v2863_v36 }
 0x66b   : > { %v3122_v54 = vpop.permute.xlu2 %1153 }
 0x66c   : > { %vm1155_vm12 = vcmp.eq.s32.totalorder %v3122_v54, 1  ;;  %v3208_v54 = vld [vmem:[%s3812_s5 + $0x1] sm:$0x1] }
 0x679   : > { %v1160_v37 = vpop.permute.xlu0 %1159 }
 0x67a   : > { %v1165_v38 = vpop.permute.xlu1 %1164  ;;  %v1162_v42 = vadd.f32 %v1160_v37, %v2849_v32 }
 0x67b   : > { %v1167_v25 = vadd.f32 %v1165_v38, %v2842_v30 }
 0x67d   : > { %vm1168_vm9 = vcmp.gt.f32.partialorder %v1167_v25, %v1162_v42 }
 0x67e   : > { %v1169_v45 = vsel %vm1168_vm9, %v1167_v25, %v1162_v42  ;;  %v1170_v46 = vsel %vm1168_vm9, 1.0, %v2679_v34  ;;  %v1292_v25 = vld [vmem:[%s2827_s29 + $0x8] sm:$0x1] }
 0x67f   : > { %vm1293_vm6 = vcmp.gt.f32.partialorder %v1292_v25, 0.5 }
 0x682   : > { %v1173_v43 = vpop.permute.xlu0 %1172 }
 0x683   : > { %v1175_v44 = vadd.f32 %v1173_v43, %v2858_v35  ;;  %v1189_v48 = vpop.permute.xlu1 %1188  ;;  %v1335_v43 = vsel %vm1293_vm6, 1, %v2676_v14 }
 0x684   : > { %v1191_v53 = vadd.f32 %v1189_v48, %v2870_v40 }
 0x685   : > { %vm1176_vm10 = vcmp.gt.f32.partialorder %v1175_v44, %v1169_v45 }
 0x686   : > { %v1177_v50 = vsel %vm1176_vm10, %v1175_v44, %v1169_v45  ;;  %v1178_v51 = vsel %vm1176_vm10, 2.0, %v1170_v46 }
 0x687   : > { %vm1184_vm11 = vcmp.gt.f32.partialorder %v1183_v56, %v1177_v50 }
 0x688   : > { %v1186_v58 = vsel %vm1184_vm11, 3.0, %v1178_v51  ;;  %v1185_v61 = vsel %vm1184_vm11, %v1183_v56, %v1177_v50 }
 0x689   : > { %vm1192_vm13 = vcmp.gt.f32.partialorder %v1191_v53, %v1185_v61 }
 0x68a   : > { %v1193_v62 = vsel %vm1192_vm13, %v1191_v53, %v1185_v61  ;;  %v1194_v10 = vsel %vm1192_vm13, 4.0, %v1186_v58 }
 0x68b   : > { %v1195_v47 = vadd.f32 %v1193_v62, %v3126_v6  ;;  %v1197_v63 = vsel %vm1155_vm12, %v1194_v10, %v2957_v41 }
 0x68c   : > { %1198 = vst.msk [vmem:[#allocation3 + $0x6] sm:$0x1] %vm557_vm2, %v1197_v63 }
 0x68d   : > { %v1196_v1 = vsel %vm1155_vm12, %v1195_v47, %v3089_v8 }
 0x68e   : > { %1256 = vperm.xlu2 %2432, %v1196_v1   ;;  %1251 = vperm.xlu0 %2431, %v1196_v1  }
 0x696   : > { %2433 = vset.pattern.permute.xlu2 %v2678_v20  ;;  %2434 = vset.pattern.permute.xlu0 %v2674_v12 }
 0x697   : > { %1264 = vperm.xlu2 %2433, %v1196_v1   ;;  %1272 = vperm.xlu0 %2434, %v1196_v1  }
 0x69f   : > { %2435 = vset.pattern.permute.xlu2 %v2677_v19  ;;  %2437 = vset.pattern.permute.xlu0 %v2676_v14 }
 0x6a0   : > { %1280 = vperm.xlu2 %2435, %v1196_v1  }
 0x6a8   : > { %2436 = vset.pattern.permute.xlu2 %v2676_v14 }
 0x6a9   : > { %1245 = vperm.xlu2 %2436, %v1243_v2  }
 0x6b1   : > { %2438 = vset.pattern.permute.xlu2 %v2675_v13 }
 0x6ba   : > { %v3144_v8 = vpop.xlane.xlu1 %1111 }
 0x6bb   : > { %v1113_v3 = vsub.f32 %v3113_v28, %v3144_v8 }
 0x6bd   : > { %v1114_v5 = vmul.f32 1.442695, %v1113_v3 }
 0x6bf   : > { %2558 = vpow2.f32 %v1114_v5 }
 0x6c5   : > { %v2559_v7 = vpop.eup %2558 }
 0x6c6   : > { %1129 = vperm.xlu1 %2439, %v2559_v7   ;;  %1123 = vperm.xlu2 %2438, %v2559_v7  }
 0x6c7   : > { %1118 = vperm.xlu0 %2437, %v2559_v7  }
 0x6ce   : > { %2440 = vset.pattern.permute.xlu2 %v2674_v12 }
 0x6cf   : > { %2441 = vset.pattern.permute.xlu0 %v2677_v19  ;;  %1135 = vperm.xlu2 %2440, %v2559_v7  }
 0x6d0   : > { %1141 = vperm.xlu0 %2441, %v2559_v7  }
 0x6d7   : > { %2442 = vset.pattern.permute.xlu2 %v2676_v14 }
 0x6d8   : > { %2444 = vset.pattern.permute.xlu0 %v2674_v12 }
 0x6e8   : > { %v1257_v16 = vpop.permute.xlu2 %1256 }
 0x6e9   : > { %v1259_v22 = vadd.f32 %v1257_v16, %v2842_v30  ;;  %v416_v16 = vpop.f32.mrf.mxu2 }
 0x6f1   : > { %v1265_v18 = vpop.permute.xlu2 %1264 }
 0x6f2   : > { %v1267_v24 = vadd.f32 %v1265_v18, %v2858_v35  ;;  %v3163_v35 = vld [vmem:[#allocation2 + $0x7] sm:$0x1]  ;;  %v2602_v18 = vld [vmem:[%s3809_s2] ss:$0 sm:$0xff] }
 0x6fa   : > { %v1281_v23 = vpop.permute.xlu2 %1280 }
 0x6fb   : > { %v1283_v33 = vadd.f32 %v1281_v23, %v2870_v40 }
 0x700   : > { %v1252_v21 = vpop.permute.xlu0 %1251 }
 0x701   : > { %v1254_v59 = vadd.f32 %v1252_v21, %v2849_v32 }
 0x703   : > { %vm1260_vm15 = vcmp.gt.f32.partialorder %v1259_v22, %v1254_v59  ;;  %v3159_v11 = vpop.permute.xlu2 %1245 }
 0x704   : > { %v1261_v15 = vsel %vm1260_vm15, %v1259_v22, %v1254_v59  ;;  %v1262_v26 = vsel %vm1260_vm15, 1.0, %v2679_v34  ;;  %vm1247_vm4 = vcmp.eq.s32.totalorder %v3159_v11, 1  ;;  %v3214_v22 = vld [vmem:[%s3812_s5] sm:$0x1] }
 0x705   : > { %vm1268_vm3 = vcmp.gt.f32.partialorder %v1267_v24, %v1261_v15 }
 0x706   : > { %v1269_v27 = vsel %vm1268_vm3, %v1267_v24, %v1261_v15  ;;  %v1270_v30 = vsel %vm1268_vm3, 2.0, %v1262_v26  ;;  %v3220_v15 = vld [vmem:[%s3812_s5 + $0x2] sm:$0x1] }
 0x709   : > { %v1273_v4 = vpop.permute.xlu0 %1272 }
 0x70a   : > { %v1275_v57 = vadd.f32 %v1273_v4, %v2863_v36 }
 0x70c   : > { %vm1276_vm0 = vcmp.gt.f32.partialorder %v1275_v57, %v1269_v27 }
 0x70d   : > { %v1277_v32 = vsel %vm1276_vm0, %v1275_v57, %v1269_v27  ;;  %v1278_v37 = vsel %vm1276_vm0, 3.0, %v1270_v30 }
 0x70e   : > { %vm1284_vm5 = vcmp.gt.f32.partialorder %v1283_v33, %v1277_v32 }
 0x70f   : > { %v1285_v38 = vsel %vm1284_vm5, %v1283_v33, %v1277_v32  ;;  %v1286_v39 = vsel %vm1284_vm5, 4.0, %v1278_v37  ;;  %v3227_v33 = vld [vmem:[%s3812_s5 + $0x3] sm:$0x1] }
 0x710   : > { %v1287_v42 = vadd.f32 %v1285_v38, %v3163_v35  ;;  %v1289_v36 = vsel %vm1247_vm4, %v1286_v39, %v2957_v41  ;;  %v3233_v38 = vld [vmem:[%s3812_s5 + $0x4] sm:$0x1] }
 0x711   : > { %1290 = vst.msk [vmem:[#allocation3 + $0x7] sm:$0x1] %vm557_vm2, %v1289_v36 }
 0x712   : > { %v3172_v40 = vsel %vm1247_vm4, %v1287_v42, %v1196_v1  ;;  %v1146_v1 = vadd.f32 %v3144_v8, %v3126_v6  ;;  %v417_v6 = vadd.f32 %v2602_v18, %v416_v16 }
 0x713   : > { %1356 = vperm.xlu1 %2439, %v3172_v40   ;;  %1343 = vperm.xlu2 %2442, %v3172_v40  }
 0x714   : > { %1364 = vperm.xlu0 %2444, %v3172_v40   ;;  %v1147_v2 = vadd.f32 %v1146_v1, %v2844_v31  ;;  %421 = vst.msk [vmem:[#allocation2 + $0x8] sm:$0xff] %vm419_vm1, %v417_v6 }
 0x71b   : > { %2446 = vset.pattern.permute.xlu1 %v2676_v14  ;;  %2443 = vset.pattern.permute.xlu2 %v2675_v13  ;;  %v3236_v42 = vld [vmem:[#allocation2 + $0x8] sm:$0x1] }
 0x71c   : > { %1337 = vperm.xlu1 %2446, %v1335_v43   ;;  %1348 = vperm.xlu2 %2443, %v3172_v40  }
 0x71d   : > { %2447 = vset.pattern.permute.xlu0 %v2675_v13 }
 0x720   : > { %v1124_v44 = vpop.permute.xlu2 %1123 }
 0x721   : > { %v1126_v48 = vmul.f32 %v2876_v49, %v1124_v44 }
 0x724   : > { %2445 = vset.pattern.permute.xlu2 %v2677_v19 }
 0x725   : > { %1372 = vperm.xlu2 %2445, %v3172_v40  }
 0x729   : > { %v1136_v53 = vpop.permute.xlu2 %1135 }
 0x72a   : > { %v1138_v61 = vmul.f32 %v2884_v60, %v1136_v53 }
 0x72d   : > { %2453 = vset.pattern.permute.xlu2 %v2678_v20 }
 0x738   : > { %v1130_v56 = vpop.permute.xlu1 %1129 }
 0x739   : > { %v1119_v45 = vpop.permute.xlu0 %1118  ;;  %v1132_v51 = vmul.f32 %v2882_v55, %v1130_v56 }
 0x73a   : > { %v1121_v46 = vmul.f32 %v2878_v52, %v1119_v45 }
 0x73c   : > { %v1127_v50 = vadd.f32 %v1126_v48, %v1121_v46 }
 0x73e   : > { %v1133_v58 = vadd.f32 %v1132_v51, %v1127_v50 }
 0x740   : > { %v1139_v10 = vadd.f32 %v1138_v61, %v1133_v58 }
 0x742   : > { %v1142_v62 = vpop.permute.xlu0 %1141 }
 0x743   : > { %v1144_v47 = vmul.f32 %v2887_v0, %v1142_v62 }
 0x745   : > { %v1145_v63 = vadd.f32 %v1144_v47, %v1139_v10 }
 0x747   : > { %2560 = vlog2.f32 %v1145_v63 }
 0x74d   : > { %v2561_v17 = vpop.eup %2560 }
 0x74e   : > { %v1149_v3 = vmul.f32 0.6931472, %v2561_v17 }
 0x750   : > { %v1150_v5 = vadd.f32 %v1149_v3, %v1147_v2 }
 0x752   : > { %v3197_v7 = vsel %vm1155_vm12, %v1150_v5, %v3113_v28 }
 0x753   : > { %v1202_v9 = vsel %vm557_vm2, %v3197_v7, -inf }
 0x754   : > { %1203 = vmax.xlane.f32.xlu2 %v1202_v9 }
 0x76d   : > { %v1344_v8 = vpop.permute.xlu2 %1343 }
 0x76e   : > { %v1346_v59 = vadd.f32 %v3214_v22, %v1344_v8 }
 0x776   : > { %v1349_v21 = vpop.permute.xlu2 %1348 }
 0x777   : > { %v1351_v28 = vadd.f32 %v3208_v54, %v1349_v21 }
 0x779   : > { %vm1352_vm7 = vcmp.gt.f32.partialorder %v1351_v28, %v1346_v59 }
 0x77a   : > { %v1353_v57 = vsel %vm1352_vm7, %v1351_v28, %v1346_v59  ;;  %v1354_v27 = vsel %vm1352_vm7, 1.0, %v2679_v34 }
 0x77f   : > { %v1373_v4 = vpop.permute.xlu2 %1372 }
 0x780   : > { %v1375_v39 = vadd.f32 %v3233_v38, %v1373_v4 }
 0x785   : > { %v1357_v23 = vpop.permute.xlu1 %1356 }
 0x786   : > { %v1359_v24 = vadd.f32 %v3220_v15, %v1357_v23  ;;  %v1365_v26 = vpop.permute.xlu0 %1364  ;;  %v3270_v23 = vld [vmem:[#allocation2 + $0x9] sm:$0x1] }
 0x787   : > { %v1367_v30 = vadd.f32 %v3227_v33, %v1365_v26 }
 0x788   : > { %vm1360_vm8 = vcmp.gt.f32.partialorder %v1359_v24, %v1353_v57 }
 0x789   : > { %v1361_v32 = vsel %vm1360_vm8, %v1359_v24, %v1353_v57  ;;  %v1362_v37 = vsel %vm1360_vm8, 2.0, %v1354_v27 }
 0x78a   : > { %vm1368_vm9 = vcmp.gt.f32.partialorder %v1367_v30, %v1361_v32 }
 0x78b   : > { %v1369_v36 = vsel %vm1368_vm9, %v1367_v30, %v1361_v32  ;;  %v1370_v25 = vsel %vm1368_vm9, 3.0, %v1362_v37  ;;  %v1476_v30 = vld [vmem:[%s2827_s29 + $0xa] sm:$0x1] }
 0x78c   : > { %vm1376_vm10 = vcmp.gt.f32.partialorder %v1375_v39, %v1369_v36  ;;  %vm1477_vm5 = vcmp.gt.f32.partialorder %v1476_v30, 0.5 }
 0x78d   : > { %v1377_v43 = vsel %vm1376_vm10, %v1375_v39, %v1369_v36  ;;  %v1378_v48 = vsel %vm1376_vm10, 4.0, %v1370_v25  ;;  %v1519_v32 = vsel %vm1477_vm5, 1, %v2676_v14 }
 0x78e   : > { %v1379_v44 = vadd.f32 %v1377_v43, %v3236_v42  ;;  %v3239_v45 = vpop.permute.xlu1 %1337 }
 0x78f   : > { %vm1339_vm11 = vcmp.eq.s32.totalorder %v3239_v45, 1 }
 0x790   : > { %v1380_v56 = vsel %vm1339_vm11, %v1379_v44, %v3172_v40  ;;  %v1381_v46 = vsel %vm1339_vm11, %v1378_v48, %v2957_v41  ;;  %v1384_v40 = vld [vmem:[%s2827_s29 + $0x9] sm:$0x1] }
 0x791   : > { %1382 = vst.msk [vmem:[#allocation3 + $0x8] sm:$0x1] %vm557_vm2, %v1381_v46  ;;  %1440 = vperm.xlu0 %2447, %v1380_v56   ;;  %1435 = vperm.xlu1 %2446, %v1380_v56   ;;  %vm1385_vm12 = vcmp.gt.f32.partialorder %v1384_v40, 0.5 }
 0x792   : > { %v1427_v50 = vsel %vm1385_vm12, 1, %v2676_v14 }
 0x799   : > { %2450 = vset.pattern.permute.xlu0 %v2677_v19  ;;  %2448 = vset.pattern.permute.xlu1 %v2678_v20 }
 0x79a   : > { %1464 = vperm.xlu0 %2450, %v1380_v56   ;;  %1448 = vperm.xlu1 %2448, %v1380_v56  }
 0x7a2   : > { %2449 = vset.pattern.permute.xlu1 %v2674_v12  ;;  %2452 = vset.pattern.permute.xlu0 %v2675_v13 }
 0x7a3   : > { %1456 = vperm.xlu1 %2449, %v1380_v56  }
 0x7ab   : > { %2451 = vset.pattern.permute.xlu1 %v2676_v14 }
 0x7ac   : > { %1429 = vperm.xlu1 %2451, %v1427_v50  }
 0x7c7   : > { %v3256_v51 = vpop.xlane.xlu2 %1203 }
 0x7c8   : > { %v1205_v53 = vsub.f32 %v3197_v7, %v3256_v51 }
 0x7ca   : > { %v1206_v58 = vmul.f32 1.442695, %v1205_v53 }
 0x7cc   : > { %2562 = vpow2.f32 %v1206_v58 }
 0x7d2   : > { %v2563_v61 = vpop.eup %2562 }
 0x7d3   : > { %1221 = vperm.xlu2 %2453, %v2563_v61   ;;  %1215 = vperm.xlu0 %2452, %v2563_v61  }
 0x7d4   : > { %1210 = vperm.xlu1 %2451, %v2563_v61  }
 0x7db   : > { %2456 = vset.pattern.permute.xlu0 %v2676_v14 }
 0x7dc   : > { %2454 = vset.pattern.permute.xlu1 %v2674_v12 }
 0x7dd   : > { %1227 = vperm.xlu1 %2454, %v2563_v61  }
 0x7e5   : > { %2455 = vset.pattern.permute.xlu1 %v2677_v19 }
 0x7e6   : > { %1233 = vperm.xlu1 %2455, %v2563_v61  }
 0x7ee   : > { %2457 = vset.pattern.permute.xlu1 %v2675_v13 }
 0x803   : > { %v1436_v62 = vpop.permute.xlu1 %1435  ;;  %v1441_v10 = vpop.permute.xlu0 %1440 }
 0x804   : > { %v1443_v47 = vadd.f32 %v3208_v54, %v1441_v10  ;;  %v1438_v63 = vadd.f32 %v3214_v22, %v1436_v62  ;;  %v1238_v62 = vadd.f32 %v3256_v51, %v3163_v35 }
 0x806   : > { %vm1444_vm13 = vcmp.gt.f32.partialorder %v1443_v47, %v1438_v63 }
 0x807   : > { %v1445_v2 = vsel %vm1444_vm13, %v1443_v47, %v1438_v63  ;;  %v1446_v8 = vsel %vm1444_vm13, 1.0, %v2679_v34  ;;  %v1239_v47 = vadd.f32 %v1238_v62, %v2844_v31 }
 0x80c   : > { %v1449_v1 = vpop.permute.xlu1 %1448  ;;  %v1465_v3 = vpop.permute.xlu0 %1464 }
 0x80d   : > { %v1451_v17 = vadd.f32 %v3220_v15, %v1449_v1  ;;  %v1467_v18 = vadd.f32 %v3233_v38, %v1465_v3 }
 0x80f   : > { %vm1452_vm14 = vcmp.gt.f32.partialorder %v1451_v17, %v1445_v2 }
 0x810   : > { %v1453_v16 = vsel %vm1452_vm14, %v1451_v17, %v1445_v2  ;;  %v1454_v21 = vsel %vm1452_vm14, 2.0, %v1446_v8 }
 0x815   : > { %v1457_v5 = vpop.permute.xlu1 %1456 }
 0x816   : > { %v1459_v9 = vadd.f32 %v3227_v33, %v1457_v5 }
 0x818   : > { %vm1460_vm15 = vcmp.gt.f32.partialorder %v1459_v9, %v1453_v16 }
 0x819   : > { %v1461_v6 = vsel %vm1460_vm15, %v1459_v9, %v1453_v16  ;;  %v1462_v59 = vsel %vm1460_vm15, 3.0, %v1454_v21 }
 0x81a   : > { %vm1468_vm3 = vcmp.gt.f32.partialorder %v1467_v18, %v1461_v6 }
 0x81b   : > { %v1469_v28 = vsel %vm1468_vm3, %v1467_v18, %v1461_v6  ;;  %v1470_v4 = vsel %vm1468_vm3, 4.0, %v1462_v59 }
 0x81c   : > { %v1471_v24 = vadd.f32 %v1469_v28, %v3270_v23 }
 0x81e   : > { %v3273_v26 = vpop.permute.xlu1 %1429 }
 0x81f   : > { %vm1431_vm0 = vcmp.eq.s32.totalorder %v3273_v26, 1  ;;  %v1936_v26 = vld [vmem:[%s2827_s29 + $0xf] sm:$0x1] }
 0x820   : > { %v3278_v57 = vsel %vm1431_vm0, %v1471_v24, %v1380_v56  ;;  %v1473_v27 = vsel %vm1431_vm0, %v1470_v4, %v2957_v41 }
 0x821   : > { %1474 = vst.msk [vmem:[#allocation3 + $0x9] sm:$0x1] %vm557_vm2, %v1473_v27  ;;  %1540 = vperm.xlu2 %2453, %v3278_v57   ;;  %1532 = vperm.xlu1 %2457, %v3278_v57  }
 0x822   : > { %1527 = vperm.xlu0 %2456, %v3278_v57  }
 0x829   : > { %2458 = vset.pattern.permute.xlu1 %v2674_v12  ;;  %2460 = vset.pattern.permute.xlu2 %v2676_v14 }
 0x82a   : > { %2459 = vset.pattern.permute.xlu0 %v2677_v19  ;;  %1548 = vperm.xlu1 %2458, %v3278_v57  }
 0x82b   : > { %1556 = vperm.xlu0 %2459, %v3278_v57   ;;  %1521 = vperm.xlu2 %2460, %v1519_v32  }
 0x82d   : > { %v1222_v44 = vpop.permute.xlu2 %1221 }
 0x82e   : > { %v1224_v56 = vmul.f32 %v2882_v55, %v1222_v44 }
 0x832   : > { %2467 = vset.pattern.permute.xlu1 %v2678_v20 }
 0x833   : > { %2461 = vset.pattern.permute.xlu0 %v2675_v13 }
 0x845   : > { %v1216_v39 = vpop.permute.xlu0 %1215 }
 0x846   : > { %v1211_v37 = vpop.permute.xlu1 %1210  ;;  %v1218_v36 = vmul.f32 %v2876_v49, %v1216_v39 }
 0x847   : > { %v1213_v25 = vmul.f32 %v2878_v52, %v1211_v37  ;;  %v3320_v37 = vld [vmem:[#allocation2 + $0xa] sm:$0x1] }
 0x849   : > { %v1219_v48 = vadd.f32 %v1218_v36, %v1213_v25 }
 0x84b   : > { %v1225_v40 = vadd.f32 %v1224_v56, %v1219_v48 }
 0x84f   : > { %v1228_v43 = vpop.permute.xlu1 %1227 }
 0x850   : > { %v1230_v46 = vmul.f32 %v2884_v60, %v1228_v43  ;;  %v1568_v43 = vld [vmem:[%s2827_s29 + $0xb] sm:$0x1] }
 0x851   : > { %vm1569_vm10 = vcmp.gt.f32.partialorder %v1568_v43, 0.5 }
 0x852   : > { %v1231_v53 = vadd.f32 %v1230_v46, %v1225_v40  ;;  %v1611_v44 = vsel %vm1569_vm10, 1, %v2676_v14 }
 0x858   : > { %v1234_v50 = vpop.permute.xlu1 %1233 }
 0x859   : > { %v1236_v58 = vmul.f32 %v2887_v0, %v1234_v50 }
 0x85b   : > { %v1237_v61 = vadd.f32 %v1236_v58, %v1231_v53 }
 0x85d   : > { %2564 = vlog2.f32 %v1237_v61 }
 0x863   : > { %v2565_v10 = vpop.eup %2564 }
 0x864   : > { %v1241_v63 = vmul.f32 0.6931472, %v2565_v10 }
 0x866   : > { %v1242_v1 = vadd.f32 %v1241_v63, %v1239_v47 }
 0x868   : > { %v3307_v17 = vsel %vm1247_vm4, %v1242_v1, %v3197_v7 }
 0x869   : > { %v1294_v2 = vsel %vm557_vm2, %v3307_v17, -inf }
 0x86a   : > { %1295 = vmax.xlane.f32.xlu1 %v1294_v2 }
 0x87b   : > { %v1541_v16 = vpop.permute.xlu2 %1540 }
 0x87c   : > { %v1543_v18 = vadd.f32 %v3220_v15, %v1541_v16 }
 0x885   : > { %v3316_v21 = vpop.permute.xlu2 %1521 }
 0x886   : > { %vm1523_vm8 = vcmp.eq.s32.totalorder %v3316_v21, 1 }
 0x893   : > { %v1533_v3 = vpop.permute.xlu1 %1532 }
 0x894   : > { %v1528_v5 = vpop.permute.xlu0 %1527  ;;  %v1535_v9 = vadd.f32 %v3208_v54, %v1533_v3 }
 0x895   : > { %v1530_v35 = vadd.f32 %v3214_v22, %v1528_v5 }
 0x897   : > { %vm1536_vm6 = vcmp.gt.f32.partialorder %v1535_v9, %v1530_v35 }
 0x898   : > { %v1537_v51 = vsel %vm1536_vm6, %v1535_v9, %v1530_v35  ;;  %v1538_v11 = vsel %vm1536_vm6, 1.0, %v2679_v34 }
 0x899   : > { %vm1544_vm7 = vcmp.gt.f32.partialorder %v1543_v18, %v1537_v51 }
 0x89a   : > { %v1545_v28 = vsel %vm1544_vm7, %v1543_v18, %v1537_v51  ;;  %v1546_v24 = vsel %vm1544_vm7, 2.0, %v1538_v11  ;;  %v3354_v18 = vld [vmem:[#allocation2 + $0xb] sm:$0x1] }
 0x89c   : > { %v1549_v7 = vpop.permute.xlu1 %1548 }
 0x89d   : > { %v1557_v6 = vpop.permute.xlu0 %1556  ;;  %v1551_v8 = vadd.f32 %v3227_v33, %v1549_v7 }
 0x89e   : > { %v1559_v59 = vadd.f32 %v3233_v38, %v1557_v6 }
 0x89f   : > { %vm1552_vm4 = vcmp.gt.f32.partialorder %v1551_v8, %v1545_v28 }
 0x8a0   : > { %v1553_v4 = vsel %vm1552_vm4, %v1551_v8, %v1545_v28  ;;  %v1554_v27 = vsel %vm1552_vm4, 3.0, %v1546_v24 }
 0x8a1   : > { %vm1560_vm9 = vcmp.gt.f32.partialorder %v1559_v59, %v1553_v4 }
 0x8a2   : > { %v1561_v30 = vsel %vm1560_vm9, %v1559_v59, %v1553_v4  ;;  %v1562_v32 = vsel %vm1560_vm9, 4.0, %v1554_v27  ;;  %v1660_v59 = vld [vmem:[%s2827_s29 + $0xc] sm:$0x1] }
 0x8a3   : > { %v1563_v39 = vadd.f32 %v1561_v30, %v3320_v37  ;;  %v1565_v36 = vsel %vm1523_vm8, %v1562_v32, %v2957_v41  ;;  %vm1661_vm5 = vcmp.gt.f32.partialorder %v1660_v59, 0.5 }
 0x8a4   : > { %1566 = vst.msk [vmem:[#allocation3 + $0xa] sm:$0x1] %vm557_vm2, %v1565_v36  ;;  %v1703_v24 = vsel %vm1661_vm5, 1, %v2676_v14 }
 0x8a5   : > { %v1564_v25 = vsel %vm1523_vm8, %v1563_v39, %v3278_v57 }
 0x8a6   : > { %1624 = vperm.xlu0 %2461, %v1564_v25   ;;  %1619 = vperm.xlu2 %2460, %v1564_v25  }
 0x8ae   : > { %2464 = vset.pattern.permute.xlu0 %v2677_v19  ;;  %2462 = vset.pattern.permute.xlu2 %v2678_v20 }
 0x8af   : > { %1648 = vperm.xlu0 %2464, %v1564_v25   ;;  %1632 = vperm.xlu2 %2462, %v1564_v25  }
 0x8b7   : > { %2463 = vset.pattern.permute.xlu2 %v2674_v12  ;;  %2466 = vset.pattern.permute.xlu0 %v2675_v13 }
 0x8b8   : > { %1640 = vperm.xlu2 %2463, %v1564_v25  }
 0x8c0   : > { %2465 = vset.pattern.permute.xlu2 %v2676_v14 }
 0x8c1   : > { %1613 = vperm.xlu2 %2465, %v1611_v44  }
 0x8dd   : > { %v3337_v57 = vpop.xlane.xlu1 %1295 }
 0x8de   : > { %v1297_v48 = vsub.f32 %v3307_v17, %v3337_v57 }
 0x8e0   : > { %v1298_v56 = vmul.f32 1.442695, %v1297_v48 }
 0x8e2   : > { %2566 = vpow2.f32 %v1298_v56 }
 0x8e8   : > { %v2567_v46 = vpop.eup %2566 }
 0x8e9   : > { %1313 = vperm.xlu1 %2467, %v2567_v46   ;;  %1307 = vperm.xlu0 %2466, %v2567_v46  }
 0x8ea   : > { %1302 = vperm.xlu2 %2465, %v2567_v46  }
 0x8f1   : > { %2468 = vset.pattern.permute.xlu0 %v2676_v14 }
 0x8f2   : > { %2469 = vset.pattern.permute.xlu2 %v2674_v12 }
 0x8f3   : > { %1319 = vperm.xlu2 %2469, %v2567_v46  }
 0x8fb   : > { %2470 = vset.pattern.permute.xlu2 %v2677_v19 }
 0x8fc   : > { %1325 = vperm.xlu2 %2470, %v2567_v46  }
 0x900   : > { %v1620_v40 = vpop.permute.xlu2 %1619 }
 0x901   : > { %v1622_v61 = vadd.f32 %v3214_v22, %v1620_v40 }
 0x904   : > { %2471 = vset.pattern.permute.xlu2 %v2675_v13 }
 0x909   : > { %v1633_v50 = vpop.permute.xlu2 %1632 }
 0x90a   : > { %v1635_v10 = vadd.f32 %v3220_v15, %v1633_v50 }
 0x912   : > { %v1641_v53 = vpop.permute.xlu2 %1640 }
 0x913   : > { %v1643_v63 = vadd.f32 %v3227_v33, %v1641_v53  ;;  %v1330_v53 = vadd.f32 %v3337_v57, %v3236_v42 }
 0x918   : > { %v1625_v58 = vpop.permute.xlu0 %1624 }
 0x919   : > { %v1627_v62 = vadd.f32 %v3208_v54, %v1625_v58 }
 0x91b   : > { %vm1628_vm12 = vcmp.gt.f32.partialorder %v1627_v62, %v1622_v61  ;;  %v3350_v3 = vpop.permute.xlu2 %1613 }
 0x91c   : > { %v1629_v47 = vsel %vm1628_vm12, %v1627_v62, %v1622_v61  ;;  %v1630_v1 = vsel %vm1628_vm12, 1.0, %v2679_v34  ;;  %vm1615_vm15 = vcmp.eq.s32.totalorder %v3350_v3, 1  ;;  %v1331_v61 = vadd.f32 %v1330_v53, %v2844_v31 }
 0x91d   : > { %vm1636_vm13 = vcmp.gt.f32.partialorder %v1635_v10, %v1629_v47 }
 0x91e   : > { %v1637_v2 = vsel %vm1636_vm13, %v1635_v10, %v1629_v47  ;;  %v1638_v5 = vsel %vm1636_vm13, 2.0, %v1630_v1 }
 0x91f   : > { %vm1644_vm14 = vcmp.gt.f32.partialorder %v1643_v63, %v1637_v2 }
 0x920   : > { %v1645_v35 = vsel %vm1644_vm14, %v1643_v63, %v1637_v2  ;;  %v1646_v51 = vsel %vm1644_vm14, 3.0, %v1638_v5 }
 0x921   : > { %v1649_v9 = vpop.permute.xlu0 %1648 }
 0x922   : > { %v1651_v16 = vadd.f32 %v3233_v38, %v1649_v9 }
 0x924   : > { %vm1652_vm3 = vcmp.gt.f32.partialorder %v1651_v16, %v1645_v35 }
 0x925   : > { %v1653_v11 = vsel %vm1652_vm3, %v1651_v16, %v1645_v35  ;;  %v1654_v7 = vsel %vm1652_vm3, 4.0, %v1646_v51 }
 0x926   : > { %v1655_v6 = vadd.f32 %v1653_v11, %v3354_v18  ;;  %v1657_v8 = vsel %vm1615_vm15, %v1654_v7, %v2957_v41 }
 0x927   : > { %1658 = vst.msk [vmem:[#allocation3 + $0xb] sm:$0x1] %vm557_vm2, %v1657_v8 }
 0x928   : > { %v3363_v28 = vsel %vm1615_vm15, %v1655_v6, %v1564_v25 }
 0x929   : > { %1724 = vperm.xlu1 %2467, %v3363_v28   ;;  %1711 = vperm.xlu0 %2468, %v3363_v28  }
 0x92a   : > { %1716 = vperm.xlu2 %2471, %v3363_v28  }
 0x931   : > { %2473 = vset.pattern.permute.xlu0 %v2677_v19  ;;  %2474 = vset.pattern.permute.xlu1 %v2676_v14 }
 0x932   : > { %2472 = vset.pattern.permute.xlu2 %v2674_v12  ;;  %1740 = vperm.xlu0 %2473, %v3363_v28  }
 0x933   : > { %1732 = vperm.xlu2 %2472, %v3363_v28   ;;  %1705 = vperm.xlu1 %2474, %v1703_v24  }
 0x93a   : > { %2475 = vset.pattern.permute.xlu0 %v2675_v13 }
 0x93b   : > { %2481 = vset.pattern.permute.xlu2 %v2675_v13 }
 0x944   : > { %v1303_v4 = vpop.permute.xlu2 %1302 }
 0x945   : > { %v1305_v39 = vmul.f32 %v2878_v52, %v1303_v4  ;;  %v3401_v4 = vld [vmem:[#allocation2 + $0xc] sm:$0x1] }
 0x94d   : > { %v1320_v27 = vpop.permute.xlu2 %1319 }
 0x94e   : > { %v1322_v48 = vmul.f32 %v2884_v60, %v1320_v27 }
 0x956   : > { %v1326_v44 = vpop.permute.xlu2 %1325 }
 0x957   : > { %v1328_v46 = vmul.f32 %v2887_v0, %v1326_v44 }
 0x95b   : > { %v1314_v30 = vpop.permute.xlu1 %1313  ;;  %v1308_v32 = vpop.permute.xlu0 %1307 }
 0x95c   : > { %v1310_v36 = vmul.f32 %v2876_v49, %v1308_v32  ;;  %v1316_v25 = vmul.f32 %v2882_v55, %v1314_v30 }
 0x95e   : > { %v1311_v43 = vadd.f32 %v1310_v36, %v1305_v39 }
 0x960   : > { %v1317_v56 = vadd.f32 %v1316_v25, %v1311_v43  ;;  %v1752_v25 = vld [vmem:[%s2827_s29 + $0xd] sm:$0x1] }
 0x961   : > { %vm1753_vm10 = vcmp.gt.f32.partialorder %v1752_v25, 0.5 }
 0x962   : > { %v1323_v40 = vadd.f32 %v1322_v48, %v1317_v56  ;;  %v1795_v43 = vsel %vm1753_vm10, 1, %v2676_v14 }
 0x964   : > { %v1329_v50 = vadd.f32 %v1328_v46, %v1323_v40 }
 0x966   : > { %2568 = vlog2.f32 %v1329_v50 }
 0x96c   : > { %v2569_v58 = vpop.eup %2568 }
 0x96d   : > { %v1333_v62 = vmul.f32 0.6931472, %v2569_v58 }
 0x96f   : > { %v1334_v10 = vadd.f32 %v1333_v62, %v1331_v61 }
 0x971   : > { %v3388_v47 = vsel %vm1339_vm11, %v1334_v10, %v3307_v17 }
 0x972   : > { %v1386_v63 = vsel %vm557_vm2, %v3388_v47, -inf }
 0x973   : > { %1387 = vmax.xlane.f32.xlu2 %v1386_v63 }
 0x984   : > { %v1717_v1 = vpop.permute.xlu2 %1716 }
 0x985   : > { %v1719_v9 = vadd.f32 %v3208_v54, %v1717_v1 }
 0x98d   : > { %v1733_v57 = vpop.permute.xlu2 %1732 }
 0x98e   : > { %v1735_v45 = vadd.f32 %v3227_v33, %v1733_v57 }
 0x99b   : > { %v1725_v2 = vpop.permute.xlu1 %1724  ;;  %v1712_v5 = vpop.permute.xlu0 %1711 }
 0x99c   : > { %v1714_v42 = vadd.f32 %v3214_v22, %v1712_v5  ;;  %v1727_v16 = vadd.f32 %v3220_v15, %v1725_v2 }
 0x99e   : > { %vm1720_vm6 = vcmp.gt.f32.partialorder %v1719_v9, %v1714_v42 }
 0x99f   : > { %v1721_v35 = vsel %vm1720_vm6, %v1719_v9, %v1714_v42  ;;  %v1722_v17 = vsel %vm1720_vm6, 1.0, %v2679_v34 }
 0x9a0   : > { %vm1728_vm7 = vcmp.gt.f32.partialorder %v1727_v16, %v1721_v35 }
 0x9a1   : > { %v1729_v51 = vsel %vm1728_vm7, %v1727_v16, %v1721_v35  ;;  %v1730_v11 = vsel %vm1728_vm7, 2.0, %v1722_v17 }
 0x9a2   : > { %vm1736_vm11 = vcmp.gt.f32.partialorder %v1735_v45, %v1729_v51 }
 0x9a3   : > { %v1737_v59 = vsel %vm1736_vm11, %v1735_v45, %v1729_v51  ;;  %v1738_v24 = vsel %vm1736_vm11, 3.0, %v1730_v11  ;;  %v3429_v45 = vld [vmem:[#allocation2 + $0xd] sm:$0x1] }
 0x9a4   : > { %v1741_v7 = vpop.permute.xlu0 %1740 }
 0x9a5   : > { %v1743_v6 = vadd.f32 %v3233_v38, %v1741_v7  ;;  %v3398_v8 = vpop.permute.xlu1 %1705 }
 0x9a6   : > { %vm1707_vm4 = vcmp.eq.s32.totalorder %v3398_v8, 1 }
 0x9a7   : > { %vm1744_vm9 = vcmp.gt.f32.partialorder %v1743_v6, %v1737_v59 }
 0x9a8   : > { %v1745_v27 = vsel %vm1744_vm9, %v1743_v6, %v1737_v59  ;;  %v1746_v30 = vsel %vm1744_vm9, 4.0, %v1738_v24  ;;  %v1844_v59 = vld [vmem:[%s2827_s29 + $0xe] sm:$0x1] }
 0x9a9   : > { %v1747_v32 = vadd.f32 %v1745_v27, %v3401_v4  ;;  %v1749_v39 = vsel %vm1707_vm4, %v1746_v30, %v2957_v41  ;;  %vm1845_vm6 = vcmp.gt.f32.partialorder %v1844_v59, 0.5 }
 0x9aa   : > { %1750 = vst.msk [vmem:[#allocation3 + $0xc] sm:$0x1] %vm557_vm2, %v1749_v39  ;;  %v1887_v24 = vsel %vm1845_vm6, 1, %v2676_v14 }
 0x9ab   : > { %v1748_v36 = vsel %vm1707_vm4, %v1747_v32, %v3363_v28 }
 0x9ac   : > { %1808 = vperm.xlu0 %2475, %v1748_v36   ;;  %1803 = vperm.xlu1 %2474, %v1748_v36  }
 0x9b4   : > { %2478 = vset.pattern.permute.xlu0 %v2677_v19  ;;  %2476 = vset.pattern.permute.xlu1 %v2678_v20 }
 0x9b5   : > { %1832 = vperm.xlu0 %2478, %v1748_v36   ;;  %1816 = vperm.xlu1 %2476, %v1748_v36  }
 0x9bd   : > { %2477 = vset.pattern.permute.xlu1 %v2674_v12  ;;  %2480 = vset.pattern.permute.xlu0 %v2675_v13 }
 0x9be   : > { %1824 = vperm.xlu1 %2477, %v1748_v36  }
 0x9c6   : > { %2479 = vset.pattern.permute.xlu1 %v2676_v14 }
 0x9c7   : > { %1797 = vperm.xlu1 %2479, %v1795_v43  }
 0x9e6   : > { %v3418_v28 = vpop.xlane.xlu2 %1387 }
 0x9e7   : > { %v1389_v44 = vsub.f32 %v3388_v47, %v3418_v28 }
 0x9e9   : > { %v1390_v48 = vmul.f32 1.442695, %v1389_v44 }
 0x9eb   : > { %2570 = vpow2.f32 %v1390_v48 }
 0x9f1   : > { %v2571_v56 = vpop.eup %2570 }
 0x9f2   : > { %1399 = vperm.xlu2 %2481, %v2571_v56  }
 0x9fa   : > { %2482 = vset.pattern.permute.xlu2 %v2678_v20 }
 0xa1e   : > { %v1804_v46 = vpop.permute.xlu1 %1803  ;;  %v1809_v40 = vpop.permute.xlu0 %1808 }
 0xa1f   : > { %v1811_v50 = vadd.f32 %v3208_v54, %v1809_v40  ;;  %v1806_v53 = vadd.f32 %v3214_v22, %v1804_v46 }
 0xa21   : > { %vm1812_vm12 = vcmp.gt.f32.partialorder %v1811_v50, %v1806_v53 }
 0xa22   : > { %v1813_v62 = vsel %vm1812_vm12, %v1811_v50, %v1806_v53  ;;  %v1814_v42 = vsel %vm1812_vm12, 1.0, %v2679_v34 }
 0xa27   : > { %v1817_v58 = vpop.permute.xlu1 %1816  ;;  %v1833_v10 = vpop.permute.xlu0 %1832 }
 0xa28   : > { %v1819_v61 = vadd.f32 %v3220_v15, %v1817_v58  ;;  %v1835_v5 = vadd.f32 %v3233_v38, %v1833_v10 }
 0xa2a   : > { %vm1820_vm13 = vcmp.gt.f32.partialorder %v1819_v61, %v1813_v62 }
 0xa2b   : > { %v1821_v2 = vsel %vm1820_vm13, %v1819_v61, %v1813_v62  ;;  %v1822_v57 = vsel %vm1820_vm13, 2.0, %v1814_v42 }
 0xa30   : > { %v1825_v63 = vpop.permute.xlu1 %1824 }
 0xa31   : > { %v1827_v1 = vadd.f32 %v3227_v33, %v1825_v63 }
 0xa33   : > { %vm1828_vm14 = vcmp.gt.f32.partialorder %v1827_v1, %v1821_v2 }
 0xa34   : > { %v1829_v9 = vsel %vm1828_vm14, %v1827_v1, %v1821_v2  ;;  %v1830_v35 = vsel %vm1828_vm14, 3.0, %v1822_v57 }
 0xa35   : > { %vm1836_vm3 = vcmp.gt.f32.partialorder %v1835_v5, %v1829_v9 }
 0xa36   : > { %v1837_v16 = vsel %vm1836_vm3, %v1835_v5, %v1829_v9  ;;  %v1838_v11 = vsel %vm1836_vm3, 4.0, %v1830_v35  ;;  %v1422_v5 = vadd.f32 %v3418_v28, %v3270_v23 }
 0xa37   : > { %v1839_v17 = vadd.f32 %v1837_v16, %v3429_v45 }
 0xa39   : > { %v3432_v51 = vpop.permute.xlu1 %1797 }
 0xa3a   : > { %vm1799_vm5 = vcmp.eq.s32.totalorder %v3432_v51, 1 }
 0xa3b   : > { %v3437_v7 = vsel %vm1799_vm5, %v1839_v17, %v1748_v36  ;;  %v1841_v6 = vsel %vm1799_vm5, %v1838_v11, %v2957_v41  ;;  %v1423_v11 = vadd.f32 %v1422_v5, %v2844_v31 }
 0xa3c   : > { %1842 = vst.msk [vmem:[#allocation3 + $0xd] sm:$0x1] %vm557_vm2, %v1841_v6  ;;  %1900 = vperm.xlu0 %2480, %v3437_v7   ;;  %1895 = vperm.xlu1 %2479, %v3437_v7  }
 0xa3d   : > { %1908 = vperm.xlu2 %2482, %v3437_v7  }
 0xa44   : > { %2483 = vset.pattern.permute.xlu0 %v2678_v20  ;;  %1394 = vperm.xlu1 %2479, %v2571_v56  }
 0xa45   : > { %2487 = vset.pattern.permute.xlu2 %v2677_v19  ;;  %1405 = vperm.xlu0 %2483, %v2571_v56  }
 0xa46   : > { %1924 = vperm.xlu2 %2487, %v3437_v7  }
 0xa4c   : > { %2484 = vset.pattern.permute.xlu1 %v2674_v12  ;;  %v1400_v39 = vpop.permute.xlu2 %1399 }
 0xa4d   : > { %1411 = vperm.xlu1 %2484, %v2571_v56   ;;  %2488 = vset.pattern.permute.xlu0 %v2676_v14  ;;  %v1402_v44 = vmul.f32 %v2876_v49, %v1400_v39 }
 0xa4e   : > { %1889 = vperm.xlu0 %2488, %v1887_v24   ;;  %2490 = vset.pattern.permute.xlu2 %v2675_v13 }
 0xa55   : > { %2485 = vset.pattern.permute.xlu1 %v2677_v19 }
 0xa56   : > { %1417 = vperm.xlu1 %2485, %v2571_v56   ;;  %2498 = vset.pattern.permute.xlu0 %v2677_v19 }
 0xa5e   : > { %2486 = vset.pattern.permute.xlu1 %v2674_v12 }
 0xa5f   : > { %1916 = vperm.xlu1 %2486, %v3437_v7  }
 0xa67   : > { %2489 = vset.pattern.permute.xlu1 %v2676_v14 }
 0xa97   : > { %v1909_v53 = vpop.permute.xlu2 %1908 }
 0xa98   : > { %v1911_v2 = vadd.f32 %v3220_v15, %v1909_v53 }
 0xaa0   : > { %v1925_v9 = vpop.permute.xlu2 %1924 }
 0xaa1   : > { %v1927_v59 = vadd.f32 %v3233_v38, %v1925_v9 }
 0xaae   : > { %v1896_v27 = vpop.permute.xlu1 %1895  ;;  %v1901_v30 = vpop.permute.xlu0 %1900 }
 0xaaf   : > { %v1903_v40 = vadd.f32 %v3208_v54, %v1901_v30  ;;  %v1898_v50 = vadd.f32 %v3214_v22, %v1896_v27 }
 0xab1   : > { %vm1904_vm7 = vcmp.gt.f32.partialorder %v1903_v40, %v1898_v50 }
 0xab2   : > { %v1905_v1 = vsel %vm1904_vm7, %v1903_v40, %v1898_v50  ;;  %v1906_v42 = vsel %vm1904_vm7, 1.0, %v2679_v34 }
 0xab3   : > { %vm1912_vm11 = vcmp.gt.f32.partialorder %v1911_v2, %v1905_v1 }
 0xab4   : > { %v1913_v6 = vsel %vm1912_vm11, %v1911_v2, %v1905_v1  ;;  %v1914_v27 = vsel %vm1912_vm11, 2.0, %v1906_v42 }
 0xab6   : > { %v1395_v32 = vpop.permute.xlu1 %1394 }
 0xab7   : > { %v1397_v36 = vmul.f32 %v2878_v52, %v1395_v32  ;;  %v1406_v43 = vpop.permute.xlu0 %1405 }
 0xab8   : > { %v1408_v56 = vmul.f32 %v2882_v55, %v1406_v43 }
 0xab9   : > { %v1403_v48 = vadd.f32 %v1402_v44, %v1397_v36  ;;  %v3476_v36 = vld [vmem:[#allocation2 + $0xe] sm:$0x1] }
 0xabb   : > { %v1409_v58 = vadd.f32 %v1408_v56, %v1403_v48 }
 0xabf   : > { %v1412_v25 = vpop.permute.xlu1 %1411 }
 0xac0   : > { %v1414_v46 = vmul.f32 %v2884_v60, %v1412_v25  ;;  %v3471_v35 = vpop.permute.xlu0 %1889 }
 0xac1   : > { %vm1891_vm10 = vcmp.eq.s32.totalorder %v3471_v35, 1 }
 0xac2   : > { %v1415_v62 = vadd.f32 %v1414_v46, %v1409_v58 }
 0xac8   : > { %v1418_v61 = vpop.permute.xlu1 %1417 }
 0xac9   : > { %v1420_v10 = vmul.f32 %v2887_v0, %v1418_v61 }
 0xacb   : > { %v1421_v63 = vadd.f32 %v1420_v10, %v1415_v62 }
 0xacd   : > { %2572 = vlog2.f32 %v1421_v63 }
 0xad1   : > { %v1917_v57 = vpop.permute.xlu1 %1916 }
 0xad2   : > { %v1919_v16 = vadd.f32 %v3227_v33, %v1917_v57 }
 0xad3   : > { %v2573_v17 = vpop.eup %2572 }
 0xad4   : > { %v1425_v24 = vmul.f32 0.6931472, %v2573_v17  ;;  %vm1920_vm9 = vcmp.gt.f32.partialorder %v1919_v16, %v1913_v6 }
 0xad5   : > { %v1921_v30 = vsel %vm1920_vm9, %v1919_v16, %v1913_v6  ;;  %v1922_v23 = vsel %vm1920_vm9, 3.0, %v1914_v27 }
 0xad6   : > { %v1426_v28 = vadd.f32 %v1425_v24, %v1423_v11  ;;  %vm1928_vm12 = vcmp.gt.f32.partialorder %v1927_v59, %v1921_v30  ;;  %v3524_v24 = vld [vmem:[%s3814_s7] sm:$0x1] }
 0xad7   : > { %v1929_v32 = vsel %vm1928_vm12, %v1927_v59, %v1921_v30  ;;  %v1930_v39 = vsel %vm1928_vm12, 4.0, %v1922_v23 }
 0xad8   : > { %v1931_v25 = vadd.f32 %v1929_v32, %v3476_v36  ;;  %v1933_v43 = vsel %vm1891_vm10, %v1930_v39, %v2957_v41  ;;  %v3485_v44 = vsel %vm1431_vm0, %v1426_v28, %v3388_v47  ;;  %vm1937_vm0 = vcmp.gt.f32.partialorder %v1936_v26, 0.5 }
 0xad9   : > { %1934 = vst.msk [vmem:[#allocation3 + $0xe] sm:$0x1] %vm557_vm2, %v1933_v43  ;;  %v1478_v48 = vsel %vm557_vm2, %v3485_v44, -inf  ;;  %v1979_v47 = vsel %vm1937_vm0, 1, %v2676_v14  ;;  %vm2052_vm0 = vcmp.eq.f32.partialorder %v2957_v41, 15.0 }
 0xada   : > { %v1932_v56 = vsel %vm1891_vm10, %v1931_v25, %v3437_v7  ;;  %1479 = vmax.xlane.f32.xlu0 %v1478_v48 }
 0xadb   : > { %1992 = vperm.xlu2 %2490, %v1932_v56   ;;  %1987 = vperm.xlu1 %2489, %v1932_v56  }
 0xae0   : > { %v2062_v21 = vld [vmem:[#allocation3 + $0xe] sm:$0x1] }
 0xae3   : > { %2492 = vset.pattern.permute.xlu2 %v2674_v12  ;;  %2491 = vset.pattern.permute.xlu1 %v2678_v20 }
 0xae4   : > { %2008 = vperm.xlu2 %2492, %v1932_v56   ;;  %2000 = vperm.xlu1 %2491, %v1932_v56  }
 0xaec   : > { %2493 = vset.pattern.permute.xlu1 %v2677_v19  ;;  %2494 = vset.pattern.permute.xlu2 %v2676_v14 }
 0xaed   : > { %2016 = vperm.xlu1 %2493, %v1932_v56   ;;  %1981 = vperm.xlu2 %2494, %v1979_v47  }
 0xaf5   : > { %2499 = vset.pattern.permute.xlu1 %v2676_v14 }
 0xb35   : > { %v1993_v7 = vpop.permute.xlu2 %1992 }
 0xb36   : > { %v1995_v61 = vadd.f32 %v3208_v54, %v1993_v7 }
 0xb3e   : > { %v2009_v62 = vpop.permute.xlu2 %2008 }
 0xb3f   : > { %v2011_v9 = vadd.f32 %v3227_v33, %v2009_v62  ;;  %v3515_v33 = vld [vmem:[#allocation2 + $0xf] sm:$0x1] }
 0xb4d   : > { %v3500_v46 = vpop.xlane.xlu0 %1479  ;;  %v1988_v40 = vpop.permute.xlu1 %1987 }
 0xb4e   : > { %v1481_v50 = vsub.f32 %v3485_v44, %v3500_v46  ;;  %v1990_v58 = vadd.f32 %v3214_v22, %v1988_v40  ;;  %v3509_v22 = vpop.permute.xlu2 %1981 }
 0xb4f   : > { %vm1983_vm6 = vcmp.eq.s32.totalorder %v3509_v22, 1 }
 0xb50   : > { %v1482_v53 = vmul.f32 1.442695, %v1481_v50  ;;  %vm1996_vm13 = vcmp.gt.f32.partialorder %v1995_v61, %v1990_v58 }
 0xb51   : > { %v1997_v2 = vsel %vm1996_vm13, %v1995_v61, %v1990_v58  ;;  %v1998_v42 = vsel %vm1996_vm13, 1.0, %v2679_v34  ;;  %vm2060_vm13 = vcmp.eq.f32.partialorder %v2957_v41, 14.0 }
 0xb52   : > { %2574 = vpow2.f32 %v1482_v53 }
 0xb56   : > { %v2001_v10 = vpop.permute.xlu1 %2000 }
 0xb57   : > { %v2003_v63 = vadd.f32 %v3220_v15, %v2001_v10 }
 0xb58   : > { %v2575_v1 = vpop.eup %2574 }
 0xb59   : > { %vm2004_vm14 = vcmp.gt.f32.partialorder %v2003_v63, %v1997_v2  ;;  %1509 = vperm.xlu0 %2498, %v2575_v1   ;;  %1486 = vperm.xlu2 %2494, %v2575_v1  }
 0xb5a   : > { %v2005_v5 = vsel %vm2004_vm14, %v2003_v63, %v1997_v2  ;;  %v2006_v57 = vsel %vm2004_vm14, 2.0, %v1998_v42  ;;  %vm2068_vm14 = vcmp.eq.f32.partialorder %v2957_v41, 13.0 }
 0xb5b   : > { %vm2012_vm3 = vcmp.gt.f32.partialorder %v2011_v9, %v2005_v5 }
 0xb5c   : > { %v2013_v17 = vsel %vm2012_vm3, %v2011_v9, %v2005_v5  ;;  %v2014_v15 = vsel %vm2012_vm3, 3.0, %v2006_v57  ;;  %vm2076_vm3 = vcmp.eq.f32.partialorder %v2957_v41, 12.0 }
 0xb5f   : > { %v2017_v54 = vpop.permute.xlu1 %2016 }
 0xb60   : > { %v2019_v16 = vadd.f32 %v3233_v38, %v2017_v54 }
 0xb61   : > { %2495 = vset.pattern.permute.xlu2 %v2675_v13  ;;  %2500 = vset.pattern.permute.xlu0 %v2675_v13 }
 0xb62   : > { %vm2020_vm7 = vcmp.gt.f32.partialorder %v2019_v16, %v2013_v17  ;;  %1491 = vperm.xlu2 %2495, %v2575_v1  }
 0xb63   : > { %v2021_v11 = vsel %vm2020_vm7, %v2019_v16, %v2013_v17  ;;  %v2022_v6 = vsel %vm2020_vm7, 4.0, %v2014_v15  ;;  %vm2084_vm7 = vcmp.eq.f32.partialorder %v2957_v41, 11.0 }
 0xb64   : > { %v2023_v59 = vadd.f32 %v2021_v11, %v3515_v33  ;;  %v2025_v38 = vsel %vm1983_vm6, %v2022_v6, %v2957_v41 }
 0xb65   : > { %2026 = vst.msk [vmem:[#allocation3 + $0xf] sm:$0x1] %vm557_vm2, %v2025_v38 }
 0xb66   : > { %v2024_v27 = vsel %vm1983_vm6, %v2023_v59, %v1932_v56 }
 0xb67   : > { %v2043_v30 = vadd.f32 %v2024_v27, %v3524_v24 }
 0xb69   : > { %v2044_v23 = vsel %vm557_vm2, %v2043_v30, -inf }
 0xb6a   : > { %2496 = vset.pattern.permute.xlu2 %v2678_v20  ;;  %2045 = vmax.xlane.f32.xlu1 %v2044_v23 }
 0xb6b   : > { %1497 = vperm.xlu2 %2496, %v2575_v1  }
 0xb6c   : > { %v2054_v9 = vld [vmem:[#allocation3 + $0xf] sm:$0x1] }
 0xb73   : > { %2497 = vset.pattern.permute.xlu2 %v2674_v12 }
 0xb74   : > { %1503 = vperm.xlu2 %2497, %v2575_v1   ;;  %v1514_v1 = vadd.f32 %v3500_v46, %v3320_v37 }
 0xb76   : > { %v1515_v42 = vadd.f32 %v1514_v1, %v2844_v31 }
 0xb7c   : > { %2501 = vset.pattern.permute.xlu2 %v2678_v20 }
 0xbb3   : > { %v1487_v25 = vpop.permute.xlu2 %1486 }
 0xbb4   : > { %v1489_v47 = vmul.f32 %v2878_v52, %v1487_v25 }
 0xbbc   : > { %v1492_v43 = vpop.permute.xlu2 %1491 }
 0xbbd   : > { %v1494_v56 = vmul.f32 %v2876_v49, %v1492_v43 }
 0xbbf   : > { %v1495_v40 = vadd.f32 %v1494_v56, %v1489_v47 }
 0xbc5   : > { %v1498_v48 = vpop.permute.xlu2 %1497 }
 0xbc6   : > { %v1500_v7 = vmul.f32 %v2882_v55, %v1498_v48 }
 0xbc8   : > { %v1501_v53 = vadd.f32 %v1500_v7, %v1495_v40 }
 0xbcb   : > { %v1510_v58 = vpop.permute.xlu0 %1509 }
 0xbcc   : > { %v1512_v62 = vmul.f32 %v2887_v0, %v1510_v58 }
 0xbce   : > { %v1504_v26 = vpop.permute.xlu2 %1503 }
 0xbcf   : > { %v1506_v50 = vmul.f32 %v2884_v60, %v1504_v26 }
 0xbd1   : > { %v1507_v61 = vadd.f32 %v1506_v50, %v1501_v53 }
 0xbd3   : > { %v1513_v10 = vadd.f32 %v1512_v62, %v1507_v61 }
 0xbd5   : > { %2576 = vlog2.f32 %v1513_v10 }
 0xbdb   : > { %v2577_v63 = vpop.eup %2576 }
 0xbdc   : > { %v1517_v2 = vmul.f32 0.6931472, %v2577_v63 }
 0xbdd   : > { %v2046_v28 = vpop.xlane.xlu1 %2045 }
 0xbde   : > { %vm2047_vm11 = vcmp.eq.f32.partialorder %v2043_v30, %v2046_v28  ;;  %v1518_v16 = vadd.f32 %v1517_v2, %v1515_v42  ;;  %v2070_v2 = vld [vmem:[#allocation3 + $0xd] sm:$0x1] }
 0xbdf   : > { %v2048_v32 = vsel %vm2047_vm11, %v2957_v41, 5.0 }
 0xbe0   : > { %v2049_v39 = vsel %vm557_vm2, %v2048_v32, inf  ;;  %v1524_v17 = vsel %vm1523_vm8, %v1518_v16, %v3485_v44 }
 0xbe1   : > { %2050 = vmin.xlane.f32.xlu2 %v2049_v39  ;;  %v1570_v37 = vsel %vm557_vm2, %v1524_v17, -inf }
 0xc54   : > { %v3543_v5 = vpop.xlane.xlu2 %2050 }
 0xc55   : > { %vm2055_vm9 = vcmp.eq.f32.partialorder %v2957_v41, %v3543_v5 }
 0xc56   : > { %v2056_v57 = vsel %vm2055_vm9, %v2054_v9, 0.0 }
 0xc57   : > { %v2057_v54 = vsel %vm557_vm2, %v2056_v57, 0.0 }
 0xc58   : > { %2058 = vadd.xlane.f32.xlu1 %v2057_v54 }
 0xc60   : > { %1571 = vmax.xlane.f32.xlu1 %v1570_v37 }
 0xccb   : > { %v3553_v46 = vpop.xlane.xlu1 %2058 }
 0xccc   : > { %vm2063_vm8 = vcmp.eq.f32.partialorder %v2957_v41, %v3553_v46 }
 0xccd   : > { %v2064_v44 = vsel %vm2063_vm8, %v2062_v21, 0.0  ;;  %vm2100_vm8 = vcmp.eq.f32.partialorder %v2957_v41, 9.0 }
 0xcce   : > { %v2065_v38 = vsel %vm557_vm2, %v2064_v44, 0.0 }
 0xcd3   : > { %v1572_v15 = vpop.xlane.xlu1 %1571 }
 0xcd4   : > { %v1573_v11 = vsub.f32 %v1524_v17, %v1572_v15  ;;  %v1606_v50 = vadd.f32 %v1572_v15, %v3354_v18 }
 0xcd6   : > { %v1574_v6 = vmul.f32 1.442695, %v1573_v11  ;;  %v1607_v58 = vadd.f32 %v1606_v50, %v2844_v31  ;;  %v2053_v11 = vsel %vm2052_vm0, %v3543_v5, 0.0  ;;  %vm2108_vm0 = vcmp.eq.f32.partialorder %v2957_v41, 8.0 }
 0xcd8   : > { %2578 = vpow2.f32 %v1574_v6  ;;  %v2061_v6 = vsel %vm2060_vm13, %v3553_v46, %v2053_v11  ;;  %vm2116_vm13 = vcmp.eq.f32.partialorder %v2957_v41, 7.0 }
 0xcde   : > { %v2579_v59 = vpop.eup %2578 }
 0xcdf   : > { %1589 = vperm.xlu2 %2501, %v2579_v59   ;;  %1583 = vperm.xlu0 %2500, %v2579_v59  }
 0xce0   : > { %1578 = vperm.xlu1 %2499, %v2579_v59  }
 0xce7   : > { %2503 = vset.pattern.permute.xlu0 %v2677_v19  ;;  %2505 = vset.pattern.permute.xlu2 %v2675_v13 }
 0xce8   : > { %2502 = vset.pattern.permute.xlu1 %v2674_v12  ;;  %1601 = vperm.xlu0 %2503, %v2579_v59  }
 0xce9   : > { %1595 = vperm.xlu1 %2502, %v2579_v59  }
 0xcf0   : > { %2506 = vset.pattern.permute.xlu0 %v2678_v20 }
 0xcf1   : > { %2504 = vset.pattern.permute.xlu1 %v2676_v14 }
 0xd13   : > { %2066 = vadd.xlane.f32.xlu1 %v2065_v38 }
 0xd39   : > { %v1590_v32 = vpop.permute.xlu2 %1589 }
 0xd3a   : > { %v1592_v25 = vmul.f32 %v2882_v55, %v1590_v32 }
 0xd51   : > { %v1584_v27 = vpop.permute.xlu0 %1583 }
 0xd52   : > { %v1579_v30 = vpop.permute.xlu1 %1578  ;;  %v1586_v23 = vmul.f32 %v2876_v49, %v1584_v27  ;;  %v2086_v27 = vld [vmem:[#allocation3 + $0xb] sm:$0x1] }
 0xd53   : > { %v1581_v28 = vmul.f32 %v2878_v52, %v1579_v30 }
 0xd55   : > { %v1587_v39 = vadd.f32 %v1586_v23, %v1581_v28 }
 0xd57   : > { %v1593_v56 = vadd.f32 %v1592_v25, %v1587_v39 }
 0xd5a   : > { %v1602_v43 = vpop.permute.xlu0 %1601 }
 0xd5b   : > { %v1596_v48 = vpop.permute.xlu1 %1595  ;;  %v1604_v47 = vmul.f32 %v2887_v0, %v1602_v43 }
 0xd5c   : > { %v1598_v26 = vmul.f32 %v2884_v60, %v1596_v48 }
 0xd5e   : > { %v1599_v7 = vadd.f32 %v1598_v26, %v1593_v56 }
 0xd60   : > { %v1605_v40 = vadd.f32 %v1604_v47, %v1599_v7 }
 0xd62   : > { %2580 = vlog2.f32 %v1605_v40 }
 0xd68   : > { %v2581_v53 = vpop.eup %2580 }
 0xd69   : > { %v1609_v61 = vmul.f32 0.6931472, %v2581_v53 }
 0xd6b   : > { %v1610_v62 = vadd.f32 %v1609_v61, %v1607_v58 }
 0xd6d   : > { %v3572_v10 = vsel %vm1615_vm15, %v1610_v62, %v1524_v17  ;;  %v2078_v17 = vld [vmem:[#allocation3 + $0xc] sm:$0x1] }
 0xd6e   : > { %v1662_v63 = vsel %vm557_vm2, %v3572_v10, -inf }
 0xd6f   : > { %1663 = vmax.xlane.f32.xlu0 %v1662_v63 }
 0xd86   : > { %v2067_v1 = vpop.xlane.xlu1 %2066 }
 0xd87   : > { %vm2071_vm12 = vcmp.eq.f32.partialorder %v2957_v41, %v2067_v1  ;;  %v2069_v59 = vsel %vm2068_vm14, %v2067_v1, %v2061_v6  ;;  %vm2124_vm14 = vcmp.eq.f32.partialorder %v2957_v41, 6.0 }
 0xd88   : > { %v2072_v9 = vsel %vm2071_vm12, %v2070_v2, 0.0 }
 0xd89   : > { %v2073_v18 = vsel %vm557_vm2, %v2072_v9, 0.0 }
 0xd8a   : > { %2074 = vadd.xlane.f32.xlu2 %v2073_v18  ;;  %v2094_v18 = vld [vmem:[#allocation3 + $0xa] sm:$0x1] }
 0xde2   : > { %v1664_v42 = vpop.xlane.xlu0 %1663 }
 0xde3   : > { %v1665_v57 = vsub.f32 %v3572_v10, %v1664_v42  ;;  %v1698_v53 = vadd.f32 %v1664_v42, %v3401_v4 }
 0xde5   : > { %v1666_v54 = vmul.f32 1.442695, %v1665_v57  ;;  %v1699_v61 = vadd.f32 %v1698_v53, %v2844_v31  ;;  %v2110_v53 = vld [vmem:[#allocation3 + $0x8] sm:$0x1] }
 0xde7   : > { %2582 = vpow2.f32 %v1666_v54 }
 0xded   : > { %v2583_v3 = vpop.eup %2582 }
 0xdee   : > { %1681 = vperm.xlu0 %2506, %v2583_v3   ;;  %1675 = vperm.xlu2 %2505, %v2583_v3  }
 0xdf6   : > { %2507 = vset.pattern.permute.xlu2 %v2674_v12 }
 0xdf7   : > { %1687 = vperm.xlu2 %2507, %v2583_v3  }
 0xdfd   : > { %v2075_v16 = vpop.xlane.xlu2 %2074 }
 0xdfe   : > { %vm2079_vm15 = vcmp.eq.f32.partialorder %v2957_v41, %v2075_v16  ;;  %v2077_v21 = vsel %vm2076_vm3, %v2075_v16, %v2069_v59 }
 0xdff   : > { %v2080_v37 = vsel %vm2079_vm15, %v2078_v17, 0.0  ;;  %2509 = vset.pattern.permute.xlu2 %v2676_v14 }
 0xe00   : > { %v2081_v15 = vsel %vm557_vm2, %v2080_v37, 0.0  ;;  %v2102_v37 = vld [vmem:[#allocation3 + $0x9] sm:$0x1] }
 0xe01   : > { %2082 = vadd.xlane.f32.xlu1 %v2081_v15 }
 0xe1a   : > { %1670 = vperm.xlu1 %2504, %v2583_v3  }
 0xe22   : > { %2508 = vset.pattern.permute.xlu1 %v2677_v19 }
 0xe23   : > { %1693 = vperm.xlu1 %2508, %v2583_v3  }
 0xe2b   : > { %2510 = vset.pattern.permute.xlu1 %v2675_v13 }
 0xe48   : > { %v1676_v28 = vpop.permute.xlu2 %1675 }
 0xe49   : > { %v1678_v5 = vmul.f32 %v2876_v49, %v1676_v28 }
 0xe51   : > { %v1688_v48 = vpop.permute.xlu2 %1687 }
 0xe52   : > { %v1690_v26 = vmul.f32 %v2884_v60, %v1688_v48 }
 0xe60   : > { %v1682_v39 = vpop.permute.xlu0 %1681 }
 0xe61   : > { %v1684_v43 = vmul.f32 %v2882_v55, %v1682_v39 }
 0xe74   : > { %v2083_v44 = vpop.xlane.xlu1 %2082 }
 0xe75   : > { %v2085_v38 = vsel %vm2084_vm7, %v2083_v44, %v2077_v21  ;;  %vm2087_vm11 = vcmp.eq.f32.partialorder %v2957_v41, %v2083_v44  ;;  %vm501_vm7 = vcmask 1044480  }
 0xe76   : > { %v2088_v30 = vsel %vm2087_vm11, %v2086_v27, 0.0 }
 0xe77   : > { %v2089_v23 = vsel %vm557_vm2, %v2088_v30, 0.0 }
 0xe78   : > { %2090 = vadd.xlane.f32.xlu2 %v2089_v23 }
 0xe8c   : > { %v1671_v32 = vpop.permute.xlu1 %1670 }
 0xe8d   : > { %v1673_v46 = vmul.f32 %v2878_v52, %v1671_v32 }
 0xe8f   : > { %v1679_v25 = vadd.f32 %v1678_v5, %v1673_v46 }
 0xe91   : > { %v1685_v56 = vadd.f32 %v1684_v43, %v1679_v25 }
 0xe93   : > { %v1691_v7 = vadd.f32 %v1690_v26, %v1685_v56 }
 0xe95   : > { %v1694_v47 = vpop.permute.xlu1 %1693 }
 0xe96   : > { %v1696_v40 = vmul.f32 %v2887_v0, %v1694_v47 }
 0xe98   : > { %v1697_v50 = vadd.f32 %v1696_v40, %v1691_v7 }
 0xe9a   : > { %2584 = vlog2.f32 %v1697_v50 }
 0xea0   : > { %v2585_v58 = vpop.eup %2584 }
 0xea1   : > { %v1701_v62 = vmul.f32 0.6931472, %v2585_v58 }
 0xea3   : > { %v1702_v63 = vadd.f32 %v1701_v62, %v1699_v61 }
 0xea5   : > { %v1708_v1 = vsel %vm1707_vm4, %v1702_v63, %v3572_v10  ;;  %vm2092_vm4 = vcmp.eq.f32.partialorder %v2957_v41, 10.0 }
 0xea6   : > { %v1754_v2 = vsel %vm557_vm2, %v1708_v1, -inf }
 0xea7   : > { %1755 = vmax.xlane.f32.xlu1 %v1754_v2  ;;  %v2118_v2 = vld [vmem:[#allocation3 + $0x7] sm:$0x1] }
 0xeeb   : > { %v2091_v9 = vpop.xlane.xlu2 %2090 }
 0xeec   : > { %vm2095_vm9 = vcmp.eq.f32.partialorder %v2957_v41, %v2091_v9  ;;  %v2093_v8 = vsel %vm2092_vm4, %v2091_v9, %v2085_v38  ;;  %vm2132_vm4 = vcmp.eq.f32.partialorder %v2957_v41, 5.0 }
 0xeed   : > { %v2096_v57 = vsel %vm2095_vm9, %v2094_v18, 0.0 }
 0xeee   : > { %v2097_v54 = vsel %vm557_vm2, %v2096_v57, 0.0  ;;  %v466_v57 = vld [vmem:[%s3643_s22 + $0x8] sm:$0x7f] }
 0xeef   : > { %2098 = vadd.xlane.f32.xlu0 %v2097_v54 }
 0xf1a   : > { %v1756_v4 = vpop.xlane.xlu1 %1755 }
 0xf1b   : > { %v1757_v42 = vsub.f32 %v1708_v1, %v1756_v4  ;;  %v1790_v43 = vadd.f32 %v1756_v4, %v3429_v45 }
 0xf1d   : > { %v1758_v3 = vmul.f32 1.442695, %v1757_v42  ;;  %v1791_v56 = vadd.f32 %v1790_v43, %v2844_v31 }
 0xf1f   : > { %2586 = vpow2.f32 %v1758_v3 }
 0xf25   : > { %v2587_v16 = vpop.eup %2586 }
 0xf26   : > { %1767 = vperm.xlu1 %2510, %v2587_v16   ;;  %1762 = vperm.xlu2 %2509, %v2587_v16  }
 0xf27   : > { %1773 = vperm.xlu0 %2506, %v2587_v16  }
 0xf2e   : > { %2511 = vset.pattern.permute.xlu2 %v2674_v12 }
 0xf2f   : > { %1779 = vperm.xlu2 %2511, %v2587_v16   ;;  %2513 = vset.pattern.permute.xlu0 %v2676_v14 }
 0xf37   : > { %2512 = vset.pattern.permute.xlu2 %v2677_v19 }
 0xf38   : > { %1785 = vperm.xlu2 %2512, %v2587_v16   ;;  %v2126_v16 = vld [vmem:[#allocation3 + $0x6] sm:$0x1] }
 0xf40   : > { %2514 = vset.pattern.permute.xlu2 %v2678_v20 }
 0xf62   : > { %v2099_v10 = vpop.xlane.xlu0 %2098 }
 0xf63   : > { %v3613_v17 = vsel %vm2100_vm8, %v2099_v10, %v2093_v8  ;;  %vm2103_vm12 = vcmp.eq.f32.partialorder %v2957_v41, %v2099_v10  ;;  %vm2140_vm8 = vcmp.eq.f32.partialorder %v2957_v41, 4.0 }
 0xf64   : > { %v2104_v15 = vsel %vm2103_vm12, %v2102_v37, 0.0 }
 0xf65   : > { %v2105_v11 = vsel %vm557_vm2, %v2104_v15, 0.0 }
 0xf66   : > { %2106 = vadd.xlane.f32.xlu1 %v2105_v11 }
 0xf80   : > { %v1763_v6 = vpop.permute.xlu2 %1762 }
 0xf81   : > { %v1765_v44 = vmul.f32 %v2878_v52, %v1763_v6 }
 0xf89   : > { %v1780_v59 = vpop.permute.xlu2 %1779 }
 0xf8a   : > { %v1782_v32 = vmul.f32 %v2884_v60, %v1780_v59 }
 0xf92   : > { %v1786_v28 = vpop.permute.xlu2 %1785 }
 0xf93   : > { %v1788_v39 = vmul.f32 %v2887_v0, %v1786_v28 }
 0xf98   : > { %v1768_v21 = vpop.permute.xlu1 %1767 }
 0xf99   : > { %v1770_v27 = vmul.f32 %v2876_v49, %v1768_v21  ;;  %v1774_v30 = vpop.permute.xlu0 %1773 }
 0xf9a   : > { %v1776_v38 = vmul.f32 %v2882_v55, %v1774_v30 }
 0xf9b   : > { %v1771_v23 = vadd.f32 %v1770_v27, %v1765_v44 }
 0xf9d   : > { %v1777_v5 = vadd.f32 %v1776_v38, %v1771_v23 }
 0xf9f   : > { %v1783_v46 = vadd.f32 %v1782_v32, %v1777_v5 }
 0xfa1   : > { %v1789_v25 = vadd.f32 %v1788_v39, %v1783_v46 }
 0xfa3   : > { %2588 = vlog2.f32 %v1789_v25 }
 0xfa9   : > { %v2589_v48 = vpop.eup %2588 }
 0xfaa   : > { %v1793_v26 = vmul.f32 0.6931472, %v2589_v48 }
 0xfac   : > { %v1794_v47 = vadd.f32 %v1793_v26, %v1791_v56 }
 0xfae   : > { %v3626_v7 = vsel %vm1799_vm5, %v1794_v47, %v1708_v1  ;;  %v2134_v47 = vld [vmem:[#allocation3 + $0x5] sm:$0x1] }
 0xfaf   : > { %v1846_v40 = vsel %vm557_vm2, %v3626_v7, -inf }
 0xfb0   : > { %1847 = vmax.xlane.f32.xlu2 %v1846_v40 }
 0xfd9   : > { %v2107_v50 = vpop.xlane.xlu1 %2106 }
 0xfda   : > { %vm2111_vm15 = vcmp.eq.f32.partialorder %v2957_v41, %v2107_v50  ;;  %v2109_v54 = vsel %vm2108_vm0, %v2107_v50, %v3613_v17 }
 0xfdb   : > { %v2112_v58 = vsel %vm2111_vm15, %v2110_v53, 0.0  ;;  %vm2148_vm15 = vcmp.eq.f32.partialorder %v2957_v41, 3.0 }
 0xfdc   : > { %v2113_v45 = vsel %vm557_vm2, %v2112_v58, 0.0 }
 0xfdd   : > { %2114 = vadd.xlane.f32.xlu0 %v2113_v45 }
0x1023   : > { %v1848_v61 = vpop.xlane.xlu2 %1847 }
0x1024   : > { %v1849_v62 = vsub.f32 %v3626_v7, %v1848_v61 }
0x1026   : > { %v1850_v63 = vmul.f32 1.442695, %v1849_v62 }
0x1028   : > { %2590 = vpow2.f32 %v1850_v63  ;;  %v479_v63 = vld [vmem:[%s3643_s22 + $0x1] sm:$0xff] }
0x102e   : > { %v2591_v51 = vpop.eup %2590 }
0x102f   : > { %1865 = vperm.xlu2 %2514, %v2591_v51   ;;  %1854 = vperm.xlu0 %2513, %v2591_v51  }
0x1037   : > { %2516 = vset.pattern.permute.xlu2 %v2677_v19 }
0x1038   : > { %1877 = vperm.xlu2 %2516, %v2591_v51  }
0x1040   : > { %2517 = vset.pattern.permute.xlu2 %v2676_v14 }
0x1041   : > { %471 = vperm.xlu2 %2517, %v466_v57   ;;  %v2142_v57 = vld [vmem:[#allocation3 + $0x4] sm:$0x1] }
0x1049   : > { %2519 = vset.pattern.permute.xlu2 %v2675_v13  ;;  %v465_v13 = vld [vmem:[%s3643_s22] sm:$0xff] }
0x104a   : > { %468 = vperm.xlu0 %2513, %v465_v13  }
0x1050   : > { %v2115_v1 = vpop.xlane.xlu0 %2114 }
0x1051   : > { %vm2119_vm5 = vcmp.eq.f32.partialorder %v2957_v41, %v2115_v1  ;;  %v2117_v4 = vsel %vm2116_vm13, %v2115_v1, %v2109_v54  ;;  %v432_v1 = vld [vmem:[%s3643_s22 + $0x8] sm:$0xff] }
0x1052   : > { %v2120_v9 = vsel %vm2119_vm5, %v2118_v2, 0.0  ;;  %2520 = vset.pattern.permute.xlu0 %v2678_v20  ;;  %v1882_v20 = vadd.f32 %v1848_v61, %v3476_v36  ;;  %v2608_v36 = vld [vmem:[%s3812_s5] sm:$0x1f] }
0x1053   : > { %v2121_v18 = vsel %vm557_vm2, %v2120_v9, 0.0  ;;  %2311 = vmatpush.msk.msra.mxu1 %vm501_vm7, %v2608_v36  ;;  %2324 = vmatpush.msk.msra.mxu3 %vm501_vm7, %v2608_v36 }
0x1054   : > { %2122 = vadd.xlane.f32.xlu1 %v2121_v18  ;;  %v1883_v39 = vadd.f32 %v1882_v20, %v2844_v31 }
0x106d   : > { %1859 = vperm.xlu1 %2510, %v2591_v51  }
0x1075   : > { %2515 = vset.pattern.permute.xlu1 %v2674_v12 }
0x1076   : > { %1871 = vperm.xlu1 %2515, %v2591_v51   ;;  %v480_v51 = vld [vmem:[%s3643_s22 + $0x9] sm:$0x7f] }
0x107e   : > { %2518 = vset.pattern.permute.xlu1 %v2676_v14 }
0x1089   : > { %v1866_v37 = vpop.permute.xlu2 %1865 }
0x108a   : > { %v1868_v21 = vmul.f32 %v2882_v55, %v1866_v37 }
0x1092   : > { %v1878_v44 = vpop.permute.xlu2 %1877 }
0x1093   : > { %v1880_v38 = vmul.f32 %v2887_v0, %v1878_v44 }
0x109b   : > { %v472_v56 = vpop.permute.xlu2 %471 }
0x109c   : > { %vm474_vm11 = vcmp.eq.s32.totalorder %v472_v56, %v2953_v29  ;;  %v423_v56 = vld [vmem:[#allocation2 + $0x8] sm:$0xff] }
0x109d   : > { %v3676_v26 = vsel %vm474_vm11, 1.0, %v2679_v34 }
0x109e   : > { %2313 = vmatmul.msk.f32.vlgmr.msra.gmra.mxu3 %vm419_vm1, %v3676_v26 }
0x10a1   : > { %v1855_v11 = vpop.permute.xlu0 %1854 }
0x10a2   : > { %v1857_v6 = vmul.f32 %v2878_v52, %v1855_v11 }
0x10bc   : > { %v469_v50 = vpop.permute.xlu0 %468 }
0x10bd   : > { %vm473_vm9 = vcmp.eq.s32.totalorder %v469_v50, %v2953_v29 }
0x10be   : > { %v3684_v53 = vsel %vm473_vm9, 1.0, %v2679_v34 }
0x10bf   : > { %2312 = vmatmul.msk.f32.vlgmr.msra.gmra.mxu1 %vm419_vm1, %v3684_v53 }
0x10c7   : > { %v2123_v42 = vpop.xlane.xlu1 %2122 }
0x10c8   : > { %v3651_v3 = vsel %vm2124_vm14, %v2123_v42, %v2117_v4  ;;  %vm2127_vm3 = vcmp.eq.f32.partialorder %v2957_v41, %v2123_v42  ;;  %v549_v4 = vld [vmem:[%s3643_s22] sm:$0x1] }
0x10c9   : > { %v2128_v8 = vsel %vm2127_vm3, %v2126_v16, 0.0  ;;  %vm533_vm3 = vcmask 38912  }
0x10ca   : > { %v2129_v10 = vsel %vm557_vm2, %v2128_v8, 0.0 }
0x10cb   : > { %2130 = vadd.xlane.f32.xlu1 %v2129_v10 }
0x10df   : > { %v1860_v15 = vpop.permute.xlu1 %1859 }
0x10e0   : > { %v1862_v17 = vmul.f32 %v2876_v49, %v1860_v15 }
0x10e2   : > { %v1863_v59 = vadd.f32 %v1862_v17, %v1857_v6 }
0x10e4   : > { %v1869_v30 = vadd.f32 %v1868_v21, %v1863_v59 }
0x10e8   : > { %v1872_v27 = vpop.permute.xlu1 %1871 }
0x10e9   : > { %v1874_v23 = vmul.f32 %v2884_v60, %v1872_v27 }
0x10eb   : > { %v1875_v28 = vadd.f32 %v1874_v23, %v1869_v30 }
0x10ed   : > { %v1881_v32 = vadd.f32 %v1880_v38, %v1875_v28  ;;  %v422_v28 = vld [vmem:[#allocation2] sm:$0xff] }
0x10ef   : > { %2592 = vlog2.f32 %v1881_v32 }
0x10f5   : > { %v2593_v5 = vpop.eup %2592 }
0x10f6   : > { %v1885_v46 = vmul.f32 0.6931472, %v2593_v5 }
0x10f8   : > { %v1886_v25 = vadd.f32 %v1885_v46, %v1883_v39 }
0x10fa   : > { %v3667_v43 = vsel %vm1891_vm10, %v1886_v25, %v3626_v7 }
0x10fb   : > { %v1938_v48 = vsel %vm557_vm2, %v3667_v43, -inf }
0x10fc   : > { %1939 = vmax.xlane.f32.xlu2 %v1938_v48 }
0x1121   : > { %v525_v44 = vpop.f32.mrf.mxu3 }
0x113e   : > { %v2131_v35 = vpop.xlane.xlu1 %2130 }
0x113f   : > { %vm2135_vm10 = vcmp.eq.f32.partialorder %v2957_v41, %v2131_v35  ;;  %v2133_v2 = vsel %vm2132_vm4, %v2131_v35, %v3651_v3  ;;  %vm540_vm4 = vcmask 6144  }
0x1140   : > { %v2136_v7 = vsel %vm2135_vm10, %v2134_v47, 0.0 }
0x1141   : > { %v2137_v40 = vsel %vm557_vm2, %v2136_v7, 0.0 }
0x1142   : > { %2138 = vadd.xlane.f32.xlu0 %v2137_v40 }
0x116f   : > { %v3688_v58 = vpop.xlane.xlu2 %1939 }
0x1170   : > { %v1941_v45 = vsub.f32 %v3667_v43, %v3688_v58 }
0x1172   : > { %v1942_v61 = vmul.f32 1.442695, %v1941_v45 }
0x1174   : > { %2594 = vpow2.f32 %v1942_v61 }
0x117a   : > { %v2595_v62 = vpop.eup %2594 }
0x117b   : > { %1957 = vperm.xlu0 %2520, %v2595_v62   ;;  %1951 = vperm.xlu2 %2519, %v2595_v62  }
0x1183   : > { %2524 = vset.pattern.permute.xlu0 %v2676_v14  ;;  %2522 = vset.pattern.permute.xlu2 %v2677_v19 }
0x1184   : > { %434 = vperm.xlu0 %2524, %v465_v13   ;;  %1969 = vperm.xlu2 %2522, %v2595_v62   ;;  %v2150_v13 = vld [vmem:[#allocation3 + $0x3] sm:$0x1] }
0x118c   : > { %2523 = vset.pattern.permute.xlu2 %v2676_v14  ;;  %551 = vperm.xlu0 %2524, %v549_v4  }
0x118d   : > { %482 = vperm.xlu2 %2523, %v479_v63  }
0x1194   : > { %2525 = vset.pattern.permute.xlu0 %v2677_v19  ;;  %v522_v19 = vpop.f32.mrf.mxu1 }
0x1195   : > { %485 = vperm.xlu2 %2523, %v480_v51  }
0x119d   : > { %437 = vperm.xlu2 %2523, %v432_v1  }
0x11b5   : > { %v2139_v9 = vpop.xlane.xlu0 %2138 }
0x11b6   : > { %v2141_v18 = vsel %vm2140_vm8, %v2139_v9, %v2133_v2  ;;  %vm2143_vm12 = vcmp.eq.f32.partialorder %v2957_v41, %v2139_v9  ;;  %vm455_vm8 = vcmask 7168  }
0x11b7   : > { %v2144_v54 = vsel %vm2143_vm12, %v2142_v57, 0.0  ;;  %vm2172_vm12 = vcmp.eq.f32.partialorder %v2957_v41, 0.0 }
0x11b8   : > { %v2145_v14 = vsel %vm557_vm2, %v2144_v54, 0.0 }
0x11b9   : > { %2146 = vadd.xlane.f32.xlu1 %v2145_v14 }
0x11d2   : > { %1946 = vperm.xlu1 %2518, %v2595_v62  }
0x11d5   : > { %v1952_v42 = vpop.permute.xlu2 %1951 }
0x11d6   : > { %v1954_v25 = vmul.f32 %v2876_v49, %v1952_v42  ;;  %v1974_v49 = vadd.f32 %v3688_v58, %v3515_v33 }
0x11d8   : > { %v1975_v51 = vadd.f32 %v1974_v49, %v2844_v31 }
0x11da   : > { %2521 = vset.pattern.permute.xlu1 %v2674_v12 }
0x11db   : > { %1963 = vperm.xlu1 %2521, %v2595_v62  }
0x11de   : > { %v1970_v16 = vpop.permute.xlu2 %1969 }
0x11e7   : > { %v483_v3 = vpop.permute.xlu2 %482 }
0x11e8   : > { %vm487_vm5 = vcmp.eq.s32.totalorder %v483_v3, %v2953_v29 }
0x11e9   : > { %v2309_v15 = vsel %vm487_vm5, 1.0, %v2679_v34 }
0x11ea   : > { %v528_v17 = vmul.f32 %v2309_v15, %v522_v19 }
0x11ec   : > { %v530_v59 = vsel %vm419_vm1, %v528_v17, 0.0 }
0x11ed   : > { %v1958_v11 = vpop.permute.xlu0 %1957 }
0x11ee   : > { %v1960_v47 = vmul.f32 %v2882_v55, %v1958_v11 }
0x11ef   : > { %v486_v6 = vpop.permute.xlu2 %485 }
0x11f0   : > { %vm488_vm13 = vcmp.eq.s32.totalorder %v486_v6, %v2953_v29  ;;  %v2166_v6 = vld [vmem:[#allocation3 + $0x1] sm:$0x1] }
0x11f1   : > { %v2310_v21 = vsel %vm488_vm13, 1.0, %v2679_v34 }
0x11f2   : > { %v529_v30 = vmul.f32 %v2310_v21, %v525_v44 }
0x11f4   : > { %v534_v23 = vsel %vm533_vm3, %v529_v30, 0.0 }
0x11f6   : > { %v435_v27 = vpop.permute.xlu0 %434 }
0x11f7   : > { %vm439_vm14 = vcmp.eq.s32.totalorder %v435_v27, %v2953_v29  ;;  %v438_v32 = vpop.permute.xlu2 %437 }
0x11f8   : > { %v2305_v38 = vsel %vm439_vm14, 1.0, %v2679_v34  ;;  %vm440_vm7 = vcmp.eq.s32.totalorder %v438_v32, %v2953_v29  ;;  %v493_v32 = vld [vmem:[%s2827_s29 + $0x1] sm:$0xff] }
0x11f9   : > { %v445_v20 = vmul.f32 %v2305_v38, %v422_v28  ;;  %v2306_v48 = vsel %vm440_vm7, 1.0, %v2679_v34 }
0x11fa   : > { %v446_v35 = vmul.f32 %v2306_v48, %v423_v56 }
0x11fb   : > { %v447_v46 = vsel %vm419_vm1, %v445_v20, 0.0 }
0x11fc   : > { %v450_v45 = vsel %vm419_vm1, %v446_v35, 0.0 }
0x11fe   : > { %v552_v31 = vpop.permute.xlu0 %551 }
0x11ff   : > { %vm553_vm11 = vcmp.eq.s32.totalorder %v552_v31, %v2953_v29 }
0x1200   : > { %v2314_v22 = vsel %vm553_vm11, 1.0, %v2679_v34 }
0x122c   : > { %v2147_v8 = vpop.xlane.xlu1 %2146 }
0x122d   : > { %v3708_v10 = vsel %vm2148_vm15, %v2147_v8, %v2141_v18  ;;  %vm2151_vm0 = vcmp.eq.f32.partialorder %v2957_v41, %v2147_v8 }
0x122e   : > { %v2152_v37 = vsel %vm2151_vm0, %v2150_v13, 0.0 }
0x122f   : > { %v2153_v12 = vsel %vm557_vm2, %v2152_v37, 0.0 }
0x1230   : > { %2154 = vadd.xlane.f32.xlu1 %v2153_v12 }
0x1238   : > { %531 = vadd.xlane.f32.xlu1 %v530_v59 }
0x1240   : > { %535 = vadd.xlane.f32.xlu1 %v534_v23  ;;  %v494_v23 = vld [vmem:[%s2827_s29 + $0x9] sm:$0x7f] }
0x1244   : > { %v1947_v5 = vpop.permute.xlu1 %1946 }
0x1245   : > { %v1949_v39 = vmul.f32 %v2878_v52, %v1947_v5  ;;  %v1972_v52 = vmul.f32 %v2887_v0, %v1970_v16  ;;  %v2527_v0 = vld [vmem:[%s3814_s7] ss:$0 sm:$0xff] }
0x1246   : > { %v564_v18 = vmul.f32 %v2527_v0, %v2305_v38  ;;  %v572_v58 = vmul.f32 %v2527_v0, %v3684_v53  ;;  %v565_v14 = vmul.f32 %v2527_v0, %v2306_v48  ;;  %v2158_v53 = vld [vmem:[#allocation3 + $0x2] sm:$0x1]  ;;  %v573_v3 = vmul.f32 %v2527_v0, %v3676_v26  ;;  %v424_v5 = vld [vmem:[%s2827_s29] sm:$0xff] }
0x1247   : > { %v1955_v36 = vadd.f32 %v1954_v25, %v1949_v39  ;;  %v425_v39 = vld [vmem:[%s2827_s29 + $0x8] sm:$0xff]  ;;  %s2626_s29 = scalar_lea.hbm %s2625_s26, 1 }
0x1248   : > { %448 = vadd.xlane.f32.xlu1 %v447_v46  ;;  %v566_v33 = vsel %vm419_vm1, %v564_v18, 0.0  ;;  %v569_v4 = vsel %vm419_vm1, %v565_v14, 0.0  ;;  %v577_v8 = vsel %vm533_vm3, %v573_v3, 0.0  ;;  %p2627_p11 = scmp.ne.s32.totalorder %s2625_s26, %s2626_s29 }
0x1249   : > { %v1961_v40 = vadd.f32 %v1960_v47, %v1955_v36 }
0x124a   : > { %p2628_p12 = pnand %p2627_p11, %p2768_p5 }
0x124c   : > { %p2629_p13 = pneg %p2628_p12 }
0x124d   : > { %v1964_v7 = vpop.permute.xlu1 %1963 }
0x124e   : > { %v1966_v50 = vmul.f32 %v2884_v60, %v1964_v7 }
0x1250   : > { %v1967_v61 = vadd.f32 %v1966_v50, %v1961_v40  ;;  %451 = vadd.xlane.f32.xlu1 %v450_v45 }
0x1252   : > { %v1973_v62 = vadd.f32 %v1972_v52, %v1967_v61 }
0x1254   : > { %2596 = vlog2.f32 %v1973_v62 }
0x1258   : > { %570 = vadd.xlane.f32.xlu1 %v569_v4 }
0x125a   : > { %v2597_v63 = vpop.eup %2596 }
0x125b   : > { %v1977_v1 = vmul.f32 0.6931472, %v2597_v63 }
0x125d   : > { %v1978_v55 = vadd.f32 %v1977_v1, %v1975_v51 }
0x125f   : > { %v1984_v60 = vsel %vm1983_vm6, %v1978_v55, %v3667_v43  ;;  %v2609_v43 = vld [vmem:[%s3813_s6] sm:$0x1]  ;;  %vm2156_vm6 = vcmp.eq.f32.partialorder %v2957_v41, 2.0 }
0x1260   : > { %v2027_v2 = vadd.f32 %v1984_v60, %v3524_v24  ;;  %v574_v24 = vsel %vm419_vm1, %v572_v58, 0.0  ;;  %v556_v57 = vmul.f32 %v2609_v43, %v2314_v22  ;;  %vm2164_vm1 = vcmp.eq.f32.partialorder %v2957_v41, 1.0 }
0x1262   : > { %v2028_v9 = vsel %vm557_vm2, %v2027_v2, -inf  ;;  %v558_v54 = vsel %vm557_vm2, %v556_v57, 0.0 }
0x1263   : > { %2029 = vmax.xlane.f32.xlu2 %v2028_v9 }
0x126b   : > { %567 = vadd.xlane.f32.xlu2 %v566_v33 }
0x1273   : > { %575 = vadd.xlane.f32.xlu2 %v574_v24 }
0x127b   : > { %559 = vadd.xlane.f32.xlu2 %v558_v54 }
0x12a3   : > { %v2155_v29 = vpop.xlane.xlu1 %2154 }
0x12a4   : > { %v2157_v34 = vsel %vm2156_vm6, %v2155_v29, %v3708_v10  ;;  %vm2159_vm10 = vcmp.eq.f32.partialorder %v2957_v41, %v2155_v29 }
0x12a5   : > { %v2160_v42 = vsel %vm2159_vm10, %v2158_v53, 0.0 }
0x12a6   : > { %v2161_v16 = vsel %vm557_vm2, %v2160_v42, 0.0 }
0x12a7   : > { %2162 = vadd.xlane.f32.xlu0 %v2161_v16 }
0x12ab   : > { %v532_v11 = vpop.xlane.xlu1 %531 }
0x12ac   : > { %v537_v36 = vmul.f32 %v532_v11, %v493_v32 }
0x12ae   : > { %v539_v52 = vsel %vm455_vm8, %v537_v36, 0.0 }
0x12af   : > { %578 = vadd.xlane.f32.xlu0 %v577_v8 }
0x12b3   : > { %v536_v19 = vpop.xlane.xlu1 %535 }
0x12b4   : > { %v538_v20 = vmul.f32 %v536_v19, %v494_v23 }
0x12b6   : > { %v541_v47 = vsel %vm540_vm4, %v538_v20, 0.0 }
0x12b7   : > { %v542_v49 = vadd.f32 %v541_v47, %v539_v52 }
0x12b9   : > { %v543_v60 = vrot.slane %v542_v49, 4 }
0x12bb   : > { %v449_v44 = vpop.xlane.xlu1 %448  ;;  %v544_v18 = vadd.f32 %v543_v60, %v542_v49 }
0x12bc   : > { %v453_v61 = vmul.f32 %v449_v44, %v424_v5 }
0x12bd   : > { %v545_v24 = vrot.slane %v544_v18, 2 }
0x12be   : > { %v456_v55 = vsel %vm455_vm8, %v453_v61, 0.0 }
0x12bf   : > { %v546_v14 = vadd.f32 %v545_v24, %v544_v18 }
0x12c3   : > { %v452_v27 = vpop.xlane.xlu1 %451 }
0x12c4   : > { %v454_v7 = vmul.f32 %v452_v27, %v425_v39 }
0x12c6   : > { %v457_v1 = vsel %vm455_vm8, %v454_v7, 0.0 }
0x12cb   : > { %v571_v28 = vpop.xlane.xlu1 %570 }
0x12cc   : > { %v581_v56 = vmul.f32 %v571_v28, %v425_v39 }
0x12ce   : > { %v583_v45 = vsel %vm455_vm8, %v581_v56, 0.0 }
0x12d6   : > { %v3755_v13 = vpop.xlane.xlu2 %2029 }
0x12d7   : > { %v2031_v37 = vsub.f32 %v2027_v2, %v3755_v13  ;;  %v458_v2 = vadd.f32 %v457_v1, %v456_v55 }
0x12d9   : > { %v2032_v12 = vmul.f32 1.442695, %v2031_v37  ;;  %v459_v33 = vrot.slane %v458_v2, 4 }
0x12db   : > { %2598 = vpow2.f32 %v2032_v12  ;;  %v460_v22 = vadd.f32 %v459_v33, %v458_v2 }
0x12dd   : > { %v461_v54 = vrot.slane %v460_v22, 2 }
0x12de   : > { %v568_v30 = vpop.xlane.xlu2 %567 }
0x12df   : > { %v580_v25 = vmul.f32 %v568_v30, %v424_v5  ;;  %v462_v53 = vadd.f32 %v461_v54, %v460_v22 }
0x12e1   : > { %v2599_v15 = vpop.eup %2598  ;;  %v582_v40 = vsel %vm455_vm8, %v580_v25, 0.0  ;;  %v463_v12 = vrot.slane %v462_v53, 1 }
0x12e2   : > { %v2034_v10 = vsel %vm557_vm2, %v2599_v15, 0.0  ;;  %v584_v51 = vadd.f32 %v583_v45, %v582_v40 }
0x12e3   : > { %2035 = vadd.xlane.f32.xlu1 %v2034_v10  ;;  %v464_v19 = vadd.f32 %v463_v12, %v462_v53 }
0x12e4   : > { %v585_v9 = vrot.slane %v584_v51, 4 }
0x12e6   : > { %v576_v46 = vpop.xlane.xlu2 %575  ;;  %v586_v58 = vadd.f32 %v585_v9, %v584_v51 }
0x12e7   : > { %v591_v35 = vmul.f32 %v576_v46, %v493_v32 }
0x12e8   : > { %v587_v57 = vrot.slane %v586_v58, 2 }
0x12e9   : > { %v593_v62 = vsel %vm455_vm8, %v591_v35, 0.0 }
0x12ea   : > { %v588_v29 = vadd.f32 %v587_v57, %v586_v58 }
0x12ec   : > { %v589_v16 = vrot.slane %v588_v29, 1 }
0x12ee   : > { %v560_v8 = vpop.xlane.xlu2 %559  ;;  %v590_v10 = vadd.f32 %v589_v16, %v588_v29 }
0x131a   : > { %v2163_v26 = vpop.xlane.xlu0 %2162 }
0x131b   : > { %v3760_v17 = vsel %vm2164_vm1, %v2163_v26, %v2157_v34  ;;  %vm2167_vm9 = vcmp.eq.f32.partialorder %v2957_v41, %v2163_v26  ;;  %v547_v34 = vrot.slane %v546_v14, 1 }
0x131c   : > { %v2168_v59 = vsel %vm2167_vm9, %v2166_v6, 0.0 }
0x131d   : > { %v2169_v21 = vsel %vm557_vm2, %v2168_v59, 0.0  ;;  %v548_v37 = vadd.f32 %v547_v34, %v546_v14  ;;  %vm2041_vm2 = vcmask 0  }
0x131e   : > { %2170 = vadd.xlane.f32.xlu0 %v2169_v21 }
0x131f   : > { %v603_v11 = vadd.f32 %v560_v8, %v548_v37 }
0x1321   : > { %v604_v59 = vadd.f32 %v603_v11, %v464_v19 }
0x1322   : > { %v579_v38 = vpop.xlane.xlu0 %578 }
0x1323   : > { %v592_v48 = vmul.f32 %v579_v38, %v494_v23 }
0x1325   : > { %v594_v50 = vsel %vm540_vm4, %v592_v48, 0.0 }
0x1326   : > { %v595_v63 = vadd.f32 %v594_v50, %v593_v62 }
0x1328   : > { %v596_v0 = vrot.slane %v595_v63, 4 }
0x132a   : > { %v597_v31 = vadd.f32 %v596_v0, %v595_v63 }
0x132c   : > { %v598_v43 = vrot.slane %v597_v31, 2 }
0x132e   : > { %v599_v4 = vadd.f32 %v598_v43, %v597_v31 }
0x1330   : > { %v600_v42 = vrot.slane %v599_v4, 1 }
0x1332   : > { %v601_v15 = vadd.f32 %v600_v42, %v599_v4 }
0x1334   : > { %v602_v26 = vsub.f32 %v590_v10, %v601_v15 }
0x1336   : > { %v605_v44 = vadd.f32 %v604_v59, %v602_v26 }
0x1356   : > { %v2036_v3 = vpop.xlane.xlu1 %2035 }
0x1357   : > { %2600 = vlog2.f32 %v2036_v3 }
0x135d   : > { %v2601_v6 = vpop.eup %2600 }
0x135e   : > { %v2038_v21 = vmul.f32 0.6931472, %v2601_v6 }
0x1360   : > { %v2039_v27 = vadd.f32 %v2038_v21, %v3755_v13 }
0x1362   : > { %v2040_v30 = vsub.f32 %v2039_v27, %v605_v44 }
0x1364   : > { %2042 = vst.msk [vmem:[%s378_s16] sm:$0x1] %vm2041_vm2, %v2040_v30  ;;  %s2630_s16 = scalar_lea.hbm %s3816_s9, 2 }
0x1365   : > { %p2632_p1 = scmp.lt.s32.totalorder %s2630_s16, %s2626_s29 }
0x1367   : > { %p2633_p2 = por %p2632_p1, %p2631_p0 }
0x1369   : > { %p2634_p3 = pnand %p2633_p2, %p2629_p13 }
0x1391   : > { %v2171_v23 = vpop.xlane.xlu0 %2170 }
0x1392   : > { %v2173_v38 = vsel %vm2172_vm12, %v2171_v23, %v3760_v17 }
0x1393   : > { %vm2325_vm15 = vcmp.lt.s32.totalorder %v2173_v38, 0  ;;  %v2326_v13 = vceil.f32 %v2173_v38  ;;  %v2327_v28 = vfloor.f32 %v2173_v38 }
0x1395   : > { %v2328_v32 = vsel %vm2325_vm15, %v2326_v13, %v2327_v28 }
0x1396   : > { %v2329_v20 = vcvt.f32.s32 %v2328_v32 }
0x1398   : > { %2175 = vst [vmem:[%s360_s21] sm:$0x1] %v2329_v20 }
0x1399   : > { %2637 = shalt.err (!%p2634_p3)
}
0x139a   : > { %2330 = dma.vmem_to_hbm [thread:$0]  (%p2768_p5), %s2194_s24, 16, %s2196_s27, %s2180_s25  }
0x139b PF: > { %p2336_p4 = scmp.ge.s32.totalorder %s2672_s12, 2  ;;  %s2213_s17 = sand.u32 1, %s2660_s30  }
0x139c   : > { %s2214_s23 = scalar_lea.sflag [#allocation5], %s2213_s17 }
0x139d   : > { %p2333_p7 = pnand %p2336_p4, %p2772_p6 }
0x139f   : > { %p2334_p8 = pneg %p2333_p7 }
0x13a1   : > { %2655 = dma.done.wait (%p2334_p8), %s2214_s23, 16  }
0x13a2   : > { %2657 = vsyncadd (%p2334_p8), %s2214_s23, 4294967280  ;;  %p20_p9 = scmp.ge.s32.totalorder %s2755_s15, 4   ;;  %s3819_s30 = smov %s2664_s10 }
0x13a3   : > { %s3820_s10 = smov %s2668_s11  ;;  %s3821_s11 = smov %s2766_s18 }
0x13a4   : > { %s3822_s12 = smov %s2755_s15  ;;  %22 = sbr.rel (!%p20_p9) target bundleno = 3 (0x3), region = 105 }
0x13a9   :  { %2219 = vsyncpa [#allocation5], 1 }
0x13aa   :  { %2221 = vsyncpa [#allocation5 + $0x1], 1 }

</bundles_post_ra>
